<compile_context>
chip_gen: v7x
topology: tpu7x:2x2x1
jax: 0.10.0
libtpu: 0.0.40
codegen_flags: <defaults>
</compile_context>

<pallas_src>
import functools

import jax
import jax.numpy as jnp
from jax.experimental import pallas as pl
from jax.experimental.pallas import tpu as pltpu


# --------------------------------- kernel -----------------------------------


def unet_output_kernel(
    x_ref, gn_g_ref, gn_b_ref, w_ref, b_ref, ml_ref, mr_ref,
    out_ref, rpad_ref,
    *, n_groups, eps, img_w, pad, cout,
):
    x = x_ref[0].astype(jnp.float32)              # (HW, Cin)
    hw, cin = x.shape
    cpg = cin // n_groups
    inv_n = 1.0 / float(hw * cpg)
    ncols = 9 * cout

    # ---- GroupNorm(32, Cin): two-pass stats in f32 -------------------------
    # One-hot group matrices built in-kernel (avoids 2 weight DMAs); the
    # (1,C)@(C,G) / (1,G)@(G,C) matmuls are tiny and negligible on the MXU.
    c_ids = jax.lax.broadcasted_iota(jnp.int32, (cin, n_groups), 0)
    g_ids = jax.lax.broadcasted_iota(jnp.int32, (cin, n_groups), 1)
    gmat = jnp.where((c_ids >= g_ids * cpg) & (c_ids < (g_ids + 1) * cpg), 1.0, 0.0)
    g_ids_t = jax.lax.broadcasted_iota(jnp.int32, (n_groups, cin), 0)
    c_ids_t = jax.lax.broadcasted_iota(jnp.int32, (n_groups, cin), 1)
    gmat_t = jnp.where((c_ids_t >= g_ids_t * cpg) & (c_ids_t < (g_ids_t + 1) * cpg), 1.0, 0.0)

    s_c = jnp.sum(x, axis=0, keepdims=True)                                     # (1, Cin)
    mean_g = jnp.dot(s_c, gmat, preferred_element_type=jnp.float32) * inv_n     # (1, G)
    mean_c = jnp.dot(mean_g, gmat_t, preferred_element_type=jnp.float32)        # (1, Cin)
    d = x - mean_c
    ss_c = jnp.sum(d * d, axis=0, keepdims=True)                                # (1, Cin)
    var_g = jnp.dot(ss_c, gmat, preferred_element_type=jnp.float32) * inv_n     # (1, G)
    rstd_c = jnp.dot(jax.lax.rsqrt(var_g + eps), gmat_t,
                     preferred_element_type=jnp.float32)                        # (1, Cin)
    xn = d * (gn_g_ref[...] * rstd_c) + gn_b_ref[...]

    # ---- SiLU: exp and approx reciprocal both run on the EUP slot -----------
    h = xn * pl.reciprocal(1.0 + jnp.exp(-xn), approx=True)

    # ---- 3x3 conv: ONE packed matmul, all 9 taps along the N dimension ------
    r = jnp.dot(h.astype(jnp.bfloat16), w_ref[...],
                preferred_element_type=jnp.float32)                             # (HW, 9*Cout)

    # Small zero-row-padded scratch on the result side; pad rows re-zeroed each
    # step (keeps per-core scratch correct under "parallel" batch semantics).
    rpad_ref[0:pad, :] = jnp.zeros((pad, ncols), jnp.float32)
    rpad_ref[pad + hw:pad + hw + pad, :] = jnp.zeros((pad, ncols), jnp.float32)
    rpad_ref[pad:pad + hw, :] = r

    def tap(dy, dx):
        t = (dy + 1) * 3 + (dx + 1)                  # tap-major packed column group
        start = pad + dy * img_w + dx                # static shifted sublane slice
        return rpad_ref[start:start + hw, t * cout:(t + 1) * cout]

    # Center tap taken straight from the matmul result (no scratch round-trip).
    acc_c = tap(-1, 0) + r[:, 4 * cout:5 * cout] + tap(1, 0)   # dx = 0 taps
    acc_l = tap(-1, -1) + tap(0, -1) + tap(1, -1)              # dx = -1 taps
    acc_r = tap(-1, 1) + tap(0, 1) + tap(1, 1)                 # dx = +1 taps

    out = acc_c + acc_l * ml_ref[...] + acc_r * mr_ref[...] + b_ref[...]
    out_ref[0] = out.astype(out_ref.dtype)


# --------------------------------- wrapper ----------------------------------


def _vmem_limit_bytes(estimate_bytes):
    # Per-generation headroom: physical VMEM is 128 MiB (v5e/v6e), 64 MiB (v7x).
    try:
        cap = int(pltpu.get_tpu_info().vmem_capacity_bytes)
    except Exception:
        cap = 64 * 1024 * 1024
    return int(max(32 * 1024 * 1024, min(2 * estimate_bytes, (cap * 9) // 10)))


def unet_output_layer(x_nchw, params, *, n_groups=32, eps=1e-5):
    B, Cin, H, W = x_nchw.shape
    HW = H * W
    conv_w = params["conv_w"]                         # (Cout, Cin, 3, 3)
    Cout = conv_w.shape[0]

    # NCHW -> (B, HW, Cin) token layout (pure glue, outside the kernel).
    # TODO(synk): NCHW-native kernel layout would remove this HBM transpose pair.
    x_tok = x_nchw.reshape(B, Cin, HW).transpose(0, 2, 1)

    # Conv weights packed tap-major along N: column (ky*3 + kx)*Cout + o, row c.
    # Passed in bf16 so the single MXU matmul runs at bf16 throughput.
    w_packed = jnp.transpose(conv_w, (1, 2, 3, 0)).reshape(Cin, 9 * Cout).astype(jnp.bfloat16)
    bias = params["conv_b"].reshape(1, Cout).astype(jnp.float32)
    gn_g = params["gn_g"].reshape(1, Cin).astype(jnp.float32)
    gn_b = params["gn_b"].reshape(1, Cin).astype(jnp.float32)

    # Column-validity masks for the dx = -1 / +1 taps (multiplicative, f32).
    col = jnp.arange(HW, dtype=jnp.int32) % W
    mask_l = (col >= 1).astype(jnp.float32).reshape(HW, 1)
    mask_r = (col <= W - 2).astype(jnp.float32).reshape(HW, 1)

    pad = ((W + 1 + 7) // 8) * 8                      # zero-pad rows, sublane aligned

    kernel = functools.partial(unet_output_kernel, n_groups=n_groups, eps=eps,
                               img_w=W, pad=pad, cout=Cout)

    def full_block(a):
        return pl.BlockSpec(a.shape, lambda b: (0, 0))

    # Rough live-VMEM estimate: double-buffered blocks + scratch + f32 temporaries.
    est = (2 * HW * Cin * 4                              # x block x2
           + 2 * HW * Cout * 4                           # out block x2
           + (HW + 2 * pad) * 9 * Cout * 4               # result scratch
           + 5 * HW * Cin * 4                            # f32 temporaries (x, d, xn, h, ...)
           + 2 * HW * 9 * Cout * 4                       # packed result + partial sums
           + 2 * (9 * Cin * Cout * 2 + (Cin + Cout + 2 * HW) * 4))  # weights/bias/masks

    # TODO(synk): add a halo'd spatial row-band grid axis (marked "parallel") with a
    # split GroupNorm-stats pass so large latents tile VMEM and v7x uses both TCs at B=1.
    out_tok = pl.pallas_call(
        kernel,
        out_shape=jax.ShapeDtypeStruct((B, HW, Cout), jnp.float32),
        grid_spec=pltpu.PrefetchScalarGridSpec(
            num_scalar_prefetch=0,
            grid=(B,),
            in_specs=[pl.BlockSpec((1, HW, Cin), lambda b: (b, 0, 0)),
                      full_block(gn_g), full_block(gn_b),
                      full_block(w_packed), full_block(bias),
                      full_block(mask_l), full_block(mask_r)],
            out_specs=pl.BlockSpec((1, HW, Cout), lambda b: (b, 0, 0)),
            scratch_shapes=[pltpu.VMEM((HW + 2 * pad, 9 * Cout), jnp.float32)],
        ),
        compiler_params=pltpu.CompilerParams(
            dimension_semantics=("parallel",),
            vmem_limit_bytes=_vmem_limit_bytes(est)),
    )(x_tok, gn_g, gn_b, w_packed, bias, mask_l, mask_r)

    # tokens -> NCHW.
    return out_tok.transpose(0, 2, 1).reshape(B, Cout, H, W)


# ----------------------------- pure-JAX reference ---------------------------


def ref_forward(x_nchw, params, *, n_groups=32, eps=1e-5):
    B, C, H, W = x_nchw.shape
    xg = x_nchw.reshape(B, n_groups, -1)
    mu = xg.mean(-1, keepdims=True)
    var = ((xg - mu) ** 2).mean(-1, keepdims=True)
    xn = ((xg - mu) / jnp.sqrt(var + eps)).reshape(B, C, H, W)
    xn = xn * params["gn_g"].reshape(1, C, 1, 1) + params["gn_b"].reshape(1, C, 1, 1)
    h = xn * jax.nn.sigmoid(xn)
    out = jax.lax.conv_general_dilated(
        h, params["conv_w"], window_strides=(1, 1), padding=((1, 1), (1, 1)),
        dimension_numbers=("NCHW", "OIHW", "NCHW"),
        precision=jax.lax.Precision.HIGHEST)
    return out + params["conv_b"].reshape(1, -1, 1, 1)


# ----------------------------------- main ------------------------------------


if __name__ == "__main__":
    # in_channels must be divisible by 32 (GroupNorm(32, in_channels)).
    B, Cin, Cout, H, W = 2, 64, 64, 16, 16

    key = jax.random.PRNGKey(0)
    kx, kg, kb, kw, kc = jax.random.split(key, 5)
    x = jax.random.normal(kx, (B, Cin, H, W), jnp.float32)

    bound = 1.0 / (Cin * 9) ** 0.5
    params = {
        "gn_g": 1.0 + 0.1 * jax.random.normal(kg, (Cin,), jnp.float32),
        "gn_b": 0.1 * jax.random.normal(kb, (Cin,), jnp.float32),
        "conv_w": jax.random.uniform(kw, (Cout, Cin, 3, 3), jnp.float32, -bound, bound),
        "conv_b": jax.random.uniform(kc, (Cout,), jnp.float32, -bound, bound),
    }

    out = unet_output_layer(x, params)
    out = jax.block_until_ready(out)

    ref = ref_forward(x, params)
    max_err = float(jnp.max(jnp.abs(out - ref)))
    if max_err > 5e-2:
        raise AssertionError(f"Pallas kernel mismatch vs reference: max abs err {max_err}")

    print("KERNEL_OK")
</pallas_src>

<mosaic_0001>
module attributes {stable_mosaic.version = 11 : i64} {
  func.func @unet_output_kernel(%arg0: i32, %arg1: memref<1x256x64xf32, #tpu.memory_space<vmem>>, %arg2: memref<1x64xf32, #tpu.memory_space<vmem>>, %arg3: memref<1x64xf32, #tpu.memory_space<vmem>>, %arg4: memref<64x576xbf16, #tpu.memory_space<vmem>>, %arg5: memref<1x64xf32, #tpu.memory_space<vmem>>, %arg6: memref<256x1xf32, #tpu.memory_space<vmem>>, %arg7: memref<256x1xf32, #tpu.memory_space<vmem>>, %arg8: memref<1x256x64xf32, #tpu.memory_space<vmem>>, %arg9: memref<304x576xf32, #tpu.memory_space<vmem>>) attributes {dimension_semantics = [#tpu.dimension_semantics<parallel>], iteration_bounds = array<i64: 2>, scalar_prefetch = 0 : i64, scratch_operands = 1 : i64, tpu.core_type = #tpu.core_type<tc>, window_params = [{transform_indices = @transform_0, window_bounds = array<i64: 1, 256, 64>}, {pipeline_mode = #tpu.pipeline_mode<synchronous>, transform_indices = @transform_1, window_bounds = array<i64: 1, 64>}, {pipeline_mode = #tpu.pipeline_mode<synchronous>, transform_indices = @transform_2, window_bounds = array<i64: 1, 64>}, {pipeline_mode = #tpu.pipeline_mode<synchronous>, transform_indices = @transform_3, window_bounds = array<i64: 64, 576>}, {pipeline_mode = #tpu.pipeline_mode<synchronous>, transform_indices = @transform_4, window_bounds = array<i64: 1, 64>}, {pipeline_mode = #tpu.pipeline_mode<synchronous>, transform_indices = @transform_5, window_bounds = array<i64: 256, 1>}, {pipeline_mode = #tpu.pipeline_mode<synchronous>, transform_indices = @transform_6, window_bounds = array<i64: 256, 1>}, {transform_indices = @transform_7, window_bounds = array<i64: 1, 256, 64>}]} {
    %c0 = arith.constant 0 : index
    %c0_0 = arith.constant 0 : index
    %c0_1 = arith.constant 0 : index
    %0 = vector.load %arg1[%c0, %c0_0, %c0_1] : memref<1x256x64xf32, #tpu.memory_space<vmem>>, vector<1x256x64xf32>
    %1 = vector.shape_cast %0 : vector<1x256x64xf32> to vector<256x64xf32>
    %2 = tpu.iota {dimensions = array<i32: 0>} : vector<64x32xi32>
    %3 = tpu.iota {dimensions = array<i32: 1>} : vector<64x32xi32>
    %c2_i32 = arith.constant 2 : i32
    %4 = vector.broadcast %c2_i32 : i32 to vector<64x32xi32>
    %5 = arith.muli %3, %4 : vector<64x32xi32>
    %6 = arith.cmpi sge, %2, %5 : vector<64x32xi32>
    %c1_i32 = arith.constant 1 : i32
    %7 = vector.broadcast %c1_i32 : i32 to vector<64x32xi32>
    %8 = arith.addi %3, %7 : vector<64x32xi32>
    %c2_i32_2 = arith.constant 2 : i32
    %9 = vector.broadcast %c2_i32_2 : i32 to vector<64x32xi32>
    %10 = arith.muli %8, %9 : vector<64x32xi32>
    %11 = arith.cmpi slt, %2, %10 : vector<64x32xi32>
    %12 = arith.andi %6, %11 : vector<64x32xi1>
    %cst = arith.constant 1.000000e+00 : f32
    %cst_3 = arith.constant 0.000000e+00 : f32
    %13 = vector.broadcast %cst : f32 to vector<64x32xf32>
    %14 = vector.broadcast %cst_3 : f32 to vector<64x32xf32>
    %15 = arith.select %12, %13, %14 : vector<64x32xi1>, vector<64x32xf32>
    %16 = tpu.iota {dimensions = array<i32: 0>} : vector<32x64xi32>
    %17 = tpu.iota {dimensions = array<i32: 1>} : vector<32x64xi32>
    %c2_i32_4 = arith.constant 2 : i32
    %18 = vector.broadcast %c2_i32_4 : i32 to vector<32x64xi32>
    %19 = arith.muli %16, %18 : vector<32x64xi32>
    %20 = arith.cmpi sge, %17, %19 : vector<32x64xi32>
    %c1_i32_5 = arith.constant 1 : i32
    %21 = vector.broadcast %c1_i32_5 : i32 to vector<32x64xi32>
    %22 = arith.addi %16, %21 : vector<32x64xi32>
    %c2_i32_6 = arith.constant 2 : i32
    %23 = vector.broadcast %c2_i32_6 : i32 to vector<32x64xi32>
    %24 = arith.muli %22, %23 : vector<32x64xi32>
    %25 = arith.cmpi slt, %17, %24 : vector<32x64xi32>
    %26 = arith.andi %20, %25 : vector<32x64xi1>
    %cst_7 = arith.constant 1.000000e+00 : f32
    %cst_8 = arith.constant 0.000000e+00 : f32
    %27 = vector.broadcast %cst_7 : f32 to vector<32x64xf32>
    %28 = vector.broadcast %cst_8 : f32 to vector<32x64xf32>
    %29 = arith.select %26, %27, %28 : vector<32x64xi1>, vector<32x64xf32>
    %cst_9 = arith.constant dense<0.000000e+00> : vector<64xf32>
    %30 = vector.multi_reduction <add>, %1, %cst_9 [0] : vector<256x64xf32> to vector<64xf32>
    %31 = vector.shape_cast %30 : vector<64xf32> to vector<1x64xf32>
    %cst_10 = arith.constant dense<0.000000e+00> : vector<1x32xf32>
    %32 = tpu.matmul %31, %15, %cst_10 {dimension_numbers = #tpu.dot_dimension_numbers<[1], [0], [0], [1], [0, 0, 1, 1], [], []>} : vector<1x64xf32>, vector<64x32xf32>, vector<1x32xf32> -> vector<1x32xf32>
    %cst_11 = arith.constant 0.001953125 : f32
    %33 = vector.broadcast %cst_11 : f32 to vector<1x32xf32>
    %34 = arith.mulf %32, %33 : vector<1x32xf32>
    %cst_12 = arith.constant dense<0.000000e+00> : vector<1x64xf32>
    %35 = tpu.matmul %34, %29, %cst_12 {dimension_numbers = #tpu.dot_dimension_numbers<[1], [0], [0], [1], [0, 0, 1, 1], [], []>} : vector<1x32xf32>, vector<32x64xf32>, vector<1x64xf32> -> vector<1x64xf32>
    %36 = vector.broadcast %35 : vector<1x64xf32> to vector<256x64xf32>
    %37 = arith.subf %1, %36 : vector<256x64xf32>
    %38 = arith.mulf %37, %37 : vector<256x64xf32>
    %cst_13 = arith.constant dense<0.000000e+00> : vector<64xf32>
    %39 = vector.multi_reduction <add>, %38, %cst_13 [0] : vector<256x64xf32> to vector<64xf32>
    %40 = vector.shape_cast %39 : vector<64xf32> to vector<1x64xf32>
    %cst_14 = arith.constant dense<0.000000e+00> : vector<1x32xf32>
    %41 = tpu.matmul %40, %15, %cst_14 {dimension_numbers = #tpu.dot_dimension_numbers<[1], [0], [0], [1], [0, 0, 1, 1], [], []>} : vector<1x64xf32>, vector<64x32xf32>, vector<1x32xf32> -> vector<1x32xf32>
    %cst_15 = arith.constant 0.001953125 : f32
    %42 = vector.broadcast %cst_15 : f32 to vector<1x32xf32>
    %43 = arith.mulf %41, %42 : vector<1x32xf32>
    %cst_16 = arith.constant 9.99999974E-6 : f32
    %44 = vector.broadcast %cst_16 : f32 to vector<1x32xf32>
    %45 = arith.addf %43, %44 : vector<1x32xf32>
    %46 = math.rsqrt %45 : vector<1x32xf32>
    %cst_17 = arith.constant dense<0.000000e+00> : vector<1x64xf32>
    %47 = tpu.matmul %46, %29, %cst_17 {dimension_numbers = #tpu.dot_dimension_numbers<[1], [0], [0], [1], [0, 0, 1, 1], [], []>} : vector<1x32xf32>, vector<32x64xf32>, vector<1x64xf32> -> vector<1x64xf32>
    %c0_18 = arith.constant 0 : index
    %c0_19 = arith.constant 0 : index
    %48 = vector.load %arg2[%c0_18, %c0_19] : memref<1x64xf32, #tpu.memory_space<vmem>>, vector<1x64xf32>
    %49 = arith.mulf %48, %47 : vector<1x64xf32>
    %50 = vector.broadcast %49 : vector<1x64xf32> to vector<256x64xf32>
    %51 = arith.mulf %37, %50 : vector<256x64xf32>
    %c0_20 = arith.constant 0 : index
    %c0_21 = arith.constant 0 : index
    %52 = vector.load %arg3[%c0_20, %c0_21] : memref<1x64xf32, #tpu.memory_space<vmem>>, vector<1x64xf32>
    %53 = vector.broadcast %52 : vector<1x64xf32> to vector<256x64xf32>
    %54 = arith.addf %51, %53 : vector<256x64xf32>
    %cst_22 = arith.constant 0.000000e+00 : f32
    %55 = vector.broadcast %cst_22 : f32 to vector<256x64xf32>
    %56 = arith.subf %55, %54 : vector<256x64xf32>
    %57 = math.exp %56 : vector<256x64xf32>
    %cst_23 = arith.constant 1.000000e+00 : f32
    %58 = vector.broadcast %cst_23 : f32 to vector<256x64xf32>
    %59 = arith.addf %58, %57 : vector<256x64xf32>
    %60 = tpu.reciprocal %59 {approx = true} : vector<256x64xf32> -> vector<256x64xf32>
    %61 = arith.mulf %54, %60 : vector<256x64xf32>
    %62 = arith.truncf %61 : vector<256x64xf32> to vector<256x64xbf16>
    %c0_24 = arith.constant 0 : index
    %c0_25 = arith.constant 0 : index
    %63 = vector.load %arg4[%c0_24, %c0_25] : memref<64x576xbf16, #tpu.memory_space<vmem>>, vector<64x576xbf16>
    %cst_26 = arith.constant dense<0.000000e+00> : vector<256x576xf32>
    %64 = tpu.matmul %62, %63, %cst_26 {dimension_numbers = #tpu.dot_dimension_numbers<[1], [0], [0], [1], [0, 0, 1, 1], [], []>} : vector<256x64xbf16>, vector<64x576xbf16>, vector<256x576xf32> -> vector<256x576xf32>
    %cst_27 = arith.constant 0.000000e+00 : f32
    %65 = vector.broadcast %cst_27 : f32 to vector<24x576xf32>
    %c0_28 = arith.constant 0 : index
    %c0_29 = arith.constant 0 : index
    %66 = vector.load %arg9[%c0_28, %c0_29] : memref<304x576xf32, #tpu.memory_space<vmem>>, vector<24x576xf32>
    tpu.vector_store %arg9[%c0_28, %c0_29], %65 {strides = array<i32>} : memref<304x576xf32, #tpu.memory_space<vmem>>, vector<24x576xf32>,
    %cst_30 = arith.constant 0.000000e+00 : f32
    %67 = vector.broadcast %cst_30 : f32 to vector<24x576xf32>
    %c280 = arith.constant 280 : index
    %c0_31 = arith.constant 0 : index
    %68 = vector.load %arg9[%c280, %c0_31] : memref<304x576xf32, #tpu.memory_space<vmem>>, vector<24x576xf32>
    tpu.vector_store %arg9[%c280, %c0_31], %67 {strides = array<i32>} : memref<304x576xf32, #tpu.memory_space<vmem>>, vector<24x576xf32>,
    %c24 = arith.constant 24 : index
    %c0_32 = arith.constant 0 : index
    %69 = vector.load %arg9[%c24, %c0_32] : memref<304x576xf32, #tpu.memory_space<vmem>>, vector<256x576xf32>
    tpu.vector_store %arg9[%c24, %c0_32], %64 {strides = array<i32>} : memref<304x576xf32, #tpu.memory_space<vmem>>, vector<256x576xf32>,
    %c8 = arith.constant 8 : index
    %c64 = arith.constant 64 : index
    %70 = vector.load %arg9[%c8, %c64] : memref<304x576xf32, #tpu.memory_space<vmem>>, vector<256x64xf32>
    %71 = vector.extract_strided_slice %64 {offsets = [0, 256], sizes = [256, 64], strides = [1, 1]} : vector<256x576xf32> to vector<256x64xf32>
    %72 = arith.addf %70, %71 : vector<256x64xf32>
    %c40 = arith.constant 40 : index
    %c448 = arith.constant 448 : index
    %73 = vector.load %arg9[%c40, %c448] : memref<304x576xf32, #tpu.memory_space<vmem>>, vector<256x64xf32>
    %74 = arith.addf %72, %73 : vector<256x64xf32>
    %c7 = arith.constant 7 : index
    %c0_33 = arith.constant 0 : index
    %75 = vector.load %arg9[%c7, %c0_33] : memref<304x576xf32, #tpu.memory_space<vmem>>, vector<256x64xf32>
    %c23 = arith.constant 23 : index
    %c192 = arith.constant 192 : index
    %76 = vector.load %arg9[%c23, %c192] : memref<304x576xf32, #tpu.memory_space<vmem>>, vector<256x64xf32>
    %77 = arith.addf %75, %76 : vector<256x64xf32>
    %c39 = arith.constant 39 : index
    %c384 = arith.constant 384 : index
    %78 = vector.load %arg9[%c39, %c384] : memref<304x576xf32, #tpu.memory_space<vmem>>, vector<256x64xf32>
    %79 = arith.addf %77, %78 : vector<256x64xf32>
    %c9 = arith.constant 9 : index
    %c128 = arith.constant 128 : index
    %80 = vector.load %arg9[%c9, %c128] : memref<304x576xf32, #tpu.memory_space<vmem>>, vector<256x64xf32>
    %c25 = arith.constant 25 : index
    %c320 = arith.constant 320 : index
    %81 = vector.load %arg9[%c25, %c320] : memref<304x576xf32, #tpu.memory_space<vmem>>, vector<256x64xf32>
    %82 = arith.addf %80, %81 : vector<256x64xf32>
    %c41 = arith.constant 41 : index
    %c512 = arith.constant 512 : index
    %83 = vector.load %arg9[%c41, %c512] : memref<304x576xf32, #tpu.memory_space<vmem>>, vector<256x64xf32>
    %84 = arith.addf %82, %83 : vector<256x64xf32>
    %c0_34 = arith.constant 0 : index
    %c0_35 = arith.constant 0 : index
    %85 = vector.load %arg6[%c0_34, %c0_35] : memref<256x1xf32, #tpu.memory_space<vmem>>, vector<256x1xf32>
    %86 = vector.broadcast %85 : vector<256x1xf32> to vector<256x64xf32>
    %87 = arith.mulf %79, %86 : vector<256x64xf32>
    %88 = arith.addf %74, %87 : vector<256x64xf32>
    %c0_36 = arith.constant 0 : index
    %c0_37 = arith.constant 0 : index
    %89 = vector.load %arg7[%c0_36, %c0_37] : memref<256x1xf32, #tpu.memory_space<vmem>>, vector<256x1xf32>
    %90 = vector.broadcast %89 : vector<256x1xf32> to vector<256x64xf32>
    %91 = arith.mulf %84, %90 : vector<256x64xf32>
    %92 = arith.addf %88, %91 : vector<256x64xf32>
    %c0_38 = arith.constant 0 : index
    %c0_39 = arith.constant 0 : index
    %93 = vector.load %arg5[%c0_38, %c0_39] : memref<1x64xf32, #tpu.memory_space<vmem>>, vector<1x64xf32>
    %94 = vector.broadcast %93 : vector<1x64xf32> to vector<256x64xf32>
    %95 = arith.addf %92, %94 : vector<256x64xf32>
    %c0_40 = arith.constant 0 : index
    %c0_41 = arith.constant 0 : index
    %c0_42 = arith.constant 0 : index
    %96 = vector.load %arg8[%c0_40, %c0_41, %c0_42] : memref<1x256x64xf32, #tpu.memory_space<vmem>>, vector<1x256x64xf32>
    %97 = vector.shape_cast %96 : vector<1x256x64xf32> to vector<256x64xf32>
    %98 = vector.shape_cast %95 : vector<256x64xf32> to vector<1x256x64xf32>
    tpu.vector_store %arg8[%c0_40, %c0_41, %c0_42], %98 {strides = array<i32>} : memref<1x256x64xf32, #tpu.memory_space<vmem>>, vector<1x256x64xf32>,
    return
  }
  func.func @transform_0(%arg0: i32) -> (i32, i32, i32) {
    %c0_i32 = arith.constant 0 : i32
    %c0_i32_0 = arith.constant 0 : i32
    %c0_i32_1 = arith.constant 0 : i32
    return %arg0, %c0_i32, %c0_i32_0 : i32, i32, i32
  }
  func.func @transform_1(%arg0: i32) -> (i32, i32) {
    %c0_i32 = arith.constant 0 : i32
    %c0_i32_0 = arith.constant 0 : i32
    %c0_i32_1 = arith.constant 0 : i32
    return %c0_i32, %c0_i32_0 : i32, i32
  }
  func.func @transform_2(%arg0: i32) -> (i32, i32) {
    %c0_i32 = arith.constant 0 : i32
    %c0_i32_0 = arith.constant 0 : i32
    %c0_i32_1 = arith.constant 0 : i32
    return %c0_i32, %c0_i32_0 : i32, i32
  }
  func.func @transform_3(%arg0: i32) -> (i32, i32) {
    %c0_i32 = arith.constant 0 : i32
    %c0_i32_0 = arith.constant 0 : i32
    %c0_i32_1 = arith.constant 0 : i32
    return %c0_i32, %c0_i32_0 : i32, i32
  }
  func.func @transform_4(%arg0: i32) -> (i32, i32) {
    %c0_i32 = arith.constant 0 : i32
    %c0_i32_0 = arith.constant 0 : i32
    %c0_i32_1 = arith.constant 0 : i32
    return %c0_i32, %c0_i32_0 : i32, i32
  }
  func.func @transform_5(%arg0: i32) -> (i32, i32) {
    %c0_i32 = arith.constant 0 : i32
    %c0_i32_0 = arith.constant 0 : i32
    %c0_i32_1 = arith.constant 0 : i32
    return %c0_i32, %c0_i32_0 : i32, i32
  }
  func.func @transform_6(%arg0: i32) -> (i32, i32) {
    %c0_i32 = arith.constant 0 : i32
    %c0_i32_0 = arith.constant 0 : i32
    %c0_i32_1 = arith.constant 0 : i32
    return %c0_i32, %c0_i32_0 : i32, i32
  }
  func.func @transform_7(%arg0: i32) -> (i32, i32, i32) {
    %c0_i32 = arith.constant 0 : i32
    %c0_i32_0 = arith.constant 0 : i32
    %c0_i32_1 = arith.constant 0 : i32
    return %arg0, %c0_i32, %c0_i32_0 : i32, i32, i32
  }
}

</mosaic_0001>

<bundles_post_ra>
// kernel: tpu_custom_call.1
= control target key start
LH: loop header
LB: loop body
LE: loop exit
PB: predicated region body
PF: predicated region fallthrough
CT: control target
= control target key end

     0   :  { %s4745_s24 = smov 0   ;;  %s7433_s0 = inlined_call_operand.vmem [shape: f32[2,256,64], index: 0, kind: input, shape index: {}]   ;;  %s7434_s1 = inlined_call_operand.vmem [shape: f32[1,64], index: 1, kind: input, shape index: {}]   ;;  %s7435_s2 = inlined_call_operand.vmem [shape: f32[1,64], index: 2, kind: input, shape index: {}]   ;;  %s7436_s3 = inlined_call_operand.vmem [shape: bf16[64,576], index: 3, kind: input, shape index: {}]   ;;  %s7437_s4 = inlined_call_operand.vmem [shape: f32[1,64], index: 4, kind: input, shape index: {}]   ;;  %s7438_s5 = inlined_call_operand.vmem [shape: f32[256,1], index: 5, kind: input, shape index: {}]   ;;  %s7439_s6 = inlined_call_operand.vmem [shape: f32[256,1], index: 6, kind: input, shape index: {}]   ;;  %s7440_s7 = inlined_call_operand.vmem [shape: f32[2,256,64], index: 7, kind: output, shape index: {}]  }
   0x1 LB: > { %s4136_s25 = sadd.s32 4294967295, %s4697_s24   ;;  %p4140_p0 = scmp.ge.s32.totalorder %s4697_s24, 1  ;;  %s4697_s24 = sphi %s4745_s24, %s17_s24  }
   0x2   : > { %p237_p1 = scmp.lt.s32.totalorder %s4697_s24, 3 }
   0x4   : > { %p238_p2 = pnand %p4140_p0, %p237_p1 }
   0x6   : > { %241 = sbr.rel (%p238_p2) target bundleno = 1881 (0x759), region = 48 }
   0xd   : > { %v312_v0 = vlaneseq  ;;  %p4753_p3 = scmp.lt.s32.totalorder %s4136_s25, 1  ;;  %v4699_v1 = vmov 0.0|0.0   ;;  %vm7445_vm0 = vcmask 523264   ;;  %vm7446_vm1 = vmmov 0   ;;  %s4704_s12 = smov 64  }
   0xe   : > { %4395 = vmatprep.subr.bf16.mxu0 %v4699_v1  ;;  %4407 = vmatprep.subr.bf16.mxu1 %v4699_v1  ;;  %v4701_v4 = vmov 0.0   ;;  %v4702_v25 = vmov 1.0|1.0  }
   0xf   : > { %v4759_v2 = vshrl.u32 %v312_v0, 7  ;;  %v4761_v3 = vand.u32 127, %v312_v0  ;;  %4311 = vmatprep.mubr.msk.f32.mxu0 %vm7446_vm1, %v4701_v4  ;;  %1901 = vst [vmem:[#allocation2 + $0x8] sm:$0xff] %v4701_v4  ;;  %1900 = vst [vmem:[#allocation2] sm:$0xff] %v4701_v4  ;;  %s7798_s25 = smov (!%p4753_p3, %s4136_s25), 1  ;;  %4322 = vmatprep.mubr.msk.f32.mxu1 %vm7446_vm1, %v4701_v4 }
  0x10   : > { %1906 = vst [vmem:[#allocation2 + $0x30] sm:$0xff] %v4701_v4  ;;  %1911 = vst [vmem:[#allocation2 + $0x58] sm:$0xff] %v4701_v4  ;;  %s4245_s27 = sshll.u32 %s7798_s25, 8 }
  0x11   : > { %1917 = vst [vmem:[#allocation2 + $0x588] sm:$0xff] %v4701_v4  ;;  %1919 = vst.msk [vmem:[#allocation2 + $0x598] sm:$0xff] %vm7445_vm0, %v4701_v4  ;;  %v4784_v5 = vadd.s32 8, %v4759_v2  ;;  %v4787_v6 = vmul.u32 2, %v4761_v3  ;;  %v332_v7 = vadd.s32 1, %v4761_v3  ;;  %v4792_v8 = vadd.s32 16, %v4759_v2  ;;  %s4802_s30 = scalar_lea.vmem %s7433_s0, %s4245_s27  ;;  %s7362_s14 = scalar_lea.vmem %s7440_s7, %s4245_s27 }
  0x12   : > { %1923 = vst [vmem:[#allocation2 + $0x5b8] sm:$0xff] %v4701_v4  ;;  %1924 = vst.msk [vmem:[#allocation2 + $0x5c0] sm:$0xff] %vm7445_vm0, %v4701_v4  ;;  %v4795_v9 = vadd.s32 24, %v4759_v2  ;;  %v4809_v11 = vld [vmem:[%s4802_s30] sm:$0xff]  ;;  %v4812_v12 = vld [vmem:[%s4802_s30 + $0x8] sm:$0xff]  ;;  %v317_v14 = vadd.s32 32, %v4759_v2 }
  0x13   : > { %1929 = vst.msk [vmem:[#allocation2 + $0x5e8] sm:$0xff] %vm7445_vm0, %v4701_v4  ;;  %vm324_vm2 = vcmp.ge.s32.totalorder %v4759_v2, %v4787_v6  ;;  %v333_v10 = vmul.u32 2, %v332_v7  ;;  %vm325_vm3 = vcmp.ge.s32.totalorder %v4784_v5, %v4787_v6  ;;  %v4815_v13 = vld [vmem:[%s4802_s30 + $0x10] sm:$0xff]  ;;  %vm326_vm7 = vcmp.ge.s32.totalorder %v4792_v8, %v4787_v6  ;;  %v4831_v17 = vld [vmem:[%s4802_s30 + $0x18] sm:$0xff]  ;;  %v4850_v23 = vld [vmem:[%s4802_s30 + $0x20] sm:$0xff] }
  0x14   : > { %vm327_vm8 = vcmp.ge.s32.totalorder %v4795_v9, %v4787_v6  ;;  %v318_v16 = vadd.s32 40, %v4759_v2  ;;  %v387_v19 = vsel %vm7445_vm0, %v4809_v11, 0.0  ;;  %v388_v20 = vsel %vm7445_vm0, %v4812_v12, 0.0  ;;  %v4881_v30 = vld [vmem:[%s4802_s30 + $0x28] sm:$0xff]  ;;  %v4895_v34 = vld [vmem:[%s4802_s30 + $0x30] sm:$0xff]  ;;  %v4916_v38 = vld [vmem:[%s4802_s30 + $0x38] sm:$0xff] }
  0x15   : > { %vm334_vm4 = vcmp.lt.s32.totalorder %v4759_v2, %v333_v10  ;;  %vm335_vm5 = vcmp.lt.s32.totalorder %v4784_v5, %v333_v10  ;;  %vm336_vm9 = vcmp.lt.s32.totalorder %v4792_v8, %v333_v10  ;;  %vm337_vm11 = vcmp.lt.s32.totalorder %v4795_v9, %v333_v10  ;;  %v4919_v39 = vld [vmem:[%s4802_s30 + $0x40] sm:$0xff]  ;;  %v4941_v48 = vld [vmem:[%s4802_s30 + $0x48] sm:$0xff]  ;;  %v4959_v55 = vld [vmem:[%s4802_s30 + $0x50] sm:$0xff] }
  0x16   : > { %vm4820_vm6 = vmand %vm324_vm2, %vm334_vm4  ;;  %v390_v21 = vsel %vm7445_vm0, %v4815_v13, 0.0  ;;  %v319_v22 = vadd.s32 48, %v4759_v2  ;;  %v389_v24 = vadd.f32 %v388_v20, %v387_v19  ;;  %vm328_vm14 = vcmp.ge.s32.totalorder %v317_v14, %v4787_v6  ;;  %v4978_v60 = vld [vmem:[%s4802_s30 + $0x58] sm:$0xff]  ;;  %v4987_v63 = vld [vmem:[%s4802_s30 + $0x60] sm:$0xff] }
  0x17   : > { %vm4833_vm10 = vmand %vm325_vm3, %vm335_vm5  ;;  %vm338_vm15 = vcmp.lt.s32.totalorder %v317_v14, %v333_v10  ;;  %v320_v27 = vadd.s32 56, %v4759_v2  ;;  %v392_v28 = vsel %vm7445_vm0, %v4831_v17, 0.0  ;;  %vm329_vm3 = vcmp.ge.s32.totalorder %v318_v16, %v4787_v6  ;;  %v4999_v7 = vld [vmem:[%s4802_s30 + $0x68] sm:$0xff] }
  0x18   : > { %vm7441_vm12 = vmpackc.low %vm4833_vm10, %vm4820_vm6  ;;  %vm339_vm4 = vcmp.lt.s32.totalorder %v318_v16, %v333_v10  ;;  %v391_v31 = vadd.f32 %v390_v21, %v389_v24  ;;  %v394_v32 = vsel %vm7445_vm0, %v4850_v23, 0.0  ;;  %v396_v37 = vsel %vm7445_vm0, %v4881_v30, 0.0  ;;  %v5005_v16 = vld [vmem:[%s4802_s30 + $0x70] sm:$0xff]  ;;  %v5010_v21 = vld [vmem:[%s4802_s30 + $0x78] sm:$0xff] }
  0x19   : > { %4397 = vmatpush3.bf16.msk.msra.mxu0 %vm7441_vm12, %v4702_v25  ;;  %vm4861_vm13 = vmand %vm326_vm7, %vm336_vm9  ;;  %vm340_vm9 = vcmp.lt.s32.totalorder %v319_v22, %v333_v10  ;;  %v398_v42 = vsel %vm7445_vm0, %v4895_v34, 0.0  ;;  %v358_v43 = vmul.u32 2, %v4759_v2  ;;  %v359_v46 = vmul.u32 2, %v4784_v5  ;;  %v5040_v52 = vld [vmem:[%s4802_s30 + $0xa8] sm:$0xff] }
  0x1a   : > { %4398 = vmatprep.subr.bf16.mxu0 %v4699_v1  ;;  %vm4875_vm2 = vmand %vm327_vm8, %vm337_vm11  ;;  %vm330_vm8 = vcmp.ge.s32.totalorder %v319_v22, %v4787_v6  ;;  %v393_v35 = vadd.f32 %v392_v28, %v391_v31  ;;  %v366_v47 = vadd.s32 1, %v4759_v2  ;;  %v400_v49 = vsel %vm7445_vm0, %v4916_v38, 0.0 }
  0x1b   : > { %vm7443_vm5 = vmpackc.low %vm4875_vm2, %vm4861_vm13  ;;  %v402_v50 = vsel %vm7445_vm0, %v4919_v39, 0.0  ;;  %v367_v53 = vadd.s32 1, %v4784_v5  ;;  %v404_v59 = vsel %vm7445_vm0, %v4941_v48, 0.0  ;;  %v406_v62 = vsel %vm7445_vm0, %v4959_v55, 0.0 }
  0x1c   : > { %vm4889_vm7 = vmand %vm328_vm14, %vm338_vm15  ;;  %vm331_vm14 = vcmp.ge.s32.totalorder %v320_v27, %v4787_v6  ;;  %vm341_vm15 = vcmp.lt.s32.totalorder %v320_v27, %v333_v10  ;;  %v395_v40 = vadd.f32 %v394_v32, %v393_v35  ;;  %v370_v54 = vmul.u32 2, %v366_v47  ;;  %v5015_v27 = vld [vmem:[%s4802_s30 + $0x80] sm:$0xff]  ;;  %v5020_v32 = vld [vmem:[%s4802_s30 + $0x88] sm:$0xff] }
  0x1d   : > { %4400 = vmatpush3.bf16.msk.msra.mxu0 %vm7443_vm5, %v4702_v25  ;;  %vm4903_vm11 = vmand %vm329_vm3, %vm339_vm4  ;;  %v371_v58 = vmul.u32 2, %v367_v53  ;;  %v408_v6 = vsel %vm7445_vm0, %v4978_v60, 0.0  ;;  %v410_v14 = vsel %vm7445_vm0, %v4987_v63, 0.0  ;;  %v412_v20 = vsel %vm7445_vm0, %v4999_v7, 0.0 }
  0x1e   : > { %4401 = vmatprep.subr.bf16.mxu0 %v4699_v1  ;;  %vm7442_vm12 = vmpackc.low %vm4903_vm11, %vm4889_vm7  ;;  %v397_v45 = vadd.f32 %v396_v37, %v395_v40  ;;  %v414_v24 = vsel %vm7445_vm0, %v5005_v16, 0.0  ;;  %v416_v31 = vsel %vm7445_vm0, %v5010_v21, 0.0  ;;  %v418_v37 = vsel %vm7445_vm0, %v5015_v27, 0.0  ;;  %v5025_v40 = vld [vmem:[%s4802_s30 + $0x90] sm:$0xff] }
  0x1f   : > { %vm4921_vm3 = vmand %vm330_vm8, %vm340_vm9  ;;  %vm4953_vm9 = vcmp.ge.s32.totalorder %v4761_v3, %v358_v43  ;;  %vm375_vm5 = vcmp.lt.s32.totalorder %v4761_v3, %v371_v58  ;;  %v420_v43 = vsel %vm7445_vm0, %v5020_v32, 0.0  ;;  %v422_v47 = vsel %vm7445_vm0, %v5025_v40, 0.0 }
  0x20   : > { %vm4928_vm4 = vmand %vm331_vm14, %vm341_vm15  ;;  %v399_v51 = vadd.f32 %v398_v42, %v397_v45  ;;  %vm4962_vm14 = vcmp.ge.s32.totalorder %v4761_v3, %v359_v46  ;;  %vm374_vm15 = vcmp.lt.s32.totalorder %v4761_v3, %v370_v54  ;;  %v5030_v45 = vld [vmem:[%s4802_s30 + $0x98] sm:$0xff]  ;;  %v428_v58 = vsel %vm7445_vm0, %v5040_v52, 0.0 }
  0x21   : > { %4403 = vmatpush3.bf16.msk.msra.mxu0 %vm7442_vm12, %v4702_v25  ;;  %vm7444_vm8 = vmpackc.low %vm4928_vm4, %vm4921_vm3  ;;  %v606_v15 = vsub.s32 0, %v4759_v2 }
  0x22   : > { %4404 = vmatprep.subr.bf16.mxu0 %v4699_v1  ;;  %v401_v56 = vadd.f32 %v400_v49, %v399_v51  ;;  %vm378_vm12 = vmand %vm4953_vm9, %vm374_vm15  ;;  %v5035_v49 = vld [vmem:[%s4802_s30 + $0xa0] sm:$0xff]  ;;  %v424_v51 = vsel %vm7445_vm0, %v5030_v45, 0.0 }
  0x23   : > { %v426_v54 = vsel %vm7445_vm0, %v5035_v49, 0.0 }
  0x24   : > { %v403_v61 = vadd.f32 %v402_v50, %v401_v56  ;;  %v5045_v56 = vld [vmem:[%s4802_s30 + $0xb0] sm:$0xff] }
  0x25   : > { %4406 = vmatpush3.bf16.msk.msra.mxu0 %vm7444_vm8, %v4702_v25  ;;  %vm379_vm8 = vmand %vm4962_vm14, %vm375_vm5 }
  0x26   : > { %4425 = vmatprep.subr.bf16.mxu0 %v4699_v1  ;;  %v405_v0 = vadd.f32 %v404_v59, %v403_v61  ;;  %vm4989_vm9 = vmpackc.low %vm379_vm8, %vm378_vm12  ;;  %v5050_v59 = vld [vmem:[%s4802_s30 + $0xb8] sm:$0xff] }
  0x27   : > { %4409 = vmatpush3.bf16.msk.msra.mxu1 %vm4989_vm9, %v4702_v25 }
  0x28   : > { %v407_v10 = vadd.f32 %v406_v62, %v405_v0  ;;  %4410 = vmatprep.subr.bf16.mxu1 %v4699_v1  ;;  %v430_v62 = vsel %vm7445_vm0, %v5045_v56, 0.0  ;;  %v5055_v0 = vld [vmem:[%s4802_s30 + $0xc0] sm:$0xff] }
  0x2a   : > { %v409_v19 = vadd.f32 %v408_v6, %v407_v10  ;;  %v432_v10 = vsel %vm7445_vm0, %v5050_v59, 0.0 }
  0x2c   : > { %v411_v22 = vadd.f32 %v410_v14, %v409_v19  ;;  %v5060_v14 = vld [vmem:[%s4802_s30 + $0xc8] sm:$0xff] }
  0x2e   : > { %v413_v28 = vadd.f32 %v412_v20, %v411_v22  ;;  %v434_v20 = vsel %vm7445_vm0, %v5055_v0, 0.0  ;;  %v5065_v22 = vld [vmem:[%s4802_s30 + $0xd0] sm:$0xff] }
  0x30   : > { %v415_v35 = vadd.f32 %v414_v24, %v413_v28  ;;  %v436_v28 = vsel %vm7445_vm0, %v5060_v14, 0.0 }
  0x32   : > { %v417_v42 = vadd.f32 %v416_v31, %v415_v35  ;;  %v5070_v31 = vld [vmem:[%s4802_s30 + $0xd8] sm:$0xff] }
  0x34   : > { %v419_v46 = vadd.f32 %v418_v37, %v417_v42  ;;  %v438_v37 = vsel %vm7445_vm0, %v5065_v22, 0.0  ;;  %v5075_v42 = vld [vmem:[%s4802_s30 + $0xe0] sm:$0xff] }
  0x36   : > { %v421_v50 = vadd.f32 %v420_v43, %v419_v46  ;;  %v440_v46 = vsel %vm7445_vm0, %v5070_v31, 0.0 }
  0x38   : > { %v423_v53 = vadd.f32 %v422_v47, %v421_v50  ;;  %v5080_v47 = vld [vmem:[%s4802_s30 + $0xe8] sm:$0xff] }
  0x3a   : > { %v425_v57 = vadd.f32 %v424_v51, %v423_v53  ;;  %v442_v51 = vsel %vm7445_vm0, %v5075_v42, 0.0  ;;  %v5085_v53 = vld [vmem:[%s4802_s30 + $0xf0] sm:$0xff] }
  0x3c   : > { %v427_v61 = vadd.f32 %v426_v54, %v425_v57  ;;  %v444_v57 = vsel %vm7445_vm0, %v5080_v47, 0.0 }
  0x3e   : > { %v429_v6 = vadd.f32 %v428_v58, %v427_v61  ;;  %v5090_v58 = vld [vmem:[%s4802_s30 + $0xf8] sm:$0xff] }
  0x40   : > { %v431_v19 = vadd.f32 %v430_v62, %v429_v6  ;;  %v446_v62 = vsel %vm7445_vm0, %v5085_v53, 0.0 }
  0x42   : > { %v433_v24 = vadd.f32 %v432_v10, %v431_v19  ;;  %v448_v10 = vsel %vm7445_vm0, %v5090_v58, 0.0 }
  0x44   : > { %v435_v35 = vadd.f32 %v434_v20, %v433_v24 }
  0x46   : > { %v437_v43 = vadd.f32 %v436_v28, %v435_v35 }
  0x48   : > { %v439_v50 = vadd.f32 %v438_v37, %v437_v43 }
  0x4a   : > { %v441_v54 = vadd.f32 %v440_v46, %v439_v50  ;;  %v368_v50 = vadd.s32 1, %v4792_v8 }
  0x4c   : > { %v443_v61 = vadd.f32 %v442_v51, %v441_v54  ;;  %v369_v51 = vadd.s32 1, %v4795_v9  ;;  %v360_v54 = vmul.u32 2, %v4792_v8 }
  0x4e   : > { %v445_v6 = vadd.f32 %v444_v57, %v443_v61  ;;  %v361_v57 = vmul.u32 2, %v4795_v9  ;;  %v372_v61 = vmul.u32 2, %v368_v50  ;;  %vm364_vm12 = vcmp.ge.s32.totalorder %v4761_v3, %v360_v54 }
  0x50   : > { %v447_v19 = vadd.f32 %v446_v62, %v445_v6  ;;  %v373_v62 = vmul.u32 2, %v369_v51  ;;  %vm365_vm5 = vcmp.ge.s32.totalorder %v4761_v3, %v361_v57  ;;  %vm376_vm8 = vcmp.lt.s32.totalorder %v4761_v3, %v372_v61 }
  0x51   : > { %vm380_vm15 = vmand %vm364_vm12, %vm376_vm8 }
  0x52   : > { %v449_v20 = vadd.f32 %v448_v10, %v447_v19  ;;  %vm377_vm14 = vcmp.lt.s32.totalorder %v4761_v3, %v373_v62  ;;  %vm7499_vm12 = vmpackc.low %vm4833_vm10, %vm4820_vm6 }
  0x53   : > { %vm7502_vm6 = vmpackc.low %vm4903_vm11, %vm4889_vm7 }
  0x54   : > { %v450_v24 = vrot.slane %v449_v20, 4  ;;  %vm7503_vm10 = vmpackc.low %vm4928_vm4, %vm4921_vm3 }
  0x56   : > { %v451_v28 = vadd.f32 %v450_v24, %v449_v20 }
  0x58   : > { %v452_v35 = vrot.slane %v451_v28, 2 }
  0x5a   : > { %v453_v37 = vadd.f32 %v452_v35, %v451_v28 }
  0x5c   : > { %v454_v43 = vrot.slane %v453_v37, 1 }
  0x5e   : > { %v455_v46 = vadd.f32 %v454_v43, %v453_v37 }
  0x60   : > { %4312 = vmatmul.mubr.msk.f32.vlgmr.msra.gmra.mrb[0].mxu0 %vm7445_vm0, %v455_v46 }
  0x61   : > { %4427 = vmatpush3.bf16.msk.msra.mxu0 %vm4989_vm9, %v4702_v25  ;;  %4352 = vmatprep.mubr.msk.f32.mxu0 %vm7446_vm1, %v4701_v4  ;;  %vm381_vm9 = vmand %vm365_vm5, %vm377_vm14  ;;  %vm530_vm1 = vcmask 261120   ;;  %vm7500_vm5 = vmmov 0  }
  0x62   : > { %4428 = vmatprep.subr.bf16.mxu0 %v4699_v1  ;;  %vm4411_vm0 = vmpackc.low %vm381_vm9, %vm380_vm15 }
  0x63   : > { %4412 = vmatpush3.bf16.msk.msra.mxu1 %vm4411_vm0, %v4702_v25 }
  0x64   : > { %4413 = vmatprep.subr.bf16.mxu1 %v4699_v1 }
  0x65   : > { %4430 = vmatpush3.bf16.msk.msra.mxu0 %vm4411_vm0, %v4702_v25  ;;  %vm7501_vm0 = vmpackc.low %vm4875_vm2, %vm4861_vm13  ;;  %vm7504_vm13 = vcmask 523264  }
  0x66   : > { %vm7505_vm2 = vmmov %vm7504_vm13 }
  0x67   : > { %vm7506_vm7 = vmmov %vm7505_vm2 }
  0x68   : > { %vm7507_vm11 = vmmov %vm7505_vm2 }
  0x69   : > { %vm7508_vm3 = vmmov %vm7505_vm2 }
  0x6a   : > { %vm7509_vm4 = vmmov %vm7505_vm2 }
  0x6b   : > { %vm7510_vm8 = vmmov %vm7505_vm2 }
  0x6c   : > { %vm7511_vm14 = vmmov %vm7505_vm2 }
  0x6d   : > { %vm7512_vm15 = vmmov %vm7505_vm2 }
  0x6e   : > { %vm7513_vm9 = vmmov %vm7505_vm2 }
 0x133   : > { %v525_v8 = vpop.f32.mrb[0].mxu0 }
 0x134   : > { %v529_v9 = vmul.f32 0.001953125, %v525_v8  ;;  %v4313_v5 = vpop.f32.mrb[1].mxu0 }
 0x136   : > { %4323 = vmatmul.mubr.msk.f32.vlgmr.msra.gmra.mrb[0].mxu1 %vm530_vm1, %v529_v9 }
 0x137   : > { %4415 = vmatpush3.bf16.msk.msra.mxu1 %vm7499_vm12, %v4702_v25  ;;  %4341 = vmatprep.mubr.msk.f32.mxu1 %vm7500_vm5, %v4701_v4  ;;  %vm7514_vm12 = vmmov %vm7505_vm2 }
 0x138   : > { %4416 = vmatprep.subr.bf16.mxu1 %v4699_v1  ;;  %vm7515_vm5 = vmmov %vm7505_vm2 }
 0x13b   : > { %4418 = vmatpush3.bf16.msk.msra.mxu1 %vm7501_vm0, %v4702_v25  ;;  %vm7516_vm0 = vmmov %vm7505_vm2 }
 0x13c   : > { %4419 = vmatprep.subr.bf16.mxu1 %v4699_v1 }
 0x13f   : > { %4421 = vmatpush3.bf16.msk.msra.mxu1 %vm7502_vm6, %v4702_v25  ;;  %vm7517_vm6 = vmmov %vm7516_vm0 }
 0x140   : > { %4422 = vmatprep.subr.bf16.mxu1 %v4699_v1 }
 0x143   : > { %4424 = vmatpush3.bf16.msk.msra.mxu1 %vm7503_vm10, %v4702_v25  ;;  %vm7518_vm10 = vmmov %vm7516_vm0 }
 0x209   : > { %v600_v3 = vpop.f32.mrb[0].mxu1 }
 0x20a   : > { %v4324_v4 = vpop.f32.mrb[1].mxu1  ;;  %v5147_v18 = vrot.slane %v600_v3, %v606_v15 }
 0x20c   : > { %v5151_v26 = vsub.f32 %v4809_v11, %v5147_v18  ;;  %v5155_v1 = vsub.f32 %v4812_v12, %v5147_v18  ;;  %v5159_v29 = vsub.f32 %v4815_v13, %v5147_v18  ;;  %v5163_v25 = vsub.f32 %v4831_v17, %v5147_v18 }
 0x20d   : > { %v5171_v11 = vsub.f32 %v4850_v23, %v5147_v18  ;;  %v5177_v13 = vsub.f32 %v4881_v30, %v5147_v18  ;;  %v5185_v10 = vsub.f32 %v4895_v34, %v5147_v18  ;;  %v5192_v30 = vsub.f32 %v4916_v38, %v5147_v18 }
 0x20e   : > { %v640_v33 = vmul.f32 %v5151_v26, %v5151_v26  ;;  %v641_v36 = vmul.f32 %v5155_v1, %v5155_v1  ;;  %v642_v12 = vmul.f32 %v5159_v29, %v5159_v29  ;;  %v643_v17 = vmul.f32 %v5163_v25, %v5163_v25 }
 0x20f   : > { %v644_v23 = vmul.f32 %v5171_v11, %v5171_v11  ;;  %v645_v24 = vmul.f32 %v5177_v13, %v5177_v13  ;;  %v5199_v34 = vsub.f32 %v4919_v39, %v5147_v18  ;;  %v646_v37 = vmul.f32 %v5185_v10, %v5185_v10 }
 0x210   : > { %v672_v41 = vsel %vm7504_vm13, %v640_v33, 0.0  ;;  %v673_v44 = vsel %vm7505_vm2, %v641_v36, 0.0  ;;  %v675_v19 = vsel %vm7506_vm7, %v642_v12, 0.0  ;;  %v677_v28 = vsel %vm7507_vm11, %v643_v17, 0.0  ;;  %vm7519_vm13 = vmmov %vm7516_vm0 }
 0x211   : > { %v674_v6 = vadd.f32 %v673_v44, %v672_v41  ;;  %v679_v43 = vsel %vm7508_vm3, %v644_v23, 0.0  ;;  %v5206_v38 = vsub.f32 %v4941_v48, %v5147_v18  ;;  %v647_v50 = vmul.f32 %v5192_v30, %v5192_v30  ;;  %vm7520_vm2 = vmmov %vm7516_vm0 }
 0x212   : > { %v681_v51 = vsel %vm7509_vm4, %v645_v24, 0.0  ;;  %v5213_v39 = vsub.f32 %v4959_v55, %v5147_v18  ;;  %v648_v57 = vmul.f32 %v5199_v34, %v5199_v34  ;;  %v683_v61 = vsel %vm7510_vm8, %v646_v37, 0.0  ;;  %vm7521_vm7 = vmmov %vm7516_vm0 }
 0x213   : > { %v676_v20 = vadd.f32 %v675_v19, %v674_v6  ;;  %v5220_v48 = vsub.f32 %v4978_v60, %v5147_v18  ;;  %v649_v8 = vmul.f32 %v5206_v38, %v5206_v38  ;;  %v685_v9 = vsel %vm7511_vm14, %v647_v50, 0.0  ;;  %vm7522_vm11 = vmmov %vm7516_vm0 }
 0x214   : > { %v5227_v55 = vsub.f32 %v4987_v63, %v5147_v18  ;;  %v650_v3 = vmul.f32 %v5213_v39, %v5213_v39  ;;  %v687_v4 = vsel %vm7512_vm15, %v648_v57, 0.0  ;;  %v5234_v60 = vsub.f32 %v4999_v7, %v5147_v18  ;;  %vm7523_vm3 = vmmov %vm7516_vm0 }
 0x215   : > { %v678_v35 = vadd.f32 %v677_v28, %v676_v20  ;;  %v651_v36 = vmul.f32 %v5220_v48, %v5220_v48  ;;  %v689_v12 = vsel %vm7513_vm9, %v649_v8, 0.0  ;;  %v5241_v63 = vsub.f32 %v5005_v16, %v5147_v18  ;;  %vm7524_vm4 = vmmov %vm7516_vm0 }
 0x216   : > { %v652_v41 = vmul.f32 %v5227_v55, %v5227_v55  ;;  %v691_v44 = vsel %vm7514_vm12, %v650_v3, 0.0  ;;  %v5248_v7 = vsub.f32 %v5010_v21, %v5147_v18  ;;  %v653_v23 = vmul.f32 %v5234_v60, %v5234_v60  ;;  %vm7525_vm8 = vmmov %vm7516_vm0 }
 0x217   : > { %v680_v46 = vadd.f32 %v679_v43, %v678_v35  ;;  %v693_v19 = vsel %vm7515_vm5, %v651_v36, 0.0  ;;  %v5255_v16 = vsub.f32 %v5015_v27, %v5147_v18  ;;  %v654_v24 = vmul.f32 %v5241_v63, %v5241_v63  ;;  %vm7526_vm14 = vmmov %vm7516_vm0 }
 0x218   : > { %v695_v28 = vsel %vm7516_vm0, %v652_v41, 0.0  ;;  %v5262_v21 = vsub.f32 %v5020_v32, %v5147_v18  ;;  %v655_v37 = vmul.f32 %v5248_v7, %v5248_v7  ;;  %v697_v43 = vsel %vm7517_vm6, %v653_v23, 0.0  ;;  %vm7527_vm15 = vmmov %vm7516_vm0 }
 0x219   : > { %v682_v54 = vadd.f32 %v681_v51, %v680_v46  ;;  %v5269_v27 = vsub.f32 %v5025_v40, %v5147_v18  ;;  %v656_v50 = vmul.f32 %v5255_v16, %v5255_v16  ;;  %v699_v51 = vsel %vm7518_vm10, %v654_v24, 0.0  ;;  %vm7528_vm9 = vmmov %vm7516_vm0 }
 0x21a   : > { %v5276_v32 = vsub.f32 %v5030_v45, %v5147_v18  ;;  %v657_v57 = vmul.f32 %v5262_v21, %v5262_v21  ;;  %v5283_v40 = vsub.f32 %v5035_v49, %v5147_v18  ;;  %v5290_v45 = vsub.f32 %v5040_v52, %v5147_v18  ;;  %vm7529_vm12 = vmmov %vm7516_vm0 }
 0x21b   : > { %v684_v62 = vadd.f32 %v683_v61, %v682_v54  ;;  %v701_v61 = vsel %vm7519_vm13, %v655_v37, 0.0  ;;  %v658_v8 = vmul.f32 %v5269_v27, %v5269_v27  ;;  %v5297_v49 = vsub.f32 %v5045_v56, %v5147_v18  ;;  %vm7530_vm5 = vmmov %vm7516_vm0 }
 0x21c   : > { %v659_v3 = vmul.f32 %v5276_v32, %v5276_v32  ;;  %v660_v36 = vmul.f32 %v5283_v40, %v5283_v40  ;;  %v5304_v52 = vsub.f32 %v5050_v59, %v5147_v18  ;;  %v661_v41 = vmul.f32 %v5290_v45, %v5290_v45  ;;  %vm7531_vm6 = vmmov %vm7516_vm0 }
 0x21d   : > { %v686_v5 = vadd.f32 %v685_v9, %v684_v62  ;;  %v703_v9 = vsel %vm7520_vm2, %v656_v50, 0.0  ;;  %v5311_v56 = vsub.f32 %v5055_v0, %v5147_v18  ;;  %v662_v23 = vmul.f32 %v5297_v49, %v5297_v49  ;;  %vm7532_vm10 = vmmov %vm7516_vm0 }
 0x21e   : > { %v5318_v59 = vsub.f32 %v5060_v14, %v5147_v18  ;;  %v663_v24 = vmul.f32 %v5304_v52, %v5304_v52  ;;  %v5325_v0 = vsub.f32 %v5065_v22, %v5147_v18  ;;  %v5332_v14 = vsub.f32 %v5070_v31, %v5147_v18  ;;  %vm7533_vm13 = vmmov %vm7516_vm0 }
 0x21f   : > { %v688_v33 = vadd.f32 %v687_v4, %v686_v5  ;;  %v705_v4 = vsel %vm7521_vm7, %v657_v57, 0.0  ;;  %v664_v37 = vmul.f32 %v5311_v56, %v5311_v56  ;;  %v5339_v22 = vsub.f32 %v5075_v42, %v5147_v18  ;;  %vm7534_vm2 = vmmov %vm7516_vm0 }
 0x220   : > { %v665_v50 = vmul.f32 %v5318_v59, %v5318_v59  ;;  %v666_v57 = vmul.f32 %v5325_v0, %v5325_v0  ;;  %v5346_v31 = vsub.f32 %v5080_v47, %v5147_v18  ;;  %v5353_v42 = vsub.f32 %v5085_v53, %v5147_v18  ;;  %vm7535_vm7 = vmmov %vm7516_vm0 }
 0x221   : > { %v690_v17 = vadd.f32 %v689_v12, %v688_v33  ;;  %v707_v12 = vsel %vm7522_vm11, %v658_v8, 0.0  ;;  %v667_v8 = vmul.f32 %v5332_v14, %v5332_v14  ;;  %v5360_v47 = vsub.f32 %v5090_v58, %v5147_v18  ;;  %vm7537_vm11 = vmmov %vm7516_vm0 }
 0x222   : > { %v670_v53 = vmul.f32 %v5353_v42, %v5353_v42 }
 0x223   : > { %v692_v6 = vadd.f32 %v691_v44, %v690_v17  ;;  %v709_v44 = vsel %vm7523_vm3, %v659_v3, 0.0  ;;  %v668_v3 = vmul.f32 %v5339_v22, %v5339_v22  ;;  %vm7538_vm3 = vmmov %vm7516_vm0 }
 0x224   : > { %v731_v58 = vsel %vm7533_vm13, %v670_v53, 0.0  ;;  %v2852_v53 = vld [vmem:[%s7438_s5 + $0x20] sm:$0xff]  ;;  %vm7548_vm13 = vmmov %vm7516_vm0 }
 0x225   : > { %v694_v20 = vadd.f32 %v693_v19, %v692_v6  ;;  %v711_v19 = vsel %vm7524_vm4, %v660_v36, 0.0  ;;  %v669_v36 = vmul.f32 %v5346_v31, %v5346_v31  ;;  %vm7539_vm4 = vmmov %vm7516_vm0 }
 0x227   : > { %v696_v35 = vadd.f32 %v695_v28, %v694_v20  ;;  %v713_v28 = vsel %vm7525_vm8, %v661_v41, 0.0  ;;  %v727_v41 = vsel %vm7531_vm6, %v668_v3, 0.0  ;;  %vm7540_vm8 = vmmov %vm7516_vm0 }
 0x228   : > { %vm7546_vm6 = vmmov %vm7516_vm0 }
 0x229   : > { %v698_v46 = vadd.f32 %v697_v43, %v696_v35  ;;  %v715_v43 = vsel %vm7526_vm14, %v662_v23, 0.0  ;;  %v729_v23 = vsel %vm7532_vm10, %v669_v36, 0.0  ;;  %vm7541_vm14 = vmmov %vm7516_vm0 }
 0x22a   : > { %vm7547_vm10 = vmmov %vm7516_vm0 }
 0x22b   : > { %v700_v54 = vadd.f32 %v699_v51, %v698_v46  ;;  %v717_v51 = vsel %vm7527_vm15, %v663_v24, 0.0  ;;  %vm7542_vm15 = vmmov %vm7516_vm0 }
 0x22d   : > { %v702_v62 = vadd.f32 %v701_v61, %v700_v54  ;;  %v719_v61 = vsel %vm7528_vm9, %v664_v37, 0.0  ;;  %vm7543_vm9 = vmmov %vm7516_vm0 }
 0x22f   : > { %v704_v5 = vadd.f32 %v703_v9, %v702_v62  ;;  %v721_v9 = vsel %vm7529_vm12, %v665_v50, 0.0  ;;  %vm7544_vm12 = vmmov %vm7516_vm0 }
 0x231   : > { %v706_v33 = vadd.f32 %v705_v4, %v704_v5  ;;  %v723_v4 = vsel %vm7530_vm5, %v666_v57, 0.0  ;;  %v4703_v57 = vmov 0   ;;  %vm7545_vm5 = vmmov %vm7516_vm0 }
 0x232   : > { %4453 = vset.pattern.permute.xlu1 %v4703_v57  ;;  %4459 = vset.pattern.permute.xlu0 %v4703_v57 }
 0x233   : > { %v708_v17 = vadd.f32 %v707_v12, %v706_v33  ;;  %v725_v12 = vsel %vm7516_vm0, %v667_v8, 0.0  ;;  %v2850_v8 = vld [vmem:[%s7438_s5 + $0x10] sm:$0xff] }
 0x235   : > { %v710_v6 = vadd.f32 %v709_v44, %v708_v17 }
 0x237   : > { %v712_v20 = vadd.f32 %v711_v19, %v710_v6  ;;  %v671_v6 = vmul.f32 %v5360_v47, %v5360_v47 }
 0x239   : > { %v714_v35 = vadd.f32 %v713_v28, %v712_v20  ;;  %v733_v20 = vsel %vm7534_vm2, %v671_v6, 0.0  ;;  %v4460_v6 = vld [vmem:[%s7436_s3] ss:$20 sps:$4 sm:$0xff]   ;;  %vm7549_vm2 = vmmov %vm7516_vm0 }
 0x23b   : > { %v716_v46 = vadd.f32 %v715_v43, %v714_v35 }
 0x23d   : > { %v718_v54 = vadd.f32 %v717_v51, %v716_v46  ;;  %v2848_v51 = vld [vmem:[%s7438_s5] sm:$0xff] }
 0x23e   : > { %2882 = vperm.xlu1 %4453, %v2848_v51   ;;  %v4469_v51 = vld [vmem:[%s7436_s3 + $0x78] ss:$20 sps:$4 sm:$0xff]  }
 0x23f   : > { %v720_v62 = vadd.f32 %v719_v61, %v718_v54  ;;  %v2348_v54 = vld [vmem:[#allocation2 + $0x58] sm:$0x80]  ;;  %v2616_v61 = vld [vmem:[#allocation2 + $0x588] sm:$0x1] }
 0x241   : > { %v722_v5 = vadd.f32 %v721_v9, %v720_v62  ;;  %v4454_v62 = vpack.i.bf16 %v2616_v61, %v2348_v54  ;;  %v2849_v9 = vld [vmem:[%s7438_s5 + $0x8] sm:$0xff]  ;;  %v2863_v54 = vld [vmem:[%s7438_s5 + $0x78] sm:$0xff]  ;;  %v2862_v61 = vld [vmem:[%s7438_s5 + $0x70] sm:$0xff] }
 0x242   : > { %2890 = vperm.xlu1 %4453, %v2850_v8   ;;  %v2864_v8 = vld [vmem:[%s7438_s5 + $0x80] sm:$0xff] }
 0x243   : > { %v724_v33 = vadd.f32 %v723_v4, %v722_v5  ;;  %4455 = vrot.lane.b32.xlu0 %v4454_v62, %s4704_s12  ;;  %v2851_v5 = vld [vmem:[%s7438_s5 + $0x18] sm:$0xff]  ;;  %v2865_v62 = vld [vmem:[%s7438_s5 + $0x88] sm:$0xff] }
 0x245   : > { %v726_v17 = vadd.f32 %v725_v12, %v724_v33 }
 0x246   : > { %2894 = vperm.xlu1 %4453, %v2851_v5   ;;  %v2866_v5 = vld [vmem:[%s7438_s5 + $0x90] sm:$0xff] }
 0x247   : > { %v728_v44 = vadd.f32 %v727_v41, %v726_v17  ;;  %2886 = vperm.xlu0 %4459, %v2849_v9   ;;  %v2853_v17 = vld [vmem:[%s7438_s5 + $0x28] sm:$0xff]  ;;  %v2855_v41 = vld [vmem:[%s7438_s5 + $0x38] sm:$0xff] }
 0x248   : > { %v2867_v9 = vld [vmem:[%s7438_s5 + $0x98] sm:$0xff] }
 0x249   : > { %v730_v19 = vadd.f32 %v729_v23, %v728_v44  ;;  %v2854_v44 = vld [vmem:[%s7438_s5 + $0x30] sm:$0xff]  ;;  %v4462_v23 = vld [vmem:[%s7436_s3 + $0x4] ss:$20 sps:$4 sm:$0xff]  }
 0x24a   : > { %2902 = vperm.xlu1 %4453, %v2853_v17   ;;  %1353 = vmatprep.subr.bf16.mxu0 %v4462_v23  ;;  %v2872_v17 = vld [vmem:[%s7438_s5 + $0xc0] sm:$0xff] }
 0x24b   : > { %v732_v18 = vadd.f32 %v731_v58, %v730_v19  ;;  %2898 = vperm.xlu0 %4459, %v2852_v53   ;;  %v2857_v19 = vld [vmem:[%s7438_s5 + $0x48] sm:$0xff]  ;;  %v2856_v58 = vld [vmem:[%s7438_s5 + $0x40] sm:$0xff]  ;;  %4431 = vmatprep.subr.bf16.mxu1 %v4462_v23 }
 0x24c   : > { %v4474_v53 = vld [vmem:[%s7436_s3 + $0xc] ss:$20 sps:$4 sm:$0xff]  }
 0x24d   : > { %v734_v24 = vadd.f32 %v733_v20, %v732_v18  ;;  %v4465_v18 = vld [vmem:[%s7436_s3 + $0x2c] ss:$20 sps:$4 sm:$0xff]   ;;  %v4463_v20 = vld [vmem:[%s7436_s3 + $0x28] ss:$20 sps:$4 sm:$0xff]  }
 0x24e   : > { %2910 = vperm.xlu1 %4453, %v2855_v41   ;;  %v2875_v41 = vld [vmem:[%s7438_s5 + $0xd8] sm:$0xff]  ;;  %v2876_v23 = vld [vmem:[%s7438_s5 + $0xe0] sm:$0xff] }
 0x24f   : > { %v735_v28 = vrot.slane %v734_v24, 4  ;;  %2906 = vperm.xlu0 %4459, %v2854_v44   ;;  %v2874_v44 = vld [vmem:[%s7438_s5 + $0xd0] sm:$0xff] }
 0x251   : > { %v736_v35 = vadd.f32 %v735_v28, %v734_v24  ;;  %v2859_v24 = vld [vmem:[%s7438_s5 + $0x58] sm:$0xff]  ;;  %v2858_v28 = vld [vmem:[%s7438_s5 + $0x50] sm:$0xff] }
 0x252   : > { %2918 = vperm.xlu1 %4453, %v2857_v19   ;;  %v2879_v19 = vld [vmem:[%s7438_s5 + $0xf8] sm:$0xff] }
 0x253   : > { %v737_v37 = vrot.slane %v736_v35, 2  ;;  %2914 = vperm.xlu0 %4459, %v2856_v58   ;;  %v2878_v58 = vld [vmem:[%s7438_s5 + $0xf0] sm:$0xff] }
 0x255   : > { %v738_v43 = vadd.f32 %v737_v37, %v736_v35  ;;  %v4468_v35 = vld [vmem:[%s7436_s3 + $0x54] ss:$20 sps:$4 sm:$0xff]   ;;  %v4466_v37 = vld [vmem:[%s7436_s3 + $0x50] ss:$20 sps:$4 sm:$0xff]  }
 0x256   : > { %2926 = vperm.xlu1 %4453, %v2859_v24   ;;  %v3368_v24 = vld [vmem:[%s7439_s6 + $0x18] sm:$0xff] }
 0x257   : > { %v739_v46 = vrot.slane %v738_v43, 1  ;;  %2922 = vperm.xlu0 %4459, %v2858_v28   ;;  %v3367_v28 = vld [vmem:[%s7439_s6 + $0x10] sm:$0xff] }
 0x259   : > { %v740_v50 = vadd.f32 %v739_v46, %v738_v43  ;;  %v2861_v43 = vld [vmem:[%s7438_s5 + $0x68] sm:$0xff]  ;;  %v2860_v46 = vld [vmem:[%s7438_s5 + $0x60] sm:$0xff] }
 0x25a   : > { %2934 = vperm.xlu1 %4453, %v2861_v43   ;;  %v3372_v43 = vld [vmem:[%s7439_s6 + $0x38] sm:$0xff] }
 0x25b   : > { %4342 = vmatmul.mubr.msk.f32.vlgmr.msra.gmra.mrb[2].mxu1 %vm7535_vm7, %v740_v50  ;;  %v4471_v50 = vld [vmem:[%s7436_s3 + $0x7c] ss:$20 sps:$4 sm:$0xff]   ;;  %2930 = vperm.xlu0 %4459, %v2860_v46   ;;  %vm7550_vm7 = vmmov %vm7516_vm0 }
 0x25c   : > { %1505 = vmatprep.mubr.bf16.mxu1 %v4703_v57  ;;  %4435 = vmatpush1.bf16.msra.mxu1 %v4460_v6  ;;  %v3371_v46 = vld [vmem:[%s7439_s6 + $0x30] sm:$0xff] }
 0x25d   : > { %4432 = vmatprep.subr.bf16.mxu1 %v4465_v18 }
 0x25e   : > { %2942 = vperm.xlu1 %4453, %v2863_v54   ;;  %v3376_v54 = vld [vmem:[%s7439_s6 + $0x58] sm:$0xff] }
 0x25f   : > { %2938 = vperm.xlu0 %4459, %v2862_v61   ;;  %v3375_v61 = vld [vmem:[%s7439_s6 + $0x50] sm:$0xff] }
 0x260   : > { %4436 = vmatpush1.bf16.msra.mxu1 %v4463_v20 }
 0x261   : > { %4433 = vmatprep.subr.bf16.mxu1 %v4468_v35 }
 0x262   : > { %2950 = vperm.xlu1 %4453, %v2865_v62   ;;  %v3378_v62 = vld [vmem:[%s7439_s6 + $0x68] sm:$0xff] }
 0x263   : > { %2946 = vperm.xlu0 %4459, %v2864_v8   ;;  %v3377_v8 = vld [vmem:[%s7439_s6 + $0x60] sm:$0xff] }
 0x264   : > { %4437 = vmatpush1.bf16.msra.mxu1 %v4466_v37 }
 0x265   : > { %4434 = vmatprep.subr.bf16.mxu1 %v4471_v50 }
 0x266   : > { %2958 = vperm.xlu1 %4453, %v2867_v9   ;;  %v3380_v9 = vld [vmem:[%s7439_s6 + $0x78] sm:$0xff] }
 0x267   : > { %2954 = vperm.xlu0 %4459, %v2866_v5   ;;  %v3379_v5 = vld [vmem:[%s7439_s6 + $0x70] sm:$0xff] }
 0x268   : > { %4438 = vmatpush1.bf16.msra.mxu1 %v4469_v51 }
 0x269   : > { %1546 = vmatprep.subr.bf16.mxu1 %v4474_v53  ;;  %v3388_v53 = vld [vmem:[%s7439_s6 + $0xb8] sm:$0xff] }
 0x32e   : > { %v810_v3 = vpop.f32.mrb[2].mxu1 }
 0x32f   : > { %v814_v4 = vmul.f32 0.001953125, %v810_v3  ;;  %v4343_v33 = vpop.f32.mrb[3].mxu1  ;;  %v2869_v3 = vld [vmem:[%s7438_s5 + $0xa8] sm:$0xff] }
 0x330   : > { %2966 = vperm.xlu1 %4453, %v2869_v3   ;;  %v2871_v33 = vld [vmem:[%s7438_s5 + $0xb8] sm:$0xff]  ;;  %v3382_v3 = vld [vmem:[%s7439_s6 + $0x88] sm:$0xff] }
 0x331   : > { %v815_v36 = vadd.f32 1e-05, %v814_v4  ;;  %v2868_v4 = vld [vmem:[%s7438_s5 + $0xa0] sm:$0xff] }
 0x332   : > { %2962 = vperm.xlu0 %4459, %v2868_v4   ;;  %v3381_v4 = vld [vmem:[%s7439_s6 + $0x80] sm:$0xff] }
 0x333   : > { %4488 = vrsqrt.f32 %v815_v36  ;;  %v2870_v36 = vld [vmem:[%s7438_s5 + $0xb0] sm:$0xff] }
 0x334   : > { %2974 = vperm.xlu1 %4453, %v2871_v33   ;;  %v3384_v33 = vld [vmem:[%s7439_s6 + $0x98] sm:$0xff] }
 0x336   : > { %2970 = vperm.xlu0 %4459, %v2870_v36   ;;  %v3383_v36 = vld [vmem:[%s7439_s6 + $0x90] sm:$0xff] }
 0x33a   : > { %2978 = vperm.xlu0 %4459, %v2872_v17   ;;  %v3385_v17 = vld [vmem:[%s7439_s6 + $0xa0] sm:$0xff] }
 0x33d   : > { %v4489_v12 = vpop.eup %4488 }
 0x33e   : > { %4353 = vmatmul.mubr.msk.f32.vlgmr.msra.gmra.mrb[2].mxu0 %vm530_vm1, %v4489_v12  ;;  %v2873_v12 = vld [vmem:[%s7438_s5 + $0xc8] sm:$0xff]  ;;  %2986 = vperm.xlu0 %4459, %v2874_v44   ;;  %vm7536_vm1 = vmmov %vm7516_vm0 }
 0x33f   : > { %1385 = vmatprep.mubr.bf16.mxu0 %v4703_v57  ;;  %1354 = vmatpush1.bf16.msra.mxu0 %v4460_v6  ;;  %v2877_v6 = vld [vmem:[%s7438_s5 + $0xe8] sm:$0xff] }
 0x340   : > { %1355 = vmatprep.subr.bf16.mxu0 %v4465_v18  ;;  %2982 = vperm.xlu1 %4453, %v2873_v12   ;;  %v3366_v18 = vld [vmem:[%s7439_s6 + $0x8] sm:$0xff] }
 0x341   : > { %v3386_v12 = vld [vmem:[%s7439_s6 + $0xa8] sm:$0xff] }
 0x342   : > { %2994 = vperm.xlu0 %4459, %v2876_v23   ;;  %v3390_v44 = vld [vmem:[%s7439_s6 + $0xc8] sm:$0xff]  ;;  %v3392_v23 = vld [vmem:[%s7439_s6 + $0xd8] sm:$0xff] }
 0x343   : > { %1356 = vmatpush1.bf16.msra.mxu0 %v4463_v20  ;;  %v3365_v20 = vld [vmem:[%s7439_s6] sm:$0xff] }
 0x344   : > { %1357 = vmatprep.subr.bf16.mxu0 %v4468_v35  ;;  %2990 = vperm.xlu1 %4453, %v2875_v41   ;;  %v3370_v35 = vld [vmem:[%s7439_s6 + $0x28] sm:$0xff]  ;;  %v3387_v41 = vld [vmem:[%s7439_s6 + $0xb0] sm:$0xff] }
 0x346   : > { %3002 = vperm.xlu0 %4459, %v2878_v58   ;;  %v3394_v58 = vld [vmem:[%s7439_s6 + $0xe8] sm:$0xff] }
 0x347   : > { %1358 = vmatpush1.bf16.msra.mxu0 %v4466_v37  ;;  %v3369_v37 = vld [vmem:[%s7439_s6 + $0x20] sm:$0xff] }
 0x348   : > { %1359 = vmatprep.subr.bf16.mxu0 %v4471_v50  ;;  %2998 = vperm.xlu1 %4453, %v2877_v6   ;;  %v3374_v50 = vld [vmem:[%s7439_s6 + $0x48] sm:$0xff]  ;;  %v3389_v6 = vld [vmem:[%s7439_s6 + $0xc0] sm:$0xff] }
 0x34a   : > { %3399 = vperm.xlu0 %4459, %v3365_v20   ;;  %v3396_v20 = vld [vmem:[%s7439_s6 + $0xf8] sm:$0xff] }
 0x34b   : > { %1360 = vmatpush1.bf16.msra.mxu0 %v4469_v51  ;;  %v3373_v51 = vld [vmem:[%s7439_s6 + $0x40] sm:$0xff] }
 0x34c   : > { %3006 = vperm.xlu1 %4453, %v2879_v19   ;;  %v3391_v19 = vld [vmem:[%s7439_s6 + $0xd0] sm:$0xff] }
 0x34e   : > { %3407 = vperm.xlu0 %4459, %v3367_v28   ;;  %v5602_v28 = vld [vmem:[%s7436_s3 + $0x10] ss:$20 sps:$4 sm:$0xff]  }
 0x34f   : > { %4355 = vmatprep.subr.bf16.mxu0 %v5602_v28 }
 0x350   : > { %3403 = vperm.xlu1 %4453, %v3366_v18   ;;  %v3393_v18 = vld [vmem:[%s7439_s6 + $0xe0] sm:$0xff] }
 0x352   : > { %3415 = vperm.xlu0 %4459, %v3369_v37  }
 0x354   : > { %3411 = vperm.xlu1 %4453, %v3368_v24   ;;  %v3395_v24 = vld [vmem:[%s7439_s6 + $0xf0] sm:$0xff] }
 0x356   : > { %3423 = vperm.xlu0 %4459, %v3371_v46  }
 0x358   : > { %3419 = vperm.xlu1 %4453, %v3370_v35   ;;  %v890_v35 = vld [vmem:[%s7434_s1] sm:$0x1] }
 0x35a   : > { %3431 = vperm.xlu0 %4459, %v3373_v51   ;;  %v5615_v51 = vld [vmem:[%s7435_s2] ss:$0 sm:$0xff] }
 0x35c   : > { %3427 = vperm.xlu1 %4453, %v3372_v43  }
 0x35e   : > { %3439 = vperm.xlu0 %4459, %v3375_v61  }
 0x360   : > { %3435 = vperm.xlu1 %4453, %v3374_v50  }
 0x362   : > { %3447 = vperm.xlu0 %4459, %v3377_v8  }
 0x364   : > { %3443 = vperm.xlu1 %4453, %v3376_v54  }
 0x366   : > { %3455 = vperm.xlu0 %4459, %v3379_v5  }
 0x368   : > { %3451 = vperm.xlu1 %4453, %v3378_v62  }
 0x36a   : > { %3463 = vperm.xlu0 %4459, %v3381_v4  }
 0x36c   : > { %3459 = vperm.xlu1 %4453, %v3380_v9  }
 0x36e   : > { %3471 = vperm.xlu0 %4459, %v3383_v36  }
 0x370   : > { %3467 = vperm.xlu1 %4453, %v3382_v3  }
 0x372   : > { %3479 = vperm.xlu0 %4459, %v3385_v17  }
 0x374   : > { %3475 = vperm.xlu1 %4453, %v3384_v33  }
 0x376   : > { %3487 = vperm.xlu0 %4459, %v3387_v41  }
 0x378   : > { %3483 = vperm.xlu1 %4453, %v3386_v12  }
 0x37a   : > { %3495 = vperm.xlu0 %4459, %v3389_v6  }
 0x37c   : > { %3491 = vperm.xlu1 %4453, %v3388_v53  }
 0x37e   : > { %3503 = vperm.xlu0 %4459, %v3391_v19  }
 0x380   : > { %3499 = vperm.xlu1 %4453, %v3390_v44  }
 0x382   : > { %3511 = vperm.xlu0 %4459, %v3393_v18  }
 0x384   : > { %3507 = vperm.xlu1 %4453, %v3392_v23  }
 0x386   : > { %3519 = vperm.xlu0 %4459, %v3395_v24  }
 0x388   : > { %3515 = vperm.xlu1 %4453, %v3394_v58  }
 0x38c   : > { %3523 = vperm.xlu1 %4453, %v3396_v20  }
 0x411   : > { %v886_v37 = vpop.f32.mrb[2].mxu0 }
 0x412   : > { %v891_v43 = vmul.f32 %v890_v35, %v886_v37  ;;  %v4354_v46 = vpop.f32.mrb[3].mxu0 }
 0x414   : > { %v5610_v50 = vrot.slane %v891_v43, %v606_v15 }
 0x416   : > { %v898_v54 = vmul.f32 %v5610_v50, %v5151_v26  ;;  %v899_v61 = vmul.f32 %v5610_v50, %v5155_v1  ;;  %v922_v62 = vmul.f32 %v5610_v50, %v5311_v56  ;;  %v923_v8 = vmul.f32 %v5610_v50, %v5318_v59 }
 0x417   : > { %v900_v2 = vmul.f32 %v5610_v50, %v5159_v29  ;;  %v901_v15 = vmul.f32 %v5610_v50, %v5163_v25  ;;  %v924_v9 = vmul.f32 %v5610_v50, %v5325_v0  ;;  %v925_v26 = vmul.f32 %v5610_v50, %v5332_v14 }
 0x418   : > { %v5634_v1 = vadd.f32 %v5615_v51, %v898_v54  ;;  %v5637_v56 = vadd.f32 %v5615_v51, %v899_v61  ;;  %v5640_v59 = vadd.f32 %v5615_v51, %v922_v62  ;;  %v5643_v29 = vadd.f32 %v5615_v51, %v923_v8 }
 0x419   : > { %v5646_v25 = vadd.f32 %v5615_v51, %v900_v2  ;;  %v5649_v0 = vadd.f32 %v5615_v51, %v901_v15  ;;  %v5652_v14 = vadd.f32 %v5615_v51, %v924_v9  ;;  %v5655_v5 = vadd.f32 %v5615_v51, %v925_v26 }
 0x41a   : > { %v969_v3 = vsub.f32 0.0, %v5634_v1  ;;  %v970_v4 = vsub.f32 0.0, %v5637_v56  ;;  %v993_v33 = vsub.f32 0.0, %v5640_v59  ;;  %v994_v36 = vsub.f32 0.0, %v5643_v29 }
 0x41b   : > { %v971_v12 = vsub.f32 0.0, %v5646_v25  ;;  %v972_v17 = vsub.f32 0.0, %v5649_v0  ;;  %v995_v53 = vsub.f32 0.0, %v5652_v14  ;;  %v996_v41 = vsub.f32 0.0, %v5655_v5 }
 0x41c   : > { %v1001_v44 = vmul.f32 1.442695, %v969_v3  ;;  %v1003_v6 = vmul.f32 1.442695, %v970_v4  ;;  %v1049_v23 = vmul.f32 1.442695, %v993_v33  ;;  %v902_v19 = vmul.f32 %v5610_v50, %v5171_v11 }
 0x41d   : > { %v1051_v58 = vmul.f32 1.442695, %v994_v36  ;;  %v1005_v18 = vmul.f32 1.442695, %v971_v12  ;;  %v903_v20 = vmul.f32 %v5610_v50, %v5177_v13  ;;  %v1007_v24 = vmul.f32 1.442695, %v972_v17 }
 0x41e   : > { %4490 = vpow2.f32 %v1001_v44  ;;  %v1053_v35 = vmul.f32 1.442695, %v995_v53  ;;  %v5670_v37 = vadd.f32 %v5615_v51, %v902_v19  ;;  %v926_v46 = vmul.f32 %v5610_v50, %v5339_v22 }
 0x41f   : > { %4492 = vpow2.f32 %v1003_v6  ;;  %v5673_v43 = vadd.f32 %v5615_v51, %v903_v20  ;;  %v927_v11 = vmul.f32 %v5610_v50, %v5346_v31  ;;  %v1055_v54 = vmul.f32 1.442695, %v996_v41 }
 0x420   : > { %4494 = vpow2.f32 %v1049_v23  ;;  %v973_v13 = vsub.f32 0.0, %v5670_v37  ;;  %v904_v61 = vmul.f32 %v5610_v50, %v5185_v10  ;;  %v5684_v8 = vadd.f32 %v5615_v51, %v926_v46 }
 0x421   : > { %4496 = vpow2.f32 %v1051_v58  ;;  %v974_v62 = vsub.f32 0.0, %v5673_v43  ;;  %v5687_v2 = vadd.f32 %v5615_v51, %v927_v11  ;;  %v905_v33 = vmul.f32 %v5610_v50, %v5192_v30 }
 0x422   : > { %4498 = vpow2.f32 %v1005_v18  ;;  %v1009_v22 = vmul.f32 1.442695, %v973_v13  ;;  %v5690_v31 = vadd.f32 %v5615_v51, %v904_v61  ;;  %v997_v9 = vsub.f32 0.0, %v5684_v8 }
 0x423   : > { %4500 = vpow2.f32 %v1007_v24  ;;  %v1011_v15 = vmul.f32 1.442695, %v974_v62  ;;  %v998_v10 = vsub.f32 0.0, %v5687_v2  ;;  %v928_v12 = vmul.f32 %v5610_v50, %v5353_v42 }
 0x424   : > { %4502 = vpow2.f32 %v1053_v35  ;;  %v975_v26 = vsub.f32 0.0, %v5690_v31  ;;  %v1057_v3 = vmul.f32 1.442695, %v997_v9  ;;  %v929_v17 = vmul.f32 %v5610_v50, %v5360_v47 }
 0x425   : > { %4504 = vpow2.f32 %v1055_v54  ;;  %v1059_v4 = vmul.f32 1.442695, %v998_v10  ;;  %v906_v41 = vmul.f32 %v5610_v50, %v5199_v34  ;;  %v907_v44 = vmul.f32 %v5610_v50, %v5206_v38 }
 0x426   : > { %4506 = vpow2.f32 %v1009_v22  ;;  %v1013_v36 = vmul.f32 1.442695, %v975_v26  ;;  %v5706_v30 = vadd.f32 %v5615_v51, %v905_v33  ;;  %v908_v42 = vmul.f32 %v5610_v50, %v5213_v39 }
 0x427   : > { %4508 = vpow2.f32 %v1011_v15  ;;  %v5711_v47 = vadd.f32 %v5615_v51, %v928_v12  ;;  %v909_v34 = vmul.f32 %v5610_v50, %v5220_v48  ;;  %v5716_v20 = vadd.f32 %v5615_v51, %v929_v17 }
 0x428   : > { %v4491_v53 = vpop.eup %4490  ;;  %4510 = vpow2.f32 %v1057_v3  ;;  %v5719_v39 = vadd.f32 %v5615_v51, %v906_v41  ;;  %v5722_v46 = vadd.f32 %v5615_v51, %v907_v44  ;;  %v976_v48 = vsub.f32 0.0, %v5706_v30 }
 0x429   : > { %v4493_v6 = vpop.eup %4492  ;;  %v1065_v23 = vadd.f32 1.0, %v4491_v53  ;;  %4512 = vpow2.f32 %v1059_v4  ;;  %v5726_v13 = vadd.f32 %v5615_v51, %v908_v42  ;;  %v999_v22 = vsub.f32 0.0, %v5711_v47 }
 0x42a   : > { %v4495_v19 = vpop.eup %4494  ;;  %v1066_v58 = vadd.f32 1.0, %v4493_v6  ;;  %4514 = vpow2.f32 %v1013_v36  ;;  %v5730_v15 = vadd.f32 %v5615_v51, %v909_v34  ;;  %v1000_v26 = vsub.f32 0.0, %v5716_v20 }
 0x42b   : > { %v4497_v18 = vpop.eup %4496  ;;  %4516 = vrcp.f32 %v1065_v23  ;;  %v1089_v38 = vadd.f32 1.0, %v4495_v19  ;;  %v910_v3 = vmul.f32 %v5610_v50, %v5227_v55  ;;  %v977_v36 = vsub.f32 0.0, %v5719_v39 }
 0x42c   : > { %v4499_v24 = vpop.eup %4498  ;;  %4518 = vrcp.f32 %v1066_v58  ;;  %v1090_v35 = vadd.f32 1.0, %v4497_v18  ;;  %v978_v12 = vsub.f32 0.0, %v5722_v46  ;;  %v979_v41 = vsub.f32 0.0, %v5726_v13 }
 0x42d   : > { %v4501_v11 = vpop.eup %4500  ;;  %4520 = vrcp.f32 %v1089_v38  ;;  %v1067_v54 = vadd.f32 1.0, %v4499_v24  ;;  %v911_v44 = vmul.f32 %v5610_v50, %v5234_v60  ;;  %v980_v55 = vsub.f32 0.0, %v5730_v15 }
 0x42e   : > { %v4503_v61 = vpop.eup %4502  ;;  %4522 = vrcp.f32 %v1090_v35  ;;  %v1068_v62 = vadd.f32 1.0, %v4501_v11  ;;  %v1015_v58 = vmul.f32 1.442695, %v976_v48  ;;  %v1061_v34 = vmul.f32 1.442695, %v999_v22 }
 0x42f   : > { %v4505_v9 = vpop.eup %4504  ;;  %4524 = vrcp.f32 %v1067_v54  ;;  %v1091_v10 = vadd.f32 1.0, %v4503_v61  ;;  %v5742_v18 = vadd.f32 %v5615_v51, %v910_v3  ;;  %v1063_v35 = vmul.f32 1.442695, %v1000_v26 }
 0x430   : > { %v4507_v4 = vpop.eup %4506  ;;  %4526 = vrcp.f32 %v1068_v62  ;;  %v1092_v33 = vadd.f32 1.0, %v4505_v9  ;;  %v1017_v11 = vmul.f32 1.442695, %v977_v36  ;;  %v1019_v60 = vmul.f32 1.442695, %v978_v12 }
 0x431   : > { %v4509_v17 = vpop.eup %4508  ;;  %4528 = vrcp.f32 %v1091_v10  ;;  %v1069_v53 = vadd.f32 1.0, %v4507_v4  ;;  %v1021_v61 = vmul.f32 1.442695, %v979_v41  ;;  %v5745_v62 = vadd.f32 %v5615_v51, %v911_v44 }
 0x432   : > { %v4511_v6 = vpop.eup %4510  ;;  %4530 = vrcp.f32 %v1092_v33  ;;  %v1070_v23 = vadd.f32 1.0, %v4509_v17  ;;  %v1023_v48 = vmul.f32 1.442695, %v980_v55  ;;  %v912_v22 = vmul.f32 %v5610_v50, %v5241_v63  ;;  %v4477_v55 = vld [vmem:[%s7436_s3 + $0x34] ss:$20 sps:$4 sm:$0xff]  }
 0x433   : > { %v4513_v42 = vpop.eup %4512  ;;  %v1093_v19 = vadd.f32 1.0, %v4511_v6  ;;  %4532 = vrcp.f32 %v1069_v53  ;;  %v981_v26 = vsub.f32 0.0, %v5742_v18  ;;  %v914_v33 = vmul.f32 %v5610_v50, %v5255_v16  ;;  %v4485_v16 = vld [vmem:[%s7436_s3 + $0x38] ss:$20 sps:$4 sm:$0xff]  }
 0x434   : > { %v4515_v38 = vpop.eup %4514  ;;  %v1094_v24 = vadd.f32 1.0, %v4513_v42  ;;  %4534 = vrcp.f32 %v1070_v23  ;;  %v915_v17 = vmul.f32 %v5610_v50, %v5262_v21  ;;  %v982_v41 = vsub.f32 0.0, %v5745_v62 }
 0x435   : > { %v4517_v54 = vpop.eup %4516  ;;  %4536 = vrcp.f32 %v1093_v19  ;;  %v5770_v21 = vadd.f32 %v5615_v51, %v912_v22  ;;  %v5773_v44 = vadd.f32 %v5615_v51, %v914_v33  ;;  %v1025_v42 = vmul.f32 1.442695, %v981_v26 }
 0x436   : > { %v4519_v9 = vpop.eup %4518  ;;  %v1129_v10 = vmul.f32 %v4517_v54, %v5634_v1  ;;  %4538 = vpow2.f32 %v1015_v58  ;;  %v913_v1 = vmul.f32 %v5610_v50, %v5248_v7  ;;  %v4472_v7 = vld [vmem:[%s7436_s3 + $0x8] ss:$20 sps:$4 sm:$0xff]   ;;  %v916_v19 = vmul.f32 %v5610_v50, %v5269_v27 }
 0x437   : > { %v4521_v3 = vpop.eup %4520  ;;  %v1130_v4 = vmul.f32 %v4519_v9, %v5637_v56  ;;  %4540 = vrcp.f32 %v1094_v24  ;;  %v1071_v24 = vadd.f32 1.0, %v4515_v38  ;;  %v917_v27 = vmul.f32 %v5610_v50, %v5276_v32 }
 0x438   : > { %v4523_v36 = vpop.eup %4522  ;;  %v1153_v12 = vmul.f32 %v4521_v3, %v5640_v59  ;;  %4542 = vpow2.f32 %v1061_v34 }
 0x439   : > { %v4525_v63 = vpop.eup %4524  ;;  %v5759_v53 = vpack.c.bf16 %v1130_v4, %v1129_v10  ;;  %v1154_v56 = vmul.f32 %v4523_v36, %v5643_v29  ;;  %4544 = vpow2.f32 %v1063_v35  ;;  %v5776_v29 = vadd.f32 %v5615_v51, %v915_v17  ;;  %v4480_v10 = vld [vmem:[%s7436_s3 + $0x5c] ss:$20 sps:$4 sm:$0xff]  }
 0x43a   : > { %v4527_v59 = vpop.eup %4526  ;;  %4546 = vpow2.f32 %v1017_v11  ;;  %v1131_v34 = vmul.f32 %v4525_v63, %v5646_v25  ;;  %v985_v35 = vsub.f32 0.0, %v5773_v44  ;;  %v4486_v25 = vld [vmem:[%s7436_s3 + $0x60] ss:$20 sps:$4 sm:$0xff]   ;;  %v918_v4 = vmul.f32 %v5610_v50, %v5283_v40  ;;  %v4487_v36 = vld [vmem:[%s7436_s3 + $0x88] ss:$20 sps:$4 sm:$0xff]  }
 0x43b   : > { %v4529_v6 = vpop.eup %4528  ;;  %4194 = vmatmul.mubr.msk.bf16.vlgmr.msra.gmra.mrb[4].mxu0 %vm7536_vm1, %v5759_v53  ;;  %v5780_v23 = vpack.c.bf16 %v1154_v56, %v1153_v12  ;;  %4548 = vpow2.f32 %v1019_v60  ;;  %v1132_v11 = vmul.f32 %v4527_v59, %v5649_v0  ;;  %v986_v54 = vsub.f32 0.0, %v5776_v29  ;;  %v4475_v0 = vld [vmem:[%s7436_s3 + $0x30] ss:$20 sps:$4 sm:$0xff]   ;;  %vm7551_vm1 = vmmov %vm7516_vm0 }
 0x43c   : > { %v4531_v58 = vpop.eup %4530  ;;  %1395 = vmatprep.mubr.bf16.mxu0 %v4703_v57  ;;  %4356 = vmatpush3.bf16.msra.mxu0 %v5602_v28  ;;  %4550 = vpow2.f32 %v1021_v61  ;;  %v1155_v28 = vmul.f32 %v4529_v6, %v5652_v14  ;;  %v1027_v60 = vmul.f32 1.442695, %v982_v41  ;;  %v5806_v61 = vadd.f32 %v5615_v51, %v913_v1  ;;  %v4478_v1 = vld [vmem:[%s7436_s3 + $0x58] ss:$20 sps:$4 sm:$0xff]  }
 0x43d   : > { %4206 = vmatmul.mubr.msk.bf16.vlgmr.msra.gmra.mrb[4].mxu1 %vm7537_vm11, %v5780_v23  ;;  %4357 = vmatprep.subr.bf16.mxu0 %v4485_v16  ;;  %v4533_v38 = vpop.eup %4532  ;;  %4552 = vpow2.f32 %v1023_v48  ;;  %v1156_v9 = vmul.f32 %v4531_v58, %v5655_v5  ;;  %v1033_v22 = vmul.f32 1.442695, %v985_v35  ;;  %v5813_v14 = vadd.f32 %v5615_v51, %v916_v19  ;;  %v4483_v59 = vld [vmem:[%s7436_s3 + $0x84] ss:$20 sps:$4 sm:$0xff]   ;;  %vm7552_vm11 = vmmov %vm7516_vm0 }
 0x43e   : > { %1547 = vmatpush1.bf16.msra.mxu1 %v4472_v7  ;;  %1515 = vmatprep.mubr.bf16.mxu1 %v4703_v57  ;;  %v4535_v32 = vpop.eup %4534  ;;  %4554 = vpow2.f32 %v1025_v42  ;;  %v5816_v48 = vadd.f32 %v5615_v51, %v917_v27  ;;  %v5820_v26 = vpack.c.bf16 %v1132_v11, %v1131_v34  ;;  %v1035_v33 = vmul.f32 1.442695, %v986_v54 }
 0x43f   : > { %1548 = vmatprep.subr.bf16.mxu1 %v4477_v55  ;;  %v4537_v3 = vpop.eup %4536  ;;  %4556 = vrcp.f32 %v1071_v24  ;;  %v983_v40 = vsub.f32 0.0, %v5770_v21  ;;  %v919_v63 = vmul.f32 %v5610_v50, %v5290_v45  ;;  %v5833_v41 = vpack.c.bf16 %v1156_v9, %v1155_v28  ;;  %v4481_v24 = vld [vmem:[%s7436_s3 + $0x80] ss:$20 sps:$4 sm:$0xff]  }
 0x440   : > { %4358 = vmatpush3.bf16.msra.mxu0 %v4485_v16  ;;  %v4539_v5 = vpop.eup %4538  ;;  %4558 = vpow2.f32 %v1027_v60  ;;  %v1133_v16 = vmul.f32 %v4533_v38, %v5670_v37  ;;  %v984_v7 = vsub.f32 0.0, %v5806_v61  ;;  %v1134_v45 = vmul.f32 %v4535_v32, %v5673_v43 }
 0x441   : > { %4359 = vmatprep.subr.bf16.mxu0 %v4486_v25  ;;  %v4541_v12 = vpop.eup %4540  ;;  %v1072_v17 = vadd.f32 1.0, %v4539_v5  ;;  %4560 = vpow2.f32 %v1033_v22  ;;  %v5843_v42 = vadd.f32 %v5615_v51, %v918_v4  ;;  %v5848_v58 = vadd.f32 %v5615_v51, %v919_v63 }
 0x442   : > { %1549 = vmatpush1.bf16.msra.mxu1 %v4475_v0  ;;  %v4543_v56 = vpop.eup %4542  ;;  %v1157_v43 = vmul.f32 %v4537_v3, %v5684_v8  ;;  %v1029_v11 = vmul.f32 1.442695, %v983_v40  ;;  %v1158_v27 = vmul.f32 %v4541_v12, %v5687_v2  ;;  %v920_v38 = vmul.f32 %v5610_v50, %v5297_v49 }
 0x443   : > { %4195 = vmatmul.mubr.msk.bf16.gmra.mrb[8].mxu0 %vm7538_vm3, %v5820_v26  ;;  %1550 = vmatprep.subr.bf16.mxu1 %v4480_v10  ;;  %v4545_v6 = vpop.eup %4544  ;;  %4562 = vrcp.f32 %v1072_v17  ;;  %v1095_v55 = vadd.f32 1.0, %v4543_v56  ;;  %v5858_v0 = vpack.c.bf16 %v1134_v45, %v1133_v16  ;;  %v1031_v8 = vmul.f32 1.442695, %v984_v7  ;;  %vm7553_vm3 = vmmov %vm7516_vm0 }
 0x444   : > { %1405 = vmatprep.mubr.bf16.mxu0 %v4703_v57  ;;  %4360 = vmatpush3.bf16.msra.mxu0 %v4486_v25  ;;  %v4547_v37 = vpop.eup %4546  ;;  %v1096_v19 = vadd.f32 1.0, %v4545_v6  ;;  %4564 = vpow2.f32 %v1035_v33  ;;  %v921_v60 = vmul.f32 %v5610_v50, %v5304_v52  ;;  %v987_v2 = vsub.f32 0.0, %v5813_v14 }
 0x445   : > { %4207 = vmatmul.mubr.msk.bf16.gmra.mrb[8].mxu1 %vm7539_vm4, %v5833_v41  ;;  %4361 = vmatprep.subr.bf16.mxu0 %v4487_v36  ;;  %v4549_v34 = vpop.eup %4548  ;;  %4566 = vrcp.f32 %v1095_v55  ;;  %v1073_v35 = vadd.f32 1.0, %v4547_v37  ;;  %v5864_v10 = vadd.f32 %v5615_v51, %v920_v38  ;;  %v5871_v4 = vpack.c.bf16 %v1158_v27, %v1157_v43  ;;  %vm7554_vm4 = vmmov %vm7516_vm0 }
 0x446   : > { %1525 = vmatprep.mubr.bf16.mxu1 %v4703_v57  ;;  %1551 = vmatpush1.bf16.msra.mxu1 %v4478_v1  ;;  %v4551_v54 = vpop.eup %4550  ;;  %4568 = vrcp.f32 %v1096_v19  ;;  %v1074_v25 = vadd.f32 1.0, %v4549_v34  ;;  %v5867_v3 = vadd.f32 %v5615_v51, %v921_v60  ;;  %v988_v50 = vsub.f32 0.0, %v5816_v48 }
 0x447   : > { %1552 = vmatprep.subr.bf16.mxu1 %v4483_v59  ;;  %v4553_v28 = vpop.eup %4552  ;;  %4570 = vrcp.f32 %v1073_v35  ;;  %v1075_v9 = vadd.f32 1.0, %v4551_v54  ;;  %v989_v33 = vsub.f32 0.0, %v5843_v42  ;;  %v1037_v12 = vmul.f32 1.442695, %v987_v2 }
 0x448   : > { %4362 = vmatpush3.bf16.msra.mxu0 %v4487_v36  ;;  %v4555_v32 = vpop.eup %4554  ;;  %4572 = vrcp.f32 %v1074_v25  ;;  %v1076_v49 = vadd.f32 1.0, %v4553_v28  ;;  %v990_v1 = vsub.f32 0.0, %v5848_v58  ;;  %v991_v63 = vsub.f32 0.0, %v5864_v10 }
 0x449   : > { %v4557_v22 = vpop.eup %4556  ;;  %v1077_v52 = vadd.f32 1.0, %v4555_v32  ;;  %4574 = vpow2.f32 %v1029_v11  ;;  %v1039_v59 = vmul.f32 1.442695, %v988_v50  ;;  %v992_v7 = vsub.f32 0.0, %v5867_v3 }
 0x44a   : > { %1553 = vmatpush1.bf16.msra.mxu1 %v4481_v24  ;;  %v4559_v5 = vpop.eup %4558  ;;  %4576 = vpow2.f32 %v1031_v8  ;;  %v1135_v51 = vmul.f32 %v4557_v22, %v5690_v31  ;;  %v1041_v45 = vmul.f32 1.442695, %v989_v33  ;;  %v1043_v34 = vmul.f32 1.442695, %v990_v1 }
 0x44b   : > { %4196 = vmatmul.mubr.msk.bf16.gmra.mrb[12].mxu0 %vm7540_vm8, %v5858_v0  ;;  %v4561_v36 = vpop.eup %4560  ;;  %4578 = vrcp.f32 %v1075_v9  ;;  %v1047_v11 = vmul.f32 1.442695, %v992_v7  ;;  %v1078_v27 = vadd.f32 1.0, %v4559_v5  ;;  %vm7555_vm8 = vmmov %vm7516_vm0 }
 0x44c   : > { %1415 = vmatprep.mubr.bf16.mxu0 %v4703_v57  ;;  %4580 = vrcp.f32 %v1076_v49  ;;  %v1081_v40 = vadd.f32 1.0, %v4561_v36 }
 0x44d   : > { %4208 = vmatmul.mubr.msk.bf16.gmra.mrb[12].mxu1 %vm7541_vm14, %v5871_v4  ;;  %v4563_v17 = vpop.eup %4562  ;;  %4582 = vrcp.f32 %v1077_v52  ;;  %vm7556_vm14 = vmmov %vm7516_vm0 }
 0x44e   : > { %1535 = vmatprep.mubr.bf16.mxu1 %v4703_v57  ;;  %v4565_v56 = vpop.eup %4564  ;;  %v1136_v16 = vmul.f32 %v4563_v17, %v5706_v30  ;;  %4584 = vrcp.f32 %v1081_v40  ;;  %v1045_v30 = vmul.f32 1.442695, %v991_v63 }
 0x44f   : > { %v4567_v6 = vpop.eup %4566  ;;  %v1082_v31 = vadd.f32 1.0, %v4565_v56  ;;  %4586 = vpow2.f32 %v1037_v12 }
 0x450   : > { %v4569_v55 = vpop.eup %4568  ;;  %v5884_v37 = vpack.c.bf16 %v1136_v16, %v1135_v51  ;;  %v1159_v19 = vmul.f32 %v4567_v6, %v5711_v47 }
 0x451   : > { %v4571_v43 = vpop.eup %4570  ;;  %v1160_v24 = vmul.f32 %v4569_v55, %v5716_v20  ;;  %4588 = vrcp.f32 %v1082_v31 }
 0x452   : > { %v4573_v35 = vpop.eup %4572  ;;  %4590 = vpow2.f32 %v1039_v59  ;;  %v1137_v25 = vmul.f32 %v4571_v43, %v5719_v39 }
 0x453   : > { %4197 = vmatmul.mubr.msk.bf16.gmra.mrb[16].mxu0 %vm7542_vm15, %v5884_v37  ;;  %v5890_v54 = vpack.c.bf16 %v1160_v24, %v1159_v19  ;;  %4592 = vpow2.f32 %v1041_v45  ;;  %v4575_v47 = vpop.eup %4574  ;;  %v1138_v38 = vmul.f32 %v4573_v35, %v5722_v46  ;;  %vm7557_vm15 = vmmov %vm7516_vm0 }
 0x454   : > { %1425 = vmatprep.mubr.bf16.mxu0 %v4703_v57  ;;  %4594 = vpow2.f32 %v1043_v34  ;;  %v4577_v20 = vpop.eup %4576  ;;  %v1079_v9 = vadd.f32 1.0, %v4575_v47 }
 0x455   : > { %4209 = vmatmul.mubr.msk.bf16.gmra.mrb[16].mxu1 %vm7543_vm9, %v5890_v54  ;;  %4596 = vpow2.f32 %v1045_v30  ;;  %v4579_v28 = vpop.eup %4578  ;;  %v5898_v32 = vpack.c.bf16 %v1138_v38, %v1137_v25  ;;  %v1080_v46 = vadd.f32 1.0, %v4577_v20  ;;  %vm7558_vm9 = vmmov %vm7516_vm0 }
 0x456   : > { %1578 = vmatprep.mubr.bf16.mxu1 %v4703_v57  ;;  %4598 = vpow2.f32 %v1047_v11  ;;  %v4581_v8 = vpop.eup %4580  ;;  %v1139_v5 = vmul.f32 %v4579_v28, %v5726_v13 }
 0x457   : > { %4600 = vrcp.f32 %v1078_v27  ;;  %v4583_v60 = vpop.eup %4582  ;;  %v1140_v33 = vmul.f32 %v4581_v8, %v5730_v15 }
 0x458   : > { %v4585_v2 = vpop.eup %4584  ;;  %4602 = vrcp.f32 %v1079_v9  ;;  %v1141_v59 = vmul.f32 %v4583_v60, %v5742_v18 }
 0x459   : > { %v4587_v39 = vpop.eup %4586  ;;  %v1145_v22 = vmul.f32 %v4585_v2, %v5773_v44  ;;  %v5912_v63 = vpack.c.bf16 %v1140_v33, %v1139_v5 }
 0x45a   : > { %v1083_v52 = vadd.f32 1.0, %v4587_v39 }
 0x45b   : > { %4198 = vmatmul.mubr.msk.bf16.gmra.mrb[20].mxu0 %vm7544_vm12, %v5898_v32  ;;  %v4589_v49 = vpop.eup %4588  ;;  %vm7559_vm12 = vmmov %vm7516_vm0 }
 0x45c   : > { %1435 = vmatprep.mubr.bf16.mxu0 %v4703_v57  ;;  %v4591_v50 = vpop.eup %4590  ;;  %v1146_v36 = vmul.f32 %v4589_v49, %v5776_v29  ;;  %4604 = vrcp.f32 %v1083_v52 }
 0x45d   : > { %v4593_v51 = vpop.eup %4592  ;;  %4210 = vmatmul.mubr.msk.bf16.vlgmr.msra.gmra.mrb[20].mxu1 %vm7545_vm5, %v5759_v53  ;;  %v1084_v12 = vadd.f32 1.0, %v4591_v50  ;;  %4606 = vrcp.f32 %v1080_v46  ;;  %vm7560_vm5 = vmmov %vm7516_vm0 }
 0x45e   : > { %v4595_v1 = vpop.eup %4594  ;;  %1588 = vmatprep.mubr.bf16.mxu1 %v4703_v57  ;;  %v5910_v44 = vpack.c.bf16 %v1146_v36, %v1145_v22  ;;  %v1085_v17 = vadd.f32 1.0, %v4593_v51 }
 0x45f   : > { %v4597_v40 = vpop.eup %4596  ;;  %4608 = vrcp.f32 %v1084_v12  ;;  %v1086_v13 = vadd.f32 1.0, %v4595_v1 }
 0x460   : > { %v4599_v15 = vpop.eup %4598  ;;  %4610 = vrcp.f32 %v1085_v17  ;;  %v1087_v29 = vadd.f32 1.0, %v4597_v40 }
 0x461   : > { %v4601_v56 = vpop.eup %4600  ;;  %4612 = vrcp.f32 %v1086_v13  ;;  %v1088_v16 = vadd.f32 1.0, %v4599_v15 }
 0x462   : > { %4614 = vrcp.f32 %v1087_v29  ;;  %v1142_v7 = vmul.f32 %v4601_v56, %v5745_v62  ;;  %v4603_v6 = vpop.eup %4602 }
 0x463   : > { %4199 = vmatmul.mubr.msk.bf16.gmra.mrb[24].mxu0 %vm7516_vm0, %v5912_v63  ;;  %4616 = vrcp.f32 %v1088_v16  ;;  %v1143_v35 = vmul.f32 %v4603_v6, %v5770_v21  ;;  %v4242_v21 = vld [vmem:[%s7437_s4] ss:$0 sm:$0xff] }
 0x464   : > { %1445 = vmatprep.mubr.bf16.mxu0 %v4703_v57  ;;  %v1167_v55 = vpack.c.bf16 %v1142_v7, %v1141_v59  ;;  %3886 = vrot.lane.b32.xlu0 %v4242_v21, %s4704_s12 }
 0x465   : > { %4211 = vmatmul.mubr.msk.bf16.gmra.mrb[24].mxu1 %vm7546_vm6, %v5820_v26  ;;  %vm7561_vm6 = vmmov %vm7516_vm0 }
 0x466   : > { %1598 = vmatprep.mubr.bf16.mxu1 %v4703_v57  ;;  %v4605_v31 = vpop.eup %4604 }
 0x467   : > { %v4607_v45 = vpop.eup %4606  ;;  %v1147_v19 = vmul.f32 %v4605_v31, %v5813_v14 }
 0x468   : > { %v1144_v11 = vmul.f32 %v4607_v45, %v5806_v61  ;;  %v5989_v61 = vpop.permute.xlu0 %4455 }
 0x469   : > { %v4609_v34 = vpop.eup %4608 }
 0x46a   : > { %v4611_v43 = vpop.eup %4610  ;;  %v1148_v24 = vmul.f32 %v4609_v34, %v5816_v48 }
 0x46b   : > { %4200 = vmatmul.mubr.msk.bf16.gmra.mrb[28].mxu0 %vm7547_vm10, %v1167_v55  ;;  %v4613_v18 = vpop.eup %4612  ;;  %v1149_v62 = vmul.f32 %v4611_v43, %v5843_v42  ;;  %v1168_v42 = vpack.c.bf16 %v1144_v11, %v1143_v35  ;;  %vm7562_vm10 = vmmov %vm7516_vm0 }
 0x46c   : > { %1455 = vmatprep.mubr.bf16.mxu0 %v4703_v57  ;;  %v4615_v30 = vpop.eup %4614  ;;  %v1170_v27 = vpack.c.bf16 %v1148_v24, %v1147_v19  ;;  %v1150_v47 = vmul.f32 %v4613_v18, %v5848_v58  ;;  %v5998_v58 = vpop.permute.xlu0 %2886 }
 0x46d   : > { %v4617_v14 = vpop.eup %4616  ;;  %4212 = vmatmul.mubr.msk.bf16.gmra.mrb[28].mxu1 %vm7548_vm13, %v5858_v0  ;;  %v1151_v25 = vmul.f32 %v4615_v30, %v5864_v10  ;;  %vm7563_vm13 = vmmov %vm7516_vm0 }
 0x46e   : > { %1608 = vmatprep.mubr.bf16.mxu1 %v4703_v57  ;;  %v1171_v48 = vpack.c.bf16 %v1150_v47, %v1149_v62  ;;  %v1152_v38 = vmul.f32 %v4617_v14, %v5867_v3 }
 0x470   : > { %v1172_v20 = vpack.c.bf16 %v1152_v38, %v1151_v25  ;;  %v6007_v10 = vpop.permute.xlu0 %2898 }
 0x473   : > { %4201 = vmatmul.mubr.msk.bf16.gmra.mrb[32].mxu0 %vm7549_vm2, %v1168_v42  ;;  %vm7564_vm2 = vmmov %vm7516_vm0 }
 0x474   : > { %1465 = vmatprep.mubr.bf16.mxu0 %v4703_v57 }
 0x475   : > { %4213 = vmatmul.mubr.msk.bf16.gmra.mrb[32].mxu1 %vm7550_vm7, %v5884_v37  ;;  %vm7565_vm7 = vmmov %vm7516_vm0 }
 0x476   : > { %1618 = vmatprep.mubr.bf16.mxu1 %v4703_v57 }
 0x47b   : > { %4202 = vmatmul.mubr.msk.bf16.gmra.mrb[36].mxu0 %vm7551_vm1, %v5910_v44  ;;  %vm7566_vm1 = vmmov %vm7516_vm0 }
 0x47c   : > { %1475 = vmatprep.mubr.bf16.mxu0 %v4703_v57 }
 0x47d   : > { %4214 = vmatmul.mubr.msk.bf16.gmra.mrb[36].mxu1 %vm7552_vm11, %v5898_v32  ;;  %vm7567_vm11 = vmmov %vm7516_vm0 }
 0x47e   : > { %1628 = vmatprep.mubr.bf16.mxu1 %v4703_v57 }
 0x483   : > { %4203 = vmatmul.mubr.msk.bf16.gmra.mrb[40].mxu0 %vm7553_vm3, %v1170_v27  ;;  %vm7568_vm3 = vmmov %vm7516_vm0 }
 0x484   : > { %1485 = vmatprep.mubr.bf16.mxu0 %v4703_v57 }
 0x485   : > { %4215 = vmatmul.mubr.msk.bf16.gmra.mrb[40].mxu1 %vm7554_vm4, %v5912_v63  ;;  %vm7569_vm4 = vmmov %vm7516_vm0 }
 0x486   : > { %1638 = vmatprep.mubr.bf16.mxu1 %v4703_v57 }
 0x48b   : > { %4204 = vmatmul.mubr.msk.bf16.gmra.mrb[44].mxu0 %vm7555_vm8, %v1171_v48  ;;  %vm7570_vm8 = vmmov %vm7516_vm0 }
 0x48c   : > { %1495 = vmatprep.mubr.bf16.mxu0 %v4703_v57 }
 0x48d   : > { %4216 = vmatmul.mubr.msk.bf16.gmra.mrb[44].mxu1 %vm7556_vm14, %v1167_v55  ;;  %vm7572_vm14 = vmmov %vm7516_vm0 }
 0x48e   : > { %1648 = vmatprep.mubr.bf16.mxu1 %v4703_v57 }
 0x493   : > { %4205 = vmatmul.mubr.msk.bf16.gmra.mrb[48].mxu0 %vm7557_vm15, %v1172_v20  ;;  %vm7573_vm15 = vmmov %vm7516_vm0 }
 0x494   : > { %4363 = vmatprep.mubr.msk.bf16.mxu0 %vm7558_vm9, %v5759_v53  ;;  %v5987_v53 = vpop.permute.xlu1 %2882  ;;  %vm7574_vm9 = vmmov %vm7516_vm0 }
 0x495   : > { %4217 = vmatmul.mubr.msk.bf16.gmra.mrb[48].mxu1 %vm7559_vm12, %v1168_v42  ;;  %7571 = vst [vmem:[#allocation3_spill] sm:$0xff] %v5987_v53  ;;  %vm7575_vm12 = vmmov %vm7516_vm0 }
 0x496   : > { %1658 = vmatprep.mubr.bf16.mxu1 %v4703_v57 }
 0x49b   : > { %4364 = vmatmul.mubr.msk.bf16.vlgmr.msra.gmra.mrb[52].mxu0 %vm7560_vm5, %v5820_v26  ;;  %v5996_v26 = vpop.permute.xlu1 %2890  ;;  %vm7576_vm5 = vmmov %vm7516_vm0 }
 0x49c   : > { %4367 = vmatprep.mubr.msk.bf16.mxu0 %vm7516_vm0, %v5858_v0 }
 0x49d   : > { %4218 = vmatmul.mubr.msk.bf16.gmra.mrb[52].mxu1 %vm7561_vm6, %v5910_v44  ;;  %vm7577_vm6 = vmmov %vm7516_vm0 }
 0x49e   : > { %1668 = vmatprep.mubr.bf16.mxu1 %v4703_v57 }
 0x49f   : > { %v6003_v0 = vpop.permute.xlu1 %2894 }
 0x4a3   : > { %4368 = vmatmul.mubr.msk.bf16.gmra.mrb[56].mxu0 %vm7562_vm10, %v5884_v37  ;;  %v6012_v3 = vpop.permute.xlu1 %2902  ;;  %vm7578_vm10 = vmmov %vm7516_vm0  ;;  %v6016_v37 = vpop.permute.xlu0 %2906 }
 0x4a4   : > { %4371 = vmatprep.mubr.msk.bf16.mxu0 %vm7563_vm13, %v5898_v32  ;;  %vm7579_vm13 = vmmov %vm7516_vm0 }
 0x4a5   : > { %4219 = vmatmul.mubr.msk.bf16.gmra.mrb[56].mxu1 %vm7564_vm2, %v1170_v27  ;;  %vm7580_vm2 = vmmov %vm7516_vm0 }
 0x4a6   : > { %1678 = vmatprep.mubr.bf16.mxu1 %v4703_v57 }
 0x4a7   : > { %v6023_v28 = vpop.permute.xlu0 %2914 }
 0x4ab   : > { %4372 = vmatmul.mubr.msk.bf16.gmra.mrb[60].mxu0 %vm7565_vm7, %v5912_v63  ;;  %vm7581_vm7 = vmmov %vm7516_vm0  ;;  %v6031_v8 = vpop.permute.xlu0 %2922 }
 0x4ac   : > { %4375 = vmatprep.mubr.msk.bf16.mxu0 %vm7566_vm1, %v1167_v55  ;;  %7583 = vst [vmem:[#allocation5_spill] sm:$0xff] %v6031_v8  ;;  %vm7634_vm1 = vmmov %vm7516_vm0 }
 0x4ad   : > { %4220 = vmatmul.mubr.msk.bf16.gmra.mrb[60].mxu1 %vm7567_vm11, %v1171_v48  ;;  %vm7636_vm11 = vmmov %vm7516_vm0 }
 0x4ae   : > { %1688 = vmatprep.mubr.bf16.mxu1 %v4703_v57 }
 0x4af   : > { %v6035_v32 = vpop.permute.xlu0 %2930 }
 0x4b0   : > { %7585 = vst [vmem:[#allocation7_spill] sm:$0xff] %v6035_v32 }
 0x4b3   : > { %4376 = vmatmul.mubr.msk.bf16.gmra.mrb[64].mxu0 %vm7568_vm3, %v1168_v42  ;;  %vm7641_vm3 = vmmov %vm7516_vm0 }
 0x4b4   : > { %4379 = vmatprep.mubr.msk.bf16.mxu0 %vm7569_vm4, %v5910_v44  ;;  %vm7642_vm4 = vmmov %vm7516_vm0 }
 0x4b5   : > { %4221 = vmatmul.mubr.msk.bf16.gmra.mrb[64].mxu1 %vm7570_vm8, %v1172_v20  ;;  %vm7643_vm8 = vmmov %vm7516_vm0 }
 0x4b6   : > { %1698 = vmatprep.mubr.bf16.mxu1 %v4703_v57 }
 0x4bb   : > { %4380 = vmatmul.mubr.msk.bf16.gmra.mrb[68].mxu0 %vm7572_vm14, %v1170_v27  ;;  %vm7646_vm14 = vmmov %vm7516_vm0 }
 0x4bc   : > { %4383 = vmatprep.mubr.msk.bf16.mxu0 %vm7573_vm15, %v1171_v48  ;;  %vm7650_vm15 = vmmov %vm7516_vm0 }
 0x4bd   : > { %4222 = vmatmul.mubr.msk.bf16.gmra.mrb[68].mxu1 %vm7574_vm9, %v5780_v23  ;;  %vm7651_vm9 = vmmov %vm7516_vm0 }
 0x4be   : > { %1708 = vmatprep.mubr.bf16.mxu1 %v4703_v57 }
 0x4c3   : > { %4384 = vmatmul.mubr.msk.bf16.gmra.mrb[72].mxu0 %vm7575_vm12, %v1172_v20  ;;  %vm7652_vm12 = vmmov %vm7516_vm0 }
 0x4c4   : > { %4387 = vmatprep.mubr.msk.bf16.mxu0 %vm7576_vm5, %v5780_v23  ;;  %v6021_v23 = vpop.permute.xlu1 %2910  ;;  %vm7654_vm5 = vmmov %vm7516_vm0 }
 0x4c5   : > { %4223 = vmatmul.mubr.msk.bf16.gmra.mrb[72].mxu1 %vm7516_vm0, %v5833_v41  ;;  %vm3008_vm0 = vcmask 1046528  }
 0x4c6   : > { %1718 = vmatprep.mubr.bf16.mxu1 %v4703_v57 }
 0x4cb   : > { %4388 = vmatmul.mubr.msk.bf16.gmra.mrb[76].mxu0 %vm7577_vm6, %v5833_v41  ;;  %v6029_v41 = vpop.permute.xlu1 %2918  ;;  %vm7656_vm6 = vmmov %vm7634_vm1 }
 0x4cc   : > { %4391 = vmatprep.mubr.msk.bf16.mxu0 %vm7578_vm10, %v5871_v4  ;;  %7582 = vst [vmem:[#allocation4_spill] sm:$0xff] %v6029_v41  ;;  %vm7657_vm10 = vmmov %vm7634_vm1 }
 0x4cd   : > { %4224 = vmatmul.mubr.msk.bf16.gmra.mrb[76].mxu1 %vm7579_vm13, %v5871_v4  ;;  %vm7658_vm13 = vmmov %vm7634_vm1 }
 0x4ce   : > { %1728 = vmatprep.mubr.bf16.mxu1 %v4703_v57  ;;  %v6039_v57 = vpop.permute.xlu0 %2938 }
 0x4cf   : > { %v6033_v60 = vpop.permute.xlu1 %2926  ;;  %7587 = vst [vmem:[#allocation9_spill] sm:$0xff] %v6039_v57 }
 0x4d0   : > { %7584 = vst [vmem:[#allocation6_spill] sm:$0xff] %v6033_v60 }
 0x4d2   : > { %v6043_v2 = vpop.permute.xlu0 %2946 }
 0x4d3   : > { %4392 = vmatmul.mubr.msk.bf16.gmra.mrb[80].mxu0 %vm7580_vm2, %v5890_v54  ;;  %v6037_v4 = vpop.permute.xlu1 %2934  ;;  %7589 = vst [vmem:[#allocation11_spill] sm:$0xff] %v6043_v2  ;;  %vm7659_vm2 = vmmov %vm7634_vm1 }
 0x4d4   : > { %7586 = vst [vmem:[#allocation8_spill] sm:$0xff] %v6037_v4 }
 0x4d5   : > { %4225 = vmatmul.mubr.msk.bf16.gmra.mrb[80].mxu1 %vm7581_vm7, %v5890_v54  ;;  %vm3171_vm7 = vcmask 1040384  }
 0x4d6   : > { %v6047_v46 = vpop.permute.xlu0 %2954 }
 0x4d7   : > { %v6041_v9 = vpop.permute.xlu1 %2942  ;;  %7591 = vst [vmem:[#allocation13_spill] sm:$0xff] %v6047_v46 }
 0x4d8   : > { %7588 = vst [vmem:[#allocation10_spill] sm:$0xff] %v6041_v9 }
 0x4da   : > { %v6051_v22 = vpop.permute.xlu0 %2962 }
 0x4db   : > { %v6045_v39 = vpop.permute.xlu1 %2950  ;;  %7593 = vst [vmem:[#allocation15_spill] sm:$0xff] %v6051_v22 }
 0x4dc   : > { %7590 = vst [vmem:[#allocation12_spill] sm:$0xff] %v6045_v39 }
 0x4de   : > { %v6055_v52 = vpop.permute.xlu0 %2970 }
 0x4df   : > { %v6049_v54 = vpop.permute.xlu1 %2958  ;;  %7595 = vst [vmem:[#allocation17_spill] sm:$0xff] %v6055_v52 }
 0x4e0   : > { %7592 = vst [vmem:[#allocation14_spill] sm:$0xff] %v6049_v54 }
 0x4e2   : > { %v6059_v5 = vpop.permute.xlu0 %2978 }
 0x4e3   : > { %v6053_v49 = vpop.permute.xlu1 %2966  ;;  %7597 = vst [vmem:[#allocation19_spill] sm:$0xff] %v6059_v5 }
 0x4e4   : > { %7594 = vst [vmem:[#allocation16_spill] sm:$0xff] %v6053_v49 }
 0x4e6   : > { %v6063_v36 = vpop.permute.xlu0 %2986 }
 0x4e7   : > { %v6057_v50 = vpop.permute.xlu1 %2974 }
 0x4e8   : > { %7596 = vst [vmem:[#allocation18_spill] sm:$0xff] %v6057_v50 }
 0x4ea   : > { %v6069_v1 = vpop.permute.xlu0 %2994 }
 0x4eb   : > { %v6061_v33 = vpop.permute.xlu1 %2982 }
 0x4ee   : > { %v6089_v59 = vpop.permute.xlu0 %3002 }
 0x4ef   : > { %v6065_v51 = vpop.permute.xlu1 %2990 }
 0x4f2   : > { %v6109_v18 = vpop.permute.xlu0 %3399 }
 0x4f3   : > { %v6084_v56 = vpop.permute.xlu1 %2998  ;;  %7598 = vst [vmem:[#allocation20_spill] sm:$0xff] %v6109_v18 }
 0x4f6   : > { %v6123_v48 = vpop.permute.xlu0 %3407 }
 0x4f7   : > { %v6103_v43 = vpop.permute.xlu1 %3006  ;;  %7600 = vst [vmem:[#allocation22_spill] sm:$0xff] %v6123_v48 }
 0x4fb   : > { %v6119_v47 = vpop.permute.xlu1 %3403 }
 0x4fc   : > { %7599 = vst [vmem:[#allocation21_spill] sm:$0xff] %v6119_v47 }
 0x4ff   : > { %v6129_v20 = vpop.permute.xlu1 %3411 }
 0x500   : > { %7602 = vst [vmem:[#allocation24_spill] sm:$0xff] %v6129_v20 }
 0x50e   : > { %v6067_v12 = vpop.f32.mrb[4].mxu0 }
 0x50f   : > { %1930 = vst [vmem:[#allocation2 + $0x78] sm:$0xff] %v6067_v12  ;;  %v1389_v44 = vpop.f32.mrb[5].mxu0 }
 0x510   : > { %v6072_v17 = vpop.f32.mrb[4].mxu1  ;;  %1931 = vst [vmem:[#allocation2 + $0x80] sm:$0xff] %v1389_v44  ;;  %v6074_v40 = vpop.f32.mrb[6].mxu0  ;;  %2416 = vrot.lane.b32.xlu1 %v1389_v44, %s4704_s12 }
 0x511   : > { %2050 = vst [vmem:[#allocation2 + $0x438] sm:$0xff] %v6072_v17  ;;  %v1509_v13 = vpop.f32.mrb[5].mxu1  ;;  %1935 = vst [vmem:[#allocation2 + $0xa0] sm:$0xff] %v6074_v40  ;;  %v1393_v15 = vpop.f32.mrb[7].mxu0 }
 0x512   : > { %2051 = vst [vmem:[#allocation2 + $0x440] sm:$0xff] %v1509_v13  ;;  %v6079_v63 = vpop.f32.mrb[6].mxu1  ;;  %1936 = vst [vmem:[#allocation2 + $0xa8] sm:$0xff] %v1393_v15  ;;  %2418 = vrot.lane.b32.xlu0 %v1393_v15, %s4704_s12 }
 0x513   : > { %2055 = vst [vmem:[#allocation2 + $0x460] sm:$0xff] %v6079_v63  ;;  %v1513_v29 = vpop.f32.mrb[7].mxu1 }
 0x514   : > { %2056 = vst [vmem:[#allocation2 + $0x468] sm:$0xff] %v1513_v29  ;;  %2464 = vrot.lane.b32.xlu1 %v1509_v13, %s4704_s12 }
 0x516   : > { %v6086_v16 = vpop.f32.mrb[8].mxu0  ;;  %2466 = vrot.lane.b32.xlu0 %v1513_v29, %s4704_s12 }
 0x517   : > { %1940 = vst [vmem:[#allocation2 + $0xc8] sm:$0xff] %v6086_v16  ;;  %v1399_v7 = vpop.f32.mrb[9].mxu0 }
 0x518   : > { %v6092_v6 = vpop.f32.mrb[8].mxu1  ;;  %1941 = vst [vmem:[#allocation2 + $0xd0] sm:$0xff] %v1399_v7  ;;  %v6094_v31 = vpop.f32.mrb[10].mxu0  ;;  %2420 = vrot.lane.b32.xlu1 %v1399_v7, %s4704_s12 }
 0x519   : > { %2060 = vst [vmem:[#allocation2 + $0x488] sm:$0xff] %v6092_v6  ;;  %v1519_v45 = vpop.f32.mrb[9].mxu1  ;;  %1945 = vst [vmem:[#allocation2 + $0xf0] sm:$0xff] %v6094_v31  ;;  %v1403_v55 = vpop.f32.mrb[11].mxu0 }
 0x51a   : > { %2061 = vst [vmem:[#allocation2 + $0x490] sm:$0xff] %v1519_v45  ;;  %v6099_v19 = vpop.f32.mrb[10].mxu1  ;;  %1946 = vst [vmem:[#allocation2 + $0xf8] sm:$0xff] %v1403_v55  ;;  %2422 = vrot.lane.b32.xlu0 %v1403_v55, %s4704_s12  ;;  %v6135_v7 = vpop.permute.xlu0 %3415 }
 0x51b   : > { %2065 = vst [vmem:[#allocation2 + $0x4b0] sm:$0xff] %v6099_v19  ;;  %v1523_v34 = vpop.f32.mrb[11].mxu1  ;;  %7604 = vst [vmem:[#allocation26_spill] sm:$0xff] %v6135_v7  ;;  %v6138_v55 = vpop.permute.xlu1 %3419 }
 0x51c   : > { %2066 = vst [vmem:[#allocation2 + $0x4b8] sm:$0xff] %v1523_v34  ;;  %2468 = vrot.lane.b32.xlu1 %v1519_v45, %s4704_s12  ;;  %7605 = vst [vmem:[#allocation27_spill] sm:$0xff] %v6138_v55 }
 0x51e   : > { %v6106_v24 = vpop.f32.mrb[12].mxu0  ;;  %2470 = vrot.lane.b32.xlu0 %v1523_v34, %s4704_s12 }
 0x51f   : > { %1950 = vst [vmem:[#allocation2 + $0x118] sm:$0xff] %v6106_v24  ;;  %v1409_v62 = vpop.f32.mrb[13].mxu0 }
 0x520   : > { %v6112_v30 = vpop.f32.mrb[12].mxu1  ;;  %1951 = vst [vmem:[#allocation2 + $0x120] sm:$0xff] %v1409_v62  ;;  %v6114_v35 = vpop.f32.mrb[14].mxu0  ;;  %2424 = vrot.lane.b32.xlu1 %v1409_v62, %s4704_s12 }
 0x521   : > { %2070 = vst [vmem:[#allocation2 + $0x4d8] sm:$0xff] %v6112_v30  ;;  %v1529_v11 = vpop.f32.mrb[13].mxu1  ;;  %1955 = vst [vmem:[#allocation2 + $0x140] sm:$0xff] %v6114_v35  ;;  %v1413_v27 = vpop.f32.mrb[15].mxu0 }
 0x522   : > { %2071 = vst [vmem:[#allocation2 + $0x4e0] sm:$0xff] %v1529_v11  ;;  %v1531_v14 = vpop.f32.mrb[14].mxu1  ;;  %1956 = vst [vmem:[#allocation2 + $0x148] sm:$0xff] %v1413_v27  ;;  %2426 = vrot.lane.b32.xlu0 %v1413_v27, %s4704_s12 }
 0x523   : > { %2075 = vst [vmem:[#allocation2 + $0x500] sm:$0xff] %v1531_v14  ;;  %v1533_v25 = vpop.f32.mrb[15].mxu1 }
 0x524   : > { %2076 = vst [vmem:[#allocation2 + $0x508] sm:$0xff] %v1533_v25  ;;  %2472 = vrot.lane.b32.xlu1 %v1529_v11, %s4704_s12 }
 0x526   : > { %v6125_v38 = vpop.f32.mrb[16].mxu0  ;;  %2474 = vrot.lane.b32.xlu0 %v1533_v25, %s4704_s12  ;;  %v6140_v25 = vpop.permute.xlu0 %3423 }
 0x527   : > { %7601 = vst [vmem:[#allocation23_spill] sm:$0xff] %v6125_v38  ;;  %1960 = vst [vmem:[#allocation2 + $0x168] sm:$0xff] %v6125_v38  ;;  %v1419_v42 = vpop.f32.mrb[17].mxu0 }
 0x528   : > { %1961 = vst [vmem:[#allocation2 + $0x170] sm:$0xff] %v1419_v42  ;;  %v6131_v21 = vpop.f32.mrb[18].mxu0  ;;  %2428 = vrot.lane.b32.xlu1 %v1419_v42, %s4704_s12  ;;  %v1537_v44 = vpop.f32.mrb[16].mxu1  ;;  %7606 = vst [vmem:[#allocation28_spill] sm:$0xff] %v6140_v25 }
 0x529   : > { %7603 = vst [vmem:[#allocation25_spill] sm:$0xff] %v6131_v21  ;;  %1965 = vst [vmem:[#allocation2 + $0x190] sm:$0xff] %v6131_v21  ;;  %v1423_v13 = vpop.f32.mrb[19].mxu0  ;;  %v1539_v15 = vpop.f32.mrb[17].mxu1 }
 0x52a   : > { %1966 = vst [vmem:[#allocation2 + $0x198] sm:$0xff] %v1423_v13  ;;  %2081 = vst [vmem:[#allocation2 + $0x530] sm:$0xff] %v1539_v15  ;;  %v1541_v29 = vpop.f32.mrb[18].mxu1  ;;  %v6146_v50 = vpop.permute.xlu0 %3431 }
 0x52b   : > { %v1543_v45 = vpop.f32.mrb[19].mxu1  ;;  %7608 = vst [vmem:[#allocation30_spill] sm:$0xff] %v6146_v50 }
 0x52c   : > { %2476 = vrot.lane.b32.xlu1 %v1539_v15, %s4704_s12  ;;  %2086 = vst [vmem:[#allocation2 + $0x558] sm:$0xff] %v1543_v45  ;;  %v6143_v15 = vpop.permute.xlu1 %3427 }
 0x52d   : > { %7607 = vst [vmem:[#allocation29_spill] sm:$0xff] %v6143_v15 }
 0x52e   : > { %v1427_v34 = vpop.f32.mrb[20].mxu0  ;;  %v6161_v54 = vpop.permute.xlu0 %3439 }
 0x52f   : > { %1970 = vst [vmem:[#allocation2 + $0x1b8] sm:$0xff] %v1427_v34  ;;  %v1429_v62 = vpop.f32.mrb[21].mxu0  ;;  %7610 = vst [vmem:[#allocation32_spill] sm:$0xff] %v6161_v54 }
 0x530   : > { %1971 = vst [vmem:[#allocation2 + $0x1c0] sm:$0xff] %v1429_v62  ;;  %v1431_v11 = vpop.f32.mrb[22].mxu0  ;;  %v1580_v27 = vpop.f32.mrb[20].mxu1 }
 0x531   : > { %1975 = vst [vmem:[#allocation2 + $0x1e0] sm:$0xff] %v1431_v11  ;;  %v1433_v14 = vpop.f32.mrb[23].mxu0  ;;  %1932 = vst [vmem:[#allocation2 + $0x88] sm:$0xff] %v1580_v27  ;;  %v1582_v42 = vpop.f32.mrb[21].mxu1  ;;  %2154 = vrot.lane.b32.xlu0 %v1580_v27, %s4704_s12 }
 0x532   : > { %1976 = vst [vmem:[#allocation2 + $0x1e8] sm:$0xff] %v1433_v14  ;;  %v1584_v44 = vpop.f32.mrb[22].mxu1  ;;  %v6150_v49 = vpop.permute.xlu1 %3435 }
 0x533   : > { %v1586_v29 = vpop.f32.mrb[23].mxu1  ;;  %7609 = vst [vmem:[#allocation31_spill] sm:$0xff] %v6150_v49  ;;  %v2380_v22 = vld [vmem:[#allocation2 + $0x558] sm:$0x7f] }
 0x534   : > { %1938 = vst [vmem:[#allocation2 + $0xb8] sm:$0xff] %v1586_v29 }
 0x535   : > { %2156 = vrot.lane.b32.xlu0 %v1584_v44, %s4704_s12 }
 0x536   : > { %v1437_v45 = vpop.f32.mrb[24].mxu0 }
 0x537   : > { %1980 = vst [vmem:[#allocation2 + $0x208] sm:$0xff] %v1437_v45  ;;  %v1439_v34 = vpop.f32.mrb[25].mxu0 }
 0x538   : > { %1981 = vst [vmem:[#allocation2 + $0x210] sm:$0xff] %v1439_v34  ;;  %v1441_v11 = vpop.f32.mrb[26].mxu0  ;;  %v1590_v52 = vpop.f32.mrb[24].mxu1 }
 0x539   : > { %1985 = vst [vmem:[#allocation2 + $0x230] sm:$0xff] %v1441_v11  ;;  %v6148_v42 = vpop.f32.mrb[27].mxu0  ;;  %v6152_v27 = vpop.f32.mrb[25].mxu1  ;;  %2158 = vrot.lane.b32.xlu1 %v1590_v52, %s4704_s12  ;;  %2430 = vrot.lane.b32.xlu0 %v1423_v13, %s4704_s12  ;;  %v2584_v11 = vld [vmem:[#allocation2 + $0x88] sm:$0xfe] }
 0x53a   : > { %1986 = vst [vmem:[#allocation2 + $0x238] sm:$0xff] %v6148_v42  ;;  %1943 = vst [vmem:[#allocation2 + $0xe0] sm:$0xff] %v6152_v27  ;;  %v1594_v29 = vpop.f32.mrb[26].mxu1  ;;  %v6167_v13 = vpop.permute.xlu1 %3443 }
 0x53b   : > { %v6158_v45 = vpop.f32.mrb[27].mxu1  ;;  %7611 = vst [vmem:[#allocation33_spill] sm:$0xff] %v6167_v13 }
 0x53c   : > { %1948 = vst [vmem:[#allocation2 + $0x108] sm:$0xff] %v6158_v45 }
 0x53d   : > { %2650 = vrot.lane.b32.xlu1 %v2584_v11, %s4704_s12  ;;  %2478 = vrot.lane.b32.xlu0 %v2380_v22, %s4704_s12  ;;  %v6177_v22 = vpop.permute.xlu0 %3447 }
 0x53e   : > { %v1447_v46 = vpop.f32.mrb[28].mxu0  ;;  %7612 = vst [vmem:[#allocation34_spill] sm:$0xff] %v6177_v22  ;;  %v6181_v13 = vpop.permute.xlu1 %3451 }
 0x53f   : > { %1990 = vst [vmem:[#allocation2 + $0x258] sm:$0xff] %v1447_v46  ;;  %v6165_v49 = vpop.f32.mrb[29].mxu0  ;;  %7613 = vst [vmem:[#allocation35_spill] sm:$0xff] %v6181_v13 }
 0x540   : > { %1991 = vst [vmem:[#allocation2 + $0x260] sm:$0xff] %v6165_v49  ;;  %v1451_v18 = vpop.f32.mrb[30].mxu0  ;;  %v1600_v39 = vpop.f32.mrb[28].mxu1 }
 0x541   : > { %1995 = vst [vmem:[#allocation2 + $0x280] sm:$0xff] %v1451_v18  ;;  %v6170_v50 = vpop.f32.mrb[31].mxu0  ;;  %v6172_v2 = vpop.f32.mrb[29].mxu1  ;;  %2432 = vrot.lane.b32.xlu1 %v1429_v62, %s4704_s12  ;;  %2652 = vrot.lane.b32.xlu0 %v1584_v44, %s4704_s12 }
 0x542   : > { %1996 = vst [vmem:[#allocation2 + $0x288] sm:$0xff] %v6170_v50  ;;  %v1604_v46 = vpop.f32.mrb[30].mxu1  ;;  %v6190_v22 = vpop.permute.xlu0 %3455 }
 0x543   : > { %v6179_v11 = vpop.f32.mrb[31].mxu1  ;;  %7614 = vst [vmem:[#allocation36_spill] sm:$0xff] %v6190_v22 }
 0x545   : > { %2160 = vrot.lane.b32.xlu1 %v1594_v29, %s4704_s12  ;;  %2434 = vrot.lane.b32.xlu0 %v1433_v14, %s4704_s12 }
 0x546   : > { %v1457_v18 = vpop.f32.mrb[32].mxu0  ;;  %v6205_v5 = vpop.permute.xlu0 %3463 }
 0x547   : > { %2000 = vst [vmem:[#allocation2 + $0x2a8] sm:$0xff] %v1457_v18  ;;  %v6185_v54 = vpop.f32.mrb[33].mxu0  ;;  %v6197_v18 = vpop.permute.xlu1 %3459  ;;  %7616 = vst [vmem:[#allocation38_spill] sm:$0xff] %v6205_v5 }
 0x548   : > { %2001 = vst [vmem:[#allocation2 + $0x2b0] sm:$0xff] %v6185_v54  ;;  %v1461_v62 = vpop.f32.mrb[34].mxu0  ;;  %v1610_v15 = vpop.f32.mrb[32].mxu1  ;;  %7615 = vst [vmem:[#allocation37_spill] sm:$0xff] %v6197_v18 }
 0x549   : > { %2005 = vst [vmem:[#allocation2 + $0x2d0] sm:$0xff] %v1461_v62  ;;  %v6188_v44 = vpop.f32.mrb[35].mxu0  ;;  %v6192_v9 = vpop.f32.mrb[33].mxu1  ;;  %2654 = vrot.lane.b32.xlu1 %v1590_v52, %s4704_s12  ;;  %2162 = vrot.lane.b32.xlu0 %v1600_v39, %s4704_s12 }
 0x54a   : > { %2006 = vst [vmem:[#allocation2 + $0x2d8] sm:$0xff] %v6188_v44  ;;  %v1614_v14 = vpop.f32.mrb[34].mxu1 }
 0x54b   : > { %v6199_v13 = vpop.f32.mrb[35].mxu1  ;;  %v6212_v18 = vpop.permute.xlu1 %3467 }
 0x54c   : > { %7617 = vst [vmem:[#allocation39_spill] sm:$0xff] %v6212_v18 }
 0x54d   : > { %2436 = vrot.lane.b32.xlu1 %v1439_v34, %s4704_s12  ;;  %2656 = vrot.lane.b32.xlu0 %v1594_v29, %s4704_s12 }
 0x54e   : > { %v1467_v62 = vpop.f32.mrb[36].mxu0 }
 0x54f   : > { %2010 = vst [vmem:[#allocation2 + $0x2f8] sm:$0xff] %v1467_v62  ;;  %v6203_v22 = vpop.f32.mrb[37].mxu0  ;;  %v6224_v62 = vpop.permute.xlu0 %3471 }
 0x550   : > { %2011 = vst [vmem:[#allocation2 + $0x300] sm:$0xff] %v6203_v22  ;;  %v1471_v52 = vpop.f32.mrb[38].mxu0  ;;  %v6208_v25 = vpop.f32.mrb[36].mxu1  ;;  %7619 = vst [vmem:[#allocation41_spill] sm:$0xff] %v6224_v62 }
 0x551   : > { %2015 = vst [vmem:[#allocation2 + $0x320] sm:$0xff] %v1471_v52  ;;  %v6210_v57 = vpop.f32.mrb[39].mxu0  ;;  %v6214_v55 = vpop.f32.mrb[37].mxu1  ;;  %2164 = vrot.lane.b32.xlu1 %v1604_v46, %s4704_s12  ;;  %2438 = vrot.lane.b32.xlu0 %v6148_v42, %s4704_s12 }
 0x552   : > { %2016 = vst [vmem:[#allocation2 + $0x328] sm:$0xff] %v6210_v57  ;;  %v6220_v34 = vpop.f32.mrb[38].mxu1  ;;  %v6230_v5 = vpop.permute.xlu1 %3475 }
 0x553   : > { %v6222_v29 = vpop.f32.mrb[39].mxu1  ;;  %7620 = vst [vmem:[#allocation42_spill] sm:$0xff] %v6230_v5 }
 0x554   : > { %7618 = vst [vmem:[#allocation40_spill] sm:$0xff] %v6222_v29 }
 0x555   : > { %2658 = vrot.lane.b32.xlu1 %v1600_v39, %s4704_s12  ;;  %2166 = vrot.lane.b32.xlu0 %v1610_v15, %s4704_s12 }
 0x556   : > { %v1477_v52 = vpop.f32.mrb[40].mxu0 }
 0x557   : > { %2020 = vst [vmem:[#allocation2 + $0x348] sm:$0xff] %v1477_v52  ;;  %v6228_v18 = vpop.f32.mrb[41].mxu0  ;;  %v6245_v52 = vpop.permute.xlu0 %3479 }
 0x558   : > { %2021 = vst [vmem:[#allocation2 + $0x350] sm:$0xff] %v6228_v18  ;;  %v1481_v4 = vpop.f32.mrb[42].mxu0  ;;  %v6233_v42 = vpop.f32.mrb[40].mxu1  ;;  %7622 = vst [vmem:[#allocation44_spill] sm:$0xff] %v6245_v52 }
 0x559   : > { %2025 = vst [vmem:[#allocation2 + $0x370] sm:$0xff] %v1481_v4  ;;  %v6235_v7 = vpop.f32.mrb[43].mxu0  ;;  %v6237_v32 = vpop.f32.mrb[41].mxu1  ;;  %2440 = vrot.lane.b32.xlu1 %v6165_v49, %s4704_s12  ;;  %2660 = vrot.lane.b32.xlu0 %v1604_v46, %s4704_s12 }
 0x55a   : > { %7621 = vst [vmem:[#allocation43_spill] sm:$0xff] %v6237_v32  ;;  %2026 = vst [vmem:[#allocation2 + $0x378] sm:$0xff] %v6235_v7  ;;  %v6243_v39 = vpop.f32.mrb[42].mxu1  ;;  %v6250_v4 = vpop.permute.xlu1 %3483 }
 0x55b   : > { %v6247_v5 = vpop.f32.mrb[43].mxu1  ;;  %7624 = vst [vmem:[#allocation46_spill] sm:$0xff] %v6250_v4  ;;  %v6262_v60 = vpop.permute.xlu0 %3487 }
 0x55c   : > { %7623 = vst [vmem:[#allocation45_spill] sm:$0xff] %v6247_v5  ;;  %1988 = vst [vmem:[#allocation2 + $0x248] sm:$0xff] %v6247_v5 }
 0x55d   : > { %2168 = vrot.lane.b32.xlu1 %v1614_v14, %s4704_s12  ;;  %2442 = vrot.lane.b32.xlu0 %v6170_v50, %s4704_s12  ;;  %7625 = vst [vmem:[#allocation47_spill] sm:$0xff] %v6262_v60 }
 0x55e   : > { %v1487_v49 = vpop.f32.mrb[44].mxu0 }
 0x55f   : > { %2030 = vst [vmem:[#allocation2 + $0x398] sm:$0xff] %v1487_v49  ;;  %v6255_v62 = vpop.f32.mrb[45].mxu0  ;;  %v6273_v49 = vpop.permute.xlu1 %3491 }
 0x560   : > { %2031 = vst [vmem:[#allocation2 + $0x3a0] sm:$0xff] %v6255_v62  ;;  %v1491_v46 = vpop.f32.mrb[46].mxu0  ;;  %v6258_v20 = vpop.f32.mrb[44].mxu1  ;;  %7627 = vst [vmem:[#allocation49_spill] sm:$0xff] %v6273_v49 }
 0x561   : > { %2035 = vst [vmem:[#allocation2 + $0x3c0] sm:$0xff] %v1491_v46  ;;  %v6260_v52 = vpop.f32.mrb[47].mxu0  ;;  %v6264_v4 = vpop.f32.mrb[45].mxu1  ;;  %2662 = vrot.lane.b32.xlu1 %v1610_v15, %s4704_s12  ;;  %2170 = vrot.lane.b32.xlu0 %v6208_v25, %s4704_s12 }
 0x562   : > { %7626 = vst [vmem:[#allocation48_spill] sm:$0xff] %v6264_v4  ;;  %2036 = vst [vmem:[#allocation2 + $0x3c8] sm:$0xff] %v6260_v52  ;;  %v6271_v50 = vpop.f32.mrb[46].mxu1 }
 0x563   : > { %1993 = vst [vmem:[#allocation2 + $0x270] sm:$0xff] %v6264_v4  ;;  %v6275_v46 = vpop.f32.mrb[47].mxu1  ;;  %v6286_v4 = vpop.permute.xlu0 %3495 }
 0x564   : > { %7628 = vst [vmem:[#allocation50_spill] sm:$0xff] %v6275_v46  ;;  %1998 = vst [vmem:[#allocation2 + $0x298] sm:$0xff] %v6275_v46 }
 0x565   : > { %2444 = vrot.lane.b32.xlu1 %v6185_v54, %s4704_s12  ;;  %2664 = vrot.lane.b32.xlu0 %v1614_v14, %s4704_s12  ;;  %7629 = vst [vmem:[#allocation51_spill] sm:$0xff] %v6286_v4  ;;  %v6296_v54 = vpop.permute.xlu1 %3499 }
 0x566   : > { %v6281_v15 = vpop.f32.mrb[48].mxu0  ;;  %7630 = vst [vmem:[#allocation52_spill] sm:$0xff] %v6296_v54 }
 0x567   : > { %2040 = vst [vmem:[#allocation2 + $0x3e8] sm:$0xff] %v6281_v15  ;;  %v6284_v60 = vpop.f32.mrb[49].mxu0  ;;  %v6311_v5 = vpop.permute.xlu0 %3503 }
 0x568   : > { %2041 = vst [vmem:[#allocation2 + $0x3f0] sm:$0xff] %v6284_v60  ;;  %v6289_v49 = vpop.f32.mrb[50].mxu0  ;;  %v6291_v48 = vpop.f32.mrb[48].mxu1  ;;  %7633 = vst [vmem:[#allocation55_spill] sm:$0xff] %v6311_v5 }
 0x569   : > { %2045 = vst [vmem:[#allocation2 + $0x410] sm:$0xff] %v6289_v49  ;;  %v6294_v46 = vpop.f32.mrb[51].mxu0  ;;  %v6298_v14 = vpop.f32.mrb[49].mxu1  ;;  %2172 = vrot.lane.b32.xlu1 %v6220_v34, %s4704_s12  ;;  %2446 = vrot.lane.b32.xlu0 %v6188_v44, %s4704_s12 }
 0x56a   : > { %7631 = vst [vmem:[#allocation53_spill] sm:$0xff] %v6298_v14  ;;  %2046 = vst [vmem:[#allocation2 + $0x418] sm:$0xff] %v6294_v46  ;;  %v6306_v4 = vpop.f32.mrb[50].mxu1  ;;  %v6318_v21 = vpop.permute.xlu1 %3507 }
 0x56b   : > { %2003 = vst [vmem:[#allocation2 + $0x2c0] sm:$0xff] %v6298_v14  ;;  %v6308_v47 = vpop.f32.mrb[51].mxu1  ;;  %7635 = vst [vmem:[#allocation56_spill] sm:$0xff] %v6318_v21 }
 0x56c   : > { %7632 = vst [vmem:[#allocation54_spill] sm:$0xff] %v6308_v47  ;;  %2008 = vst [vmem:[#allocation2 + $0x2e8] sm:$0xff] %v6308_v47 }
 0x56d   : > { %2666 = vrot.lane.b32.xlu1 %v6208_v25, %s4704_s12  ;;  %2174 = vrot.lane.b32.xlu0 %v6233_v42, %s4704_s12 }
 0x56e   : > { %v4365_v54 = vpop.f32.mrb[52].mxu0 }
 0x56f   : > { %1944 = vst.msk [vmem:[#allocation2 + $0xe8] sm:$0xff] %vm7634_vm1, %v4365_v54  ;;  %v1773_v44 = vpop.f32.mrb[53].mxu0  ;;  %v6332_v54 = vpop.permute.xlu0 %3511 }
 0x570   : > { %v4366_v14 = vpop.f32.mrb[54].mxu0  ;;  %v6320_v8 = vpop.f32.mrb[52].mxu1  ;;  %7638 = vst [vmem:[#allocation58_spill] sm:$0xff] %v6332_v54 }
 0x571   : > { %1949 = vst.msk [vmem:[#allocation2 + $0x110] sm:$0xff] %vm7636_vm11, %v4366_v14  ;;  %v1776_v47 = vpop.f32.mrb[55].mxu0  ;;  %v6323_v32 = vpop.f32.mrb[53].mxu1  ;;  %2448 = vrot.lane.b32.xlu1 %v6203_v22, %s4704_s12  ;;  %2668 = vrot.lane.b32.xlu0 %v6220_v34, %s4704_s12  ;;  %vm7660_vm11 = vmmov %vm7634_vm1 }
 0x572   : > { %7637 = vst [vmem:[#allocation57_spill] sm:$0xff] %v6323_v32  ;;  %2013 = vst [vmem:[#allocation2 + $0x310] sm:$0xff] %v6323_v32  ;;  %v6330_v25 = vpop.f32.mrb[54].mxu1  ;;  %v6341_v22 = vpop.permute.xlu1 %3515 }
 0x573   : > { %v6334_v44 = vpop.f32.mrb[55].mxu1  ;;  %7640 = vst [vmem:[#allocation60_spill] sm:$0xff] %v6341_v22  ;;  %v6348_v5 = vpop.permute.xlu0 %3519 }
 0x574   : > { %7639 = vst [vmem:[#allocation59_spill] sm:$0xff] %v6334_v44  ;;  %2018 = vst [vmem:[#allocation2 + $0x338] sm:$0xff] %v6334_v44 }
 0x575   : > { %2176 = vrot.lane.b32.xlu1 %v6243_v39, %s4704_s12  ;;  %2450 = vrot.lane.b32.xlu0 %v6210_v57, %s4704_s12  ;;  %7644 = vst [vmem:[#allocation61_spill] sm:$0xff] %v6348_v5 }
 0x576   : > { %v4369_v47 = vpop.f32.mrb[56].mxu0 }
 0x577   : > { %1964 = vst.msk [vmem:[#allocation2 + $0x188] sm:$0xff] %vm7641_vm3, %v4369_v47  ;;  %v1789_v34 = vpop.f32.mrb[57].mxu0  ;;  %vm7661_vm3 = vmmov %vm7634_vm1 }
 0x578   : > { %1954 = vst.msk [vmem:[#allocation2 + $0x138] sm:$0xff] %vm7642_vm4, %v1789_v34  ;;  %v4370_v14 = vpop.f32.mrb[58].mxu0  ;;  %v6345_v54 = vpop.f32.mrb[56].mxu1  ;;  %vm7662_vm4 = vmmov %vm7634_vm1 }
 0x579   : > { %1969 = vst.msk [vmem:[#allocation2 + $0x1b0] sm:$0xff] %vm7643_vm8, %v4370_v14  ;;  %v1792_v21 = vpop.f32.mrb[59].mxu0  ;;  %v6350_v44 = vpop.f32.mrb[57].mxu1  ;;  %2670 = vrot.lane.b32.xlu1 %v6233_v42, %s4704_s12  ;;  %2178 = vrot.lane.b32.xlu0 %v6258_v20, %s4704_s12  ;;  %vm7663_vm8 = vmmov %vm7634_vm1 }
 0x57a   : > { %7645 = vst [vmem:[#allocation62_spill] sm:$0xff] %v6350_v44  ;;  %1959 = vst.msk [vmem:[#allocation2 + $0x160] sm:$0xff] %vm7646_vm14, %v1792_v21  ;;  %v6358_v57 = vpop.f32.mrb[58].mxu1  ;;  %v6362_v34 = vpop.permute.xlu1 %3523 }
 0x57b   : > { %2023 = vst [vmem:[#allocation2 + $0x360] sm:$0xff] %v6350_v44  ;;  %v6360_v47 = vpop.f32.mrb[59].mxu1  ;;  %7648 = vst [vmem:[#allocation64_spill] sm:$0xff] %v6362_v34  ;;  %v6369_v42 = vpop.permute.xlu0 %3886 }
 0x57c   : > { %7647 = vst [vmem:[#allocation63_spill] sm:$0xff] %v6360_v47  ;;  %2028 = vst [vmem:[#allocation2 + $0x388] sm:$0xff] %v6360_v47 }
 0x57d   : > { %2452 = vrot.lane.b32.xlu1 %v6228_v18, %s4704_s12  ;;  %2672 = vrot.lane.b32.xlu0 %v6243_v39, %s4704_s12  ;;  %7649 = vst [vmem:[#allocation65_spill] sm:$0xff] %v6369_v42  ;;  %v3010_v18 = vrot.slane %v5998_v58, 1  ;;  %vm7664_vm14 = vmmov %vm7634_vm1 }
 0x57e   : > { %v4373_v21 = vpop.f32.mrb[60].mxu0 }
 0x57f   : > { %1984 = vst.msk [vmem:[#allocation2 + $0x228] sm:$0xff] %vm7650_vm15, %v4373_v21  ;;  %v1805_v14 = vpop.f32.mrb[61].mxu0  ;;  %v6388_v21 = vld [vmem:[#allocation2 + $0x8] sm:$0xff]  ;;  %vm7665_vm15 = vmmov %vm7634_vm1 }
 0x580   : > { %1974 = vst.msk [vmem:[#allocation2 + $0x1d8] sm:$0xff] %vm7651_vm9, %v1805_v14  ;;  %v4374_v5 = vpop.f32.mrb[62].mxu0  ;;  %v6373_v22 = vpop.f32.mrb[60].mxu1  ;;  %v3012_v14 = vrot.slane %v5996_v26, 1  ;;  %vm7666_vm9 = vmmov %vm7634_vm1 }
 0x581   : > { %1989 = vst.msk [vmem:[#allocation2 + $0x250] sm:$0xff] %vm7652_vm12, %v4374_v5  ;;  %v1808_v34 = vpop.f32.mrb[63].mxu0  ;;  %v6378_v44 = vpop.f32.mrb[61].mxu1  ;;  %2180 = vrot.lane.b32.xlu1 %v6271_v50, %s4704_s12  ;;  %2454 = vrot.lane.b32.xlu0 %v6235_v7, %s4704_s12  ;;  %v7655_v7 = vrot.slane %v5987_v53, 1  ;;  %vm7667_vm12 = vmmov %vm7634_vm1 }
 0x582   : > { %7653 = vst [vmem:[#allocation66_spill] sm:$0xff] %v6378_v44  ;;  %1979 = vst.msk [vmem:[#allocation2 + $0x200] sm:$0xff] %vm7654_vm5, %v1808_v34  ;;  %v2417_v39 = vpop.permute.xlu1 %2416  ;;  %v6386_v5 = vpop.f32.mrb[62].mxu1 }
 0x583   : > { %2033 = vst [vmem:[#allocation2 + $0x3b0] sm:$0xff] %v6378_v44  ;;  %v2514_v58 = vadd.f32 %v6388_v21, %v2417_v39  ;;  %v1686_v47 = vpop.f32.mrb[63].mxu1  ;;  %v3011_v38 = vsel %vm3008_vm0, %v7655_v7, %v3010_v18  ;;  %vm7668_vm5 = vmmov %vm7634_vm1 }
 0x584   : > { %v2419_v42 = vpop.permute.xlu0 %2418  ;;  %2038 = vst [vmem:[#allocation2 + $0x3d8] sm:$0xff] %v1686_v47 }
 0x585   : > { %v2549_v34 = vadd.f32 %v2514_v58, %v6152_v27  ;;  %v2515_v32 = vadd.f32 %v6388_v21, %v2419_v42  ;;  %2674 = vrot.lane.b32.xlu1 %v6258_v20, %s4704_s12  ;;  %2182 = vrot.lane.b32.xlu0 %v6291_v48, %s4704_s12  ;;  %v3013_v42 = vsel %vm3008_vm0, %v3010_v18, %v3012_v14 }
 0x586   : > { %v4377_v39 = vpop.f32.mrb[64].mxu0  ;;  %v6401_v44 = vpop.permute.xlu1 %2464 }
 0x587   : > { %2004 = vst.msk [vmem:[#allocation2 + $0x2c8] sm:$0xff] %vm7656_vm6, %v4377_v39  ;;  %v1821_v26 = vpop.f32.mrb[65].mxu0  ;;  %v6404_v47 = vmul.f32 %v3011_v38, %v2549_v34  ;;  %v2550_v27 = vadd.f32 %v2515_v32, %v6158_v45  ;;  %v3014_v39 = vrot.slane %v6003_v0, 1  ;;  %v3016_v0 = vrot.slane %v6007_v10, 1  ;;  %vm7669_vm6 = vmmov %vm7634_vm1 }
 0x588   : > { %1994 = vst.msk [vmem:[#allocation2 + $0x278] sm:$0xff] %vm7657_vm10, %v1821_v26  ;;  %v4378_v58 = vpop.f32.mrb[66].mxu0  ;;  %v6409_v7 = vpop.permute.xlu0 %2466  ;;  %vm7670_vm10 = vmmov %vm7634_vm1 }
 0x589   : > { %v6411_v20 = vpop.f32.mrb[64].mxu1  ;;  %2009 = vst.msk [vmem:[#allocation2 + $0x2f0] sm:$0xff] %vm7658_vm13, %v4378_v58  ;;  %v1824_v53 = vpop.f32.mrb[67].mxu0  ;;  %v3107_v41 = vmul.f32 %v3013_v42, %v2550_v27  ;;  %2456 = vrot.lane.b32.xlu1 %v6255_v62, %s4704_s12  ;;  %2676 = vrot.lane.b32.xlu0 %v6271_v50, %s4704_s12  ;;  %v7467_v45 = vrot.slane %v6404_v47, 7  ;;  %v3015_v50 = vsel %vm3008_vm0, %v3012_v14, %v3014_v39  ;;  %vm7671_vm13 = vmmov %vm7634_vm1 }
 0x58a   : > { %v1692_v29 = vpop.f32.mrb[65].mxu1  ;;  %1999 = vst.msk [vmem:[#allocation2 + $0x2a0] sm:$0xff] %vm7659_vm2, %v1824_v53  ;;  %v2421_v32 = vpop.permute.xlu1 %2420  ;;  %v3017_v58 = vsel %vm3008_vm0, %v3014_v39, %v3016_v0  ;;  %vm7672_vm2 = vmmov %vm7634_vm1 }
 0x58b   : > { %2043 = vst [vmem:[#allocation2 + $0x400] sm:$0xff] %v1692_v29  ;;  %v6420_v38 = vpop.f32.mrb[66].mxu1  ;;  %v3175_v18 = vrot.slane %v3107_v41, 7  ;;  %v2516_v34 = vadd.f32 %v2421_v32, %v6067_v12 }
 0x58c   : > { %v1696_v26 = vpop.f32.mrb[67].mxu1  ;;  %v2423_v27 = vpop.permute.xlu0 %2422 }
 0x58d   : > { %2048 = vst [vmem:[#allocation2 + $0x428] sm:$0xff] %v1696_v26  ;;  %v2551_v53 = vadd.f32 %v2516_v34, %v6172_v2  ;;  %v2517_v62 = vadd.f32 %v2423_v27, %v6074_v40  ;;  %v6430_v29 = vsel %vm3171_vm7, %v7467_v45, %v3175_v18  ;;  %2184 = vrot.lane.b32.xlu1 %v6306_v4, %s4704_s12 }
 0x58e   : > { %2458 = vrot.lane.b32.xlu0 %v6260_v52, %s4704_s12  ;;  %v4381_v10 = vpop.f32.mrb[68].mxu0  ;;  %v6437_v41 = vpop.permute.xlu1 %2468 }
 0x58f   : > { %2024 = vst.msk [vmem:[#allocation2 + $0x368] sm:$0xff] %vm7634_vm1, %v4381_v10  ;;  %v1837_v12 = vpop.f32.mrb[69].mxu0  ;;  %v3108_v40 = vmul.f32 %v3015_v50, %v2551_v53  ;;  %v2552_v42 = vadd.f32 %v2517_v62, %v6179_v11  ;;  %v3018_v10 = vrot.slane %v6012_v3, 1  ;;  %v3020_v3 = vrot.slane %v6016_v37, 1 }
 0x590   : > { %2014 = vst.msk [vmem:[#allocation2 + $0x318] sm:$0xff] %vm7660_vm11, %v1837_v12  ;;  %v4382_v14 = vpop.f32.mrb[70].mxu0  ;;  %v6443_v32 = vpop.permute.xlu0 %2470  ;;  %vm7674_vm11 = vmmov %vm7634_vm1 }
 0x591   : > { %v6445_v34 = vpop.f32.mrb[68].mxu1  ;;  %2029 = vst.msk [vmem:[#allocation2 + $0x390] sm:$0xff] %vm7661_vm3, %v4382_v14  ;;  %v1840_v52 = vpop.f32.mrb[71].mxu0  ;;  %v3177_v26 = vrot.slane %v3108_v40, 7  ;;  %v3109_v27 = vmul.f32 %v3017_v58, %v2552_v42  ;;  %2678 = vrot.lane.b32.xlu1 %v6291_v48, %s4704_s12 }
 0x592   : > { %v1702_v45 = vpop.f32.mrb[69].mxu1  ;;  %2019 = vst.msk [vmem:[#allocation2 + $0x340] sm:$0xff] %vm7662_vm4, %v1840_v52  ;;  %2186 = vrot.lane.b32.xlu0 %v6320_v8, %s4704_s12  ;;  %v2425_v39 = vpop.permute.xlu1 %2424 }
 0x593   : > { %2053 = vst [vmem:[#allocation2 + $0x450] sm:$0xff] %v1702_v45  ;;  %v6454_v53 = vpop.f32.mrb[70].mxu1  ;;  %v3179_v62 = vrot.slane %v3109_v27, 7  ;;  %v2518_v50 = vadd.f32 %v2425_v39, %v6086_v16  ;;  %v6458_v12 = vsel %vm3171_vm7, %v3175_v18, %v3177_v26  ;;  %v3019_v45 = vsel %vm3008_vm0, %v3016_v0, %v3018_v10 }
 0x594   : > { %v1706_v40 = vpop.f32.mrb[71].mxu1  ;;  %v2427_v42 = vpop.permute.xlu0 %2426 }
 0x595   : > { %2058 = vst [vmem:[#allocation2 + $0x478] sm:$0xff] %v1706_v40  ;;  %v2553_v48 = vadd.f32 %v2518_v50, %v6192_v9  ;;  %v2519_v58 = vadd.f32 %v2427_v42, %v6094_v31  ;;  %v6464_v14 = vsel %vm3171_vm7, %v3177_v26, %v3179_v62  ;;  %2460 = vrot.lane.b32.xlu1 %v6284_v60, %s4704_s12  ;;  %v3022_v40 = vrot.slane %v6021_v23, 1 }
 0x596   : > { %2680 = vrot.lane.b32.xlu0 %v6306_v4, %s4704_s12  ;;  %v4385_v16 = vpop.f32.mrb[72].mxu0  ;;  %v6471_v37 = vpop.permute.xlu1 %2472  ;;  %v3021_v26 = vsel %vm3008_vm0, %v3018_v10, %v3020_v3  ;;  %v2538_v60 = vadd.f32 %v6401_v44, %v6281_v15  ;;  %v2539_v42 = vadd.f32 %v6409_v7, %v6289_v49 }
 0x597   : > { %2044 = vst.msk [vmem:[#allocation2 + $0x408] sm:$0xff] %vm7663_vm8, %v4385_v16  ;;  %v1853_v18 = vpop.f32.mrb[73].mxu0  ;;  %v3110_v52 = vmul.f32 %v3019_v45, %v2553_v48  ;;  %v2554_v31 = vadd.f32 %v2519_v58, %v6199_v13 }
 0x598   : > { %2034 = vst.msk [vmem:[#allocation2 + $0x3b8] sm:$0xff] %vm7664_vm14, %v1853_v18  ;;  %v4386_v0 = vpop.f32.mrb[74].mxu0  ;;  %v6479_v27 = vpop.f32.mrb[72].mxu1 }
 0x599   : > { %2049 = vst.msk [vmem:[#allocation2 + $0x430] sm:$0xff] %vm7665_vm15, %v4386_v0  ;;  %v1856_v4 = vpop.f32.mrb[75].mxu0  ;;  %v3181_v39 = vrot.slane %v3110_v52, 7  ;;  %v3111_v50 = vmul.f32 %v3021_v26, %v2554_v31  ;;  %v1712_v48 = vpop.f32.mrb[73].mxu1  ;;  %2188 = vrot.lane.b32.xlu1 %v6330_v25, %s4704_s12  ;;  %v3023_v52 = vsel %vm3008_vm0, %v3020_v3, %v3022_v40  ;;  %v7471_v31 = vrot.slane %v6061_v33, 1 }
 0x59a   : > { %2039 = vst.msk [vmem:[#allocation2 + $0x3e0] sm:$0xff] %vm7666_vm9, %v1856_v4  ;;  %2462 = vrot.lane.b32.xlu0 %v6294_v46, %s4704_s12  ;;  %v2429_v15 = vpop.permute.xlu1 %2428  ;;  %2063 = vst [vmem:[#allocation2 + $0x4a0] sm:$0xff] %v1712_v48  ;;  %v6490_v44 = vpop.f32.mrb[74].mxu1  ;;  %v6496_v49 = vadd.f32 %v2538_v60, %v1712_v48  ;;  %v3062_v60 = vrot.slane %v6065_v51, 1  ;;  %v3064_v51 = vrot.slane %v6069_v1, 1 }
 0x59b   : > { %v3183_v10 = vrot.slane %v3111_v50, 7  ;;  %v2520_v58 = vadd.f32 %v2429_v15, %v6106_v24  ;;  %v6494_v45 = vsel %vm3171_vm7, %v3179_v62, %v3181_v39  ;;  %v1716_v7 = vpop.f32.mrb[75].mxu1  ;;  %v3060_v24 = vrot.slane %v6063_v36, 1  ;;  %v2475_v3 = vpop.permute.xlu0 %2474 }
 0x59c   : > { %2068 = vst [vmem:[#allocation2 + $0x4c8] sm:$0xff] %v1716_v7  ;;  %v2574_v46 = vadd.f32 %v2539_v42, %v1716_v7  ;;  %v2540_v36 = vadd.f32 %v6437_v41, %v6072_v17  ;;  %v2541_v41 = vadd.f32 %v6443_v32, %v6079_v63 }
 0x59d   : > { %v2555_v16 = vadd.f32 %v2520_v58, %v6214_v55  ;;  %v6500_v18 = vsel %vm3171_vm7, %v3181_v39, %v3183_v10  ;;  %2682 = vrot.lane.b32.xlu1 %v6320_v8, %s4704_s12  ;;  %v3061_v42 = vsel %vm3008_vm0, %v7471_v31, %v3060_v24 }
 0x59e   : > { %2190 = vrot.lane.b32.xlu0 %v6345_v54, %s4704_s12  ;;  %v4389_v62 = vpop.f32.mrb[76].mxu0  ;;  %v2477_v17 = vpop.permute.xlu1 %2476  ;;  %v6535_v58 = vmul.f32 %v3061_v42, %v2574_v46 }
 0x59f   : > { %2064 = vst.msk [vmem:[#allocation2 + $0x4a8] sm:$0xff] %vm7667_vm12, %v4389_v62  ;;  %v1869_v26 = vpop.f32.mrb[77].mxu0  ;;  %v6512_v0 = vmul.f32 %v3023_v52, %v2555_v16  ;;  %v3063_v16 = vsel %vm3008_vm0, %v3060_v24, %v3062_v60 }
 0x5a0   : > { %2054 = vst.msk [vmem:[#allocation2 + $0x458] sm:$0xff] %vm7668_vm5, %v1869_v26  ;;  %v4390_v4 = vpop.f32.mrb[78].mxu0  ;;  %v6518_v39 = vpop.f32.mrb[76].mxu1  ;;  %v3065_v26 = vsel %vm3008_vm0, %v3062_v60, %v3064_v51  ;;  %v7469_v24 = vrot.slane %v6535_v58, 7  ;;  %v3068_v60 = vrot.slane %v6089_v59, 1 }
 0x5a1   : > { %2069 = vst.msk [vmem:[#allocation2 + $0x4d0] sm:$0xff] %vm7669_vm6, %v4390_v4  ;;  %v1872_v8 = vpop.f32.mrb[79].mxu0  ;;  %v3185_v50 = vrot.slane %v6512_v0, 7  ;;  %v1722_v48 = vpop.f32.mrb[77].mxu1  ;;  %2192 = vrot.lane.b32.xlu1 %v6358_v57, %s4704_s12 }
 0x5a2   : > { %2059 = vst.msk [vmem:[#allocation2 + $0x480] sm:$0xff] %vm7670_vm10, %v1872_v8  ;;  %2684 = vrot.lane.b32.xlu0 %v6330_v25, %s4704_s12  ;;  %2073 = vst [vmem:[#allocation2 + $0x4f0] sm:$0xff] %v1722_v48  ;;  %v6533_v15 = vpop.f32.mrb[78].mxu1  ;;  %v2575_v7 = vadd.f32 %v2540_v36, %v1722_v48  ;;  %v2544_v25 = vadd.f32 %v2477_v17, %v6112_v30  ;;  %v3066_v30 = vrot.slane %v6084_v56, 1  ;;  %v7470_v8 = vrot.slane %v6103_v43, 1 }
 0x5a3   : > { %v6540_v1 = vsel %vm3171_vm7, %v3183_v10, %v3185_v50  ;;  %v1726_v52 = vpop.f32.mrb[79].mxu1  ;;  %v6543_v62 = vpop.permute.xlu0 %2154  ;;  %v2542_v48 = vadd.f32 %v6471_v37, %v6092_v6  ;;  %v2543_v6 = vadd.f32 %v2475_v3, %v6099_v19  ;;  %v4619_v19 = vld [vmem:[#allocation2 + $0x78] sm:$0xff] }
 0x5a4   : > { %2078 = vst [vmem:[#allocation2 + $0x518] sm:$0xff] %v1726_v52  ;;  %v3132_v63 = vmul.f32 %v3063_v16, %v2575_v7  ;;  %v2576_v32 = vadd.f32 %v2541_v41, %v1726_v52  ;;  %v2579_v41 = vadd.f32 %v6388_v21, %v2544_v25 }
 0x5a5   : > { %2686 = vrot.lane.b32.xlu1 %v6345_v54, %s4704_s12 }
 0x5a6   : > { %2194 = vrot.lane.b32.xlu0 %v6373_v22, %s4704_s12  ;;  %v4393_v10 = vpop.f32.mrb[80].mxu0  ;;  %v3225_v4 = vrot.slane %v3132_v63, 7  ;;  %v3133_v36 = vmul.f32 %v3065_v26, %v2576_v32  ;;  %v3024_v63 = vrot.slane %v6023_v28, 1  ;;  %v3067_v32 = vsel %vm3008_vm0, %v3064_v51, %v3066_v30 }
 0x5a7   : > { %2084 = vst.msk [vmem:[#allocation2 + $0x548] sm:$0xff] %vm7671_vm13, %v4393_v10  ;;  %v1885_v46 = vpop.f32.mrb[81].mxu0  ;;  %v6557_v54 = vpop.permute.xlu0 %2156  ;;  %v3071_v26 = vsel %vm3008_vm0, %v3068_v60, %v7470_v8 }
 0x5a8   : > { %2074 = vst.msk [vmem:[#allocation2 + $0x4f8] sm:$0xff] %vm7672_vm2, %v1885_v46  ;;  %7673 = vst [vmem:[#allocation67_spill] sm:$0xff] %v6557_v54  ;;  %v4394_v42 = vpop.f32.mrb[82].mxu0  ;;  %v6561_v17 = vpop.f32.mrb[80].mxu1  ;;  %v6568_v56 = vsel %vm3171_vm7, %v7469_v24, %v3225_v4  ;;  %v3227_v59 = vrot.slane %v3133_v36, 7  ;;  %v6586_v36 = vmul.f32 %v3071_v26, %v2579_v41 }
 0x5a9   : > { %2089 = vst.msk [vmem:[#allocation2 + $0x570] sm:$0xff] %vm7634_vm1, %v4394_v42  ;;  %v1888_v7 = vpop.f32.mrb[83].mxu0  ;;  %v1732_v16 = vpop.f32.mrb[81].mxu1  ;;  %2196 = vrot.lane.b32.xlu1 %v6386_v5, %s4704_s12 }
 0x5aa   : > { %2079 = vst.msk [vmem:[#allocation2 + $0x520] sm:$0xff] %vm7674_vm11, %v1888_v7  ;;  %2688 = vrot.lane.b32.xlu0 %v6358_v57, %s4704_s12  ;;  %2083 = vst [vmem:[#allocation2 + $0x540] sm:$0xff] %v1732_v16  ;;  %v6576_v37 = vpop.f32.mrb[82].mxu1  ;;  %v6579_v52 = vsel %vm3171_vm7, %v3225_v4, %v3227_v59  ;;  %v2577_v25 = vadd.f32 %v2542_v48, %v1732_v16  ;;  %v2346_v57 = vld [vmem:[#allocation2] sm:$0x80]  ;;  %v3069_v48 = vsel %vm3008_vm0, %v3066_v30, %v3068_v60 }
 0x5ab   : > { %v1736_v10 = vpop.f32.mrb[83].mxu1  ;;  %v2159_v46 = vpop.permute.xlu1 %2158  ;;  %v4689_v26 = vadd.low.f32.bf16 %v2346_v57, %v5989_v61  ;;  %v2546_v30 = vld [vmem:[#allocation2 + $0xb8] sm:$0x80] }
 0x5ac   : > { %2088 = vst [vmem:[#allocation2 + $0x568] sm:$0xff] %v1736_v10  ;;  %v2252_v3 = vadd.f32 %v4619_v19, %v2159_v46  ;;  %v2431_v42 = vpop.permute.xlu0 %2430  ;;  %v3134_v4 = vmul.f32 %v3067_v32, %v2577_v25  ;;  %v2578_v7 = vadd.f32 %v2543_v6, %v1736_v10  ;;  %v7676_v46 = vld [vmem:[#allocation40_spill] sm:$0xff] }
 0x5ad   : > { %v2521_v28 = vadd.f32 %v2431_v42, %v6114_v35  ;;  %2690 = vrot.lane.b32.xlu1 %v6373_v22, %s4704_s12  ;;  %v3025_v35 = vsel %vm3008_vm0, %v3022_v40, %v3024_v63  ;;  %v7468_v22 = vrot.slane %v6586_v36, 7  ;;  %v2548_v57 = vadd.f32 %v4689_v26, %v2546_v30  ;;  %v7677_v19 = vld [vmem:[#allocation4_spill] sm:$0xff] }
 0x5ae   : > { %2198 = vrot.lane.b32.xlu0 %v6411_v20, %s4704_s12  ;;  %v3229_v51 = vrot.slane %v3134_v4, 7  ;;  %v3135_v16 = vmul.f32 %v3069_v48, %v2578_v7  ;;  %v6595_v41 = vadd.f32 %v2252_v3, %v6172_v2  ;;  %v7678_v4 = vld [vmem:[#allocation23_spill] sm:$0xff] }
 0x5af   : > { %v2556_v25 = vadd.f32 %v2521_v28, %v7676_v46  ;;  %v6599_v6 = vpop.permute.xlu1 %2650  ;;  %v7679_v28 = vld [vmem:[#allocation43_spill] sm:$0xff] }
 0x5b0   : > { %7675 = vst [vmem:[#allocation68_spill] sm:$0xff] %v6595_v41  ;;  %v6605_v60 = vpop.permute.xlu0 %2478  ;;  %v6608_v32 = vsel %vm3171_vm7, %v3227_v59, %v3229_v51  ;;  %v3231_v2 = vrot.slane %v3135_v16, 7  ;;  %v3026_v59 = vrot.slane %v7677_v19, 1  ;;  %v7680_v16 = vld [vmem:[#allocation3_spill] sm:$0xff] }
 0x5b1   : > { %v3113_v10 = vmul.f32 %v3025_v35, %v2556_v25  ;;  %2200 = vrot.lane.b32.xlu1 %v6420_v38, %s4704_s12  ;;  %v7681_v26 = vrot.slane %v7680_v16, 1  ;;  %v4633_v41 = vld [vmem:[#allocation2 + $0x190] sm:$0xff] }
 0x5b2   : > { %2692 = vrot.lane.b32.xlu0 %v6386_v5, %s4704_s12  ;;  %v6615_v23 = vsel %vm3171_vm7, %v3229_v51, %v3231_v2  ;;  %v6620_v40 = vsel %vm3171_vm7, %v3231_v2, %v7468_v22  ;;  %v3027_v30 = vsel %vm3008_vm0, %v3024_v63, %v3026_v59  ;;  %v7682_v2 = vld [vmem:[#allocation5_spill] sm:$0xff] }
 0x5b3   : > { %v3187_v3 = vrot.slane %v3113_v10, 7  ;;  %v2433_v42 = vpop.permute.xlu1 %2432  ;;  %v3105_v25 = vmul.f32 %v7681_v26, %v2548_v57  ;;  %v3028_v10 = vrot.slane %v7682_v2, 1  ;;  %v7683_v22 = vld [vmem:[#allocation25_spill] sm:$0xff] }
 0x5b4   : > { %v2522_v7 = vadd.f32 %v2433_v42, %v7678_v4  ;;  %v6624_v48 = vpop.permute.xlu0 %2652  ;;  %v7685_v63 = vld [vmem:[#allocation45_spill] sm:$0xff] }
 0x5b5   : > { %2694 = vrot.lane.b32.xlu1 %v6411_v20, %s4704_s12  ;;  %v6633_v5 = vsel %vm3171_vm7, %v3185_v50, %v3187_v3  ;;  %v4620_v20 = vld [vmem:[#allocation2 + $0xa0] sm:$0xff]  ;;  %v3172_v50 = vrot.slane %v3105_v25, 7  ;;  %v4622_v25 = vld [vmem:[#allocation2 + $0xc8] sm:$0xff] }
 0x5b6   : > { %2202 = vrot.lane.b32.xlu0 %v6445_v34, %s4704_s12  ;;  %v2557_v51 = vadd.f32 %v2522_v7, %v7679_v28  ;;  %v4621_v26 = vld [vmem:[#allocation2 + $0x80] sm:$0xff] }
 0x5b7   : > { %v2161_v35 = vpop.permute.xlu1 %2160 }
 0x5b8   : > { %v3114_v19 = vmul.f32 %v3027_v30, %v2557_v51  ;;  %v2253_v42 = vadd.f32 %v4620_v20, %v2161_v35  ;;  %v2435_v4 = vpop.permute.xlu0 %2434  ;;  %v3029_v51 = vsel %vm3008_vm0, %v3026_v59, %v3028_v10  ;;  %v7688_v59 = vld [vmem:[#allocation22_spill] sm:$0xff] }
 0x5b9   : > { %v2523_v24 = vadd.f32 %v2435_v4, %v7683_v22  ;;  %2204 = vrot.lane.b32.xlu1 %v6454_v53, %s4704_s12  ;;  %v7686_v22 = vrot.slane %v6404_v47, 7  ;;  %v2784_v4 = vld [vmem:[#allocation2 + $0x138] sm:$0xff] }
 0x5ba   : > { %2696 = vrot.lane.b32.xlu0 %v6420_v38, %s4704_s12  ;;  %v3189_v0 = vrot.slane %v3114_v19, 7  ;;  %v6646_v57 = vadd.f32 %v2253_v42, %v6179_v11  ;;  %v7687_v11 = vld [vmem:[#allocation21_spill] sm:$0xff]  ;;  %v3528_v42 = vrot.slane %v7688_v59, 7 }
 0x5bb   : > { %v2558_v7 = vadd.f32 %v2523_v24, %v7685_v63  ;;  %v2655_v16 = vpop.permute.xlu1 %2654  ;;  %v3174_v2 = vsel %vm3171_vm7, %v3172_v50, %v7686_v22  ;;  %v7472_v24 = vrot.slane %v7687_v11, 7  ;;  %v7689_v63 = vld [vmem:[#allocation6_spill] sm:$0xff]  ;;  %v2785_v59 = vld [vmem:[#allocation2 + $0x160] sm:$0xff] }
 0x5bc   : > { %7684 = vst [vmem:[#allocation40_spill] sm:$0xff] %v6646_v57  ;;  %v2751_v30 = vadd.f32 %v4621_v26, %v2655_v16  ;;  %v2163_v35 = vpop.permute.xlu0 %2162  ;;  %v6654_v20 = vsel %vm3171_vm7, %v3187_v3, %v3189_v0  ;;  %v3030_v47 = vrot.slane %v7689_v63, 1 }
 0x5bd   : > { %v3115_v38 = vmul.f32 %v3029_v51, %v2558_v7  ;;  %v2254_v19 = vadd.f32 %v4622_v25, %v2163_v35  ;;  %3239 = vrot.lane.b32.xlu1 %v6430_v29, %s4704_s12  ;;  %v7691_v7 = vld [vmem:[#allocation24_spill] sm:$0xff] }
 0x5be   : > { %3237 = vrot.lane.b32.xlu0 %v3174_v2, %s4704_s12  ;;  %v2817_v50 = vadd.f32 %v2784_v4, %v2751_v30  ;;  %v3530_v51 = vrot.slane %v7691_v7, 7  ;;  %v6666_v35 = vld [vmem:[#allocation2 + $0x1b8] sm:$0xff]  ;;  %v4624_v2 = vld [vmem:[#allocation2 + $0xa8] sm:$0xff]  ;;  %v3031_v4 = vsel %vm3008_vm0, %v3028_v10, %v3030_v47 }
 0x5bf   : > { %v3191_v16 = vrot.slane %v3115_v38, 7  ;;  %v2437_v26 = vpop.permute.xlu1 %2436  ;;  %v6663_v3 = vadd.f32 %v2254_v19, %v6192_v9  ;;  %v3529_v9 = vsel %vm3171_vm7, %v7472_v24, %v3528_v42  ;;  %v7692_v38 = vld [vmem:[#allocation48_spill] sm:$0xff] }
 0x5c0   : > { %v2524_v29 = vadd.f32 %v6666_v35, %v2437_v26  ;;  %v2657_v22 = vpop.permute.xlu0 %2656  ;;  %v6681_v63 = vmul.f32 %v3529_v9, %v2817_v50 }
 0x5c1   : > { %7690 = vst [vmem:[#allocation4_spill] sm:$0xff] %v6663_v3  ;;  %v2752_v25 = vadd.f32 %v4624_v2, %v2657_v22  ;;  %2698 = vrot.lane.b32.xlu1 %v6445_v34, %s4704_s12  ;;  %v6674_v30 = vsel %vm3171_vm7, %v3189_v0, %v3191_v16  ;;  %v7693_v34 = vld [vmem:[#allocation7_spill] sm:$0xff]  ;;  %v3531_v2 = vsel %vm3171_vm7, %v3528_v42, %v3530_v51  ;;  %v6685_v3 = vld [vmem:[#allocation2 + $0x1e0] sm:$0xff]  ;;  %v7695_v42 = vld [vmem:[#allocation26_spill] sm:$0xff] }
 0x5c2   : > { %2206 = vrot.lane.b32.xlu0 %v6479_v27, %s4704_s12  ;;  %v2559_v19 = vadd.f32 %v2524_v29, %v7692_v38  ;;  %v3032_v22 = vrot.slane %v7693_v34, 1  ;;  %v4625_v0 = vld [vmem:[#allocation2 + $0xf0] sm:$0xff]  ;;  %v7473_v9 = vrot.slane %v6681_v63, 1 }
 0x5c3   : > { %v2818_v26 = vadd.f32 %v2785_v59, %v2752_v25  ;;  %v2165_v7 = vpop.permute.xlu1 %2164  ;;  %v3532_v25 = vrot.slane %v7695_v42, 7 }
 0x5c4   : > { %v3116_v8 = vmul.f32 %v3031_v4, %v2559_v19  ;;  %v2255_v31 = vadd.f32 %v4625_v0, %v2165_v7  ;;  %v2439_v57 = vpop.permute.xlu0 %2438  ;;  %v7696_v19 = vld [vmem:[#allocation50_spill] sm:$0xff]  ;;  %v7697_v0 = vld [vmem:[#allocation8_spill] sm:$0xff] }
 0x5c5   : > { %v3624_v24 = vmul.f32 %v3531_v2, %v2818_v26  ;;  %v2525_v29 = vadd.f32 %v2439_v57, %v6685_v3  ;;  %2208 = vrot.lane.b32.xlu1 %v6490_v44, %s4704_s12  ;;  %v3033_v57 = vsel %vm3008_vm0, %v3030_v47, %v3032_v22  ;;  %v4626_v26 = vld [vmem:[#allocation2 + $0xd0] sm:$0xff] }
 0x5c6   : > { %2700 = vrot.lane.b32.xlu0 %v6454_v53, %s4704_s12  ;;  %v3193_v10 = vrot.slane %v3116_v8, 7  ;;  %v6693_v50 = vadd.f32 %v2255_v31, %v6199_v13  ;;  %v2786_v8 = vld [vmem:[#allocation2 + $0x188] sm:$0xff]  ;;  %v4627_v13 = vld [vmem:[#allocation2 + $0x118] sm:$0xff] }
 0x5c7   : > { %v3692_v38 = vrot.slane %v3624_v24, 1  ;;  %v2560_v59 = vadd.f32 %v2525_v29, %v7696_v19  ;;  %v2659_v4 = vpop.permute.xlu1 %2658  ;;  %v3034_v29 = vrot.slane %v7697_v0, 1  ;;  %v6713_v19 = vld [vmem:[#allocation2 + $0x208] sm:$0xff] }
 0x5c8   : > { %7694 = vst [vmem:[#allocation23_spill] sm:$0xff] %v6693_v50  ;;  %v2753_v7 = vadd.f32 %v4626_v26, %v2659_v4  ;;  %v2167_v34 = vpop.permute.xlu0 %2166  ;;  %v6700_v2 = vsel %vm3171_vm7, %v3191_v16, %v3193_v10  ;;  %v3533_v16 = vsel %vm3171_vm7, %v3530_v51, %v3532_v25 }
 0x5c9   : > { %v3117_v53 = vmul.f32 %v3033_v57, %v2560_v59  ;;  %v2256_v31 = vadd.f32 %v4627_v13, %v2167_v34  ;;  %3243 = vrot.lane.b32.xlu1 %v6464_v14, %s4704_s12  ;;  %v6709_v24 = vsel %vm3008_vm0, %v7473_v9, %v3692_v38  ;;  %v7699_v14 = vld [vmem:[#allocation27_spill] sm:$0xff]  ;;  %v4628_v13 = vld [vmem:[#allocation2 + $0xf8] sm:$0xff] }
 0x5ca   : > { %3241 = vrot.lane.b32.xlu0 %v6458_v12, %s4704_s12  ;;  %v2819_v47 = vadd.f32 %v2786_v8, %v2753_v7  ;;  %v3534_v57 = vrot.slane %v7699_v14, 7  ;;  %v2787_v8 = vld [vmem:[#allocation2 + $0x1b0] sm:$0xff] }
 0x5cb   : > { %v3195_v42 = vrot.slane %v3117_v53, 7  ;;  %v2441_v59 = vpop.permute.xlu1 %2440  ;;  %v6716_v4 = vadd.f32 %v2256_v31, %v6214_v55  ;;  %v7700_v55 = vld [vmem:[#allocation53_spill] sm:$0xff]  ;;  %v3035_v31 = vsel %vm3008_vm0, %v3032_v22, %v3034_v29 }
 0x5cc   : > { %v3625_v12 = vmul.f32 %v3533_v16, %v2819_v47  ;;  %v2526_v26 = vadd.f32 %v2441_v59, %v6713_v19  ;;  %v2661_v34 = vpop.permute.xlu0 %2660  ;;  %v7701_v47 = vld [vmem:[#allocation9_spill] sm:$0xff]  ;;  %v3535_v14 = vsel %vm3171_vm7, %v3532_v25, %v3534_v57 }
 0x5cd   : > { %7698 = vst [vmem:[#allocation43_spill] sm:$0xff] %v6716_v4  ;;  %v2754_v9 = vadd.f32 %v4628_v13, %v2661_v34  ;;  %2702 = vrot.lane.b32.xlu1 %v6479_v27, %s4704_s12  ;;  %v6725_v51 = vsel %vm3171_vm7, %v3193_v10, %v3195_v42  ;;  %v3036_v0 = vrot.slane %v7701_v47, 1  ;;  %v4629_v27 = vld [vmem:[#allocation2 + $0x140] sm:$0xff]  ;;  %v6731_v4 = vld [vmem:[#allocation2 + $0x230] sm:$0xff] }
 0x5ce   : > { %2210 = vrot.lane.b32.xlu0 %v6518_v39, %s4704_s12  ;;  %v3694_v7 = vrot.slane %v3625_v12, 1  ;;  %v2561_v53 = vadd.f32 %v2526_v26, %v7700_v55 }
 0x5cf   : > { %v2820_v16 = vadd.f32 %v2787_v8, %v2754_v9  ;;  %v2169_v59 = vpop.permute.xlu1 %2168  ;;  %v7703_v9 = vld [vmem:[#allocation28_spill] sm:$0xff]  ;;  %v7704_v8 = vld [vmem:[#allocation54_spill] sm:$0xff]  ;;  %v3037_v47 = vsel %vm3008_vm0, %v3034_v29, %v3036_v0 }
 0x5d0   : > { %v3118_v34 = vmul.f32 %v3035_v31, %v2561_v53  ;;  %v2257_v13 = vadd.f32 %v4629_v27, %v2169_v59  ;;  %v2443_v50 = vpop.permute.xlu0 %2442  ;;  %v6734_v10 = vsel %vm3008_vm0, %v3692_v38, %v3694_v7  ;;  %v3536_v55 = vrot.slane %v7703_v9, 7  ;;  %v7705_v27 = vld [vmem:[#allocation19_spill] sm:$0xff]  ;;  %v7707_v9 = vld [vmem:[#allocation29_spill] sm:$0xff] }
 0x5d1   : > { %v3626_v12 = vmul.f32 %v3535_v14, %v2820_v16  ;;  %v2527_v26 = vadd.f32 %v2443_v50, %v6731_v4  ;;  %2212 = vrot.lane.b32.xlu1 %v6533_v15, %s4704_s12  ;;  %v4630_v16 = vld [vmem:[#allocation2 + $0x120] sm:$0xff] }
 0x5d2   : > { %2704 = vrot.lane.b32.xlu0 %v6490_v44, %s4704_s12  ;;  %v3197_v22 = vrot.slane %v3118_v34, 7  ;;  %v6742_v25 = vadd.f32 %v2257_v13, %v7676_v46  ;;  %v7474_v44 = vrot.slane %v7705_v27, 1  ;;  %v2788_v46 = vld [vmem:[#allocation2 + $0x1d8] sm:$0xff]  ;;  %v4631_v13 = vld [vmem:[#allocation2 + $0x168] sm:$0xff] }
 0x5d3   : > { %v3696_v53 = vrot.slane %v3626_v12, 1  ;;  %v2562_v31 = vadd.f32 %v2527_v26, %v7704_v8  ;;  %v2663_v38 = vpop.permute.xlu1 %2662  ;;  %v7706_v12 = vld [vmem:[#allocation10_spill] sm:$0xff] }
 0x5d4   : > { %7702 = vst [vmem:[#allocation3_spill] sm:$0xff] %v6742_v25  ;;  %v2755_v50 = vadd.f32 %v4630_v16, %v2663_v38  ;;  %v2171_v59 = vpop.permute.xlu0 %2170  ;;  %v6748_v14 = vsel %vm3171_vm7, %v3195_v42, %v3197_v22  ;;  %v3038_v26 = vrot.slane %v7706_v12, 1  ;;  %v2347_v38 = vld [vmem:[#allocation2 + $0x500] sm:$0x7f]  ;;  %v6764_v16 = vld [vmem:[#allocation2 + $0x258] sm:$0xff] }
 0x5d5   : > { %v6751_v34 = vmul.f32 %v3037_v47, %v2562_v31  ;;  %v2258_v25 = vadd.f32 %v4631_v13, %v2171_v59  ;;  %3247 = vrot.lane.b32.xlu1 %v6500_v18, %s4704_s12  ;;  %v6758_v29 = vsel %vm3008_vm0, %v3694_v7, %v3696_v53  ;;  %v3537_v31 = vsel %vm3171_vm7, %v3534_v57, %v3536_v55 }
 0x5d6   : > { %3245 = vrot.lane.b32.xlu0 %v6494_v45, %s4704_s12  ;;  %v2821_v42 = vadd.f32 %v2788_v46, %v2755_v50  ;;  %v2545_v45 = vadd.f32 %v6605_v60, %v2347_v38  ;;  %v7709_v50 = vrot.slane %v6061_v33, 1  ;;  %v2547_v46 = vld [vmem:[#allocation2 + $0x5b8] sm:$0x7f]  ;;  %v7711_v33 = vld [vmem:[#allocation57_spill] sm:$0xff] }
 0x5d7   : > { %v3199_v47 = vrot.slane %v6751_v34, 7  ;;  %v2445_v59 = vpop.permute.xlu1 %2444  ;;  %v6767_v18 = vadd.f32 %v2258_v25, %v7679_v28  ;;  %v4632_v34 = vld [vmem:[#allocation2 + $0x148] sm:$0xff]  ;;  %v7710_v28 = vld [vmem:[#allocation11_spill] sm:$0xff]  ;;  %v2789_v38 = vld [vmem:[#allocation2 + $0x200] sm:$0xff] }
 0x5d8   : > { %v3627_v7 = vmul.f32 %v3537_v31, %v2821_v42  ;;  %v2528_v13 = vadd.f32 %v2445_v59, %v6764_v16  ;;  %v2665_v12 = vpop.permute.xlu0 %2664  ;;  %v3059_v57 = vsel %vm3008_vm0, %v7474_v44, %v7709_v50  ;;  %v3040_v25 = vrot.slane %v7710_v28, 1  ;;  %v6792_v28 = vld [vmem:[#allocation2 + $0x280] sm:$0xff] }
 0x5d9   : > { %7708 = vst [vmem:[#allocation5_spill] sm:$0xff] %v6767_v18  ;;  %v2756_v8 = vadd.f32 %v4632_v34, %v2665_v12  ;;  %2706 = vrot.lane.b32.xlu1 %v6518_v39, %s4704_s12  ;;  %v6781_v60 = vsel %vm3171_vm7, %v3197_v22, %v3199_v47  ;;  %v6786_v59 = vmul.f32 %v3059_v57, %v6496_v49  ;;  %v7712_v50 = vrot.slane %v7707_v9, 7 }
 0x5da   : > { %2214 = vrot.lane.b32.xlu0 %v6561_v17, %s4704_s12  ;;  %v3698_v42 = vrot.slane %v3627_v7, 1  ;;  %v2563_v31 = vadd.f32 %v2528_v13, %v7711_v33  ;;  %v3039_v12 = vsel %vm3008_vm0, %v3036_v0, %v3038_v26  ;;  %v2580_v18 = vadd.f32 %v2547_v46, %v2545_v45  ;;  %v2581_v46 = vld [vmem:[#allocation2 + $0x30] sm:$0xfe] }
 0x5db   : > { %v3539_v39 = vsel %vm3171_vm7, %v3536_v55, %v7712_v50  ;;  %v2822_v34 = vadd.f32 %v2789_v38, %v2756_v8  ;;  %v2173_v44 = vpop.permute.xlu1 %2172  ;;  %v3041_v55 = vsel %vm3008_vm0, %v3038_v26, %v3040_v25  ;;  %v2750_v33 = vadd.f32 %v6388_v21, %v6624_v48  ;;  %v7714_v38 = vld [vmem:[#allocation59_spill] sm:$0xff]  ;;  %v7717_v21 = vld [vmem:[#allocation12_spill] sm:$0xff] }
 0x5dc   : > { %v3120_v22 = vmul.f32 %v3039_v12, %v2563_v31  ;;  %v2259_v54 = vadd.f32 %v4633_v41, %v2173_v44  ;;  %v2447_v7 = vpop.permute.xlu0 %2446  ;;  %v6795_v13 = vsel %vm3008_vm0, %v3696_v53, %v3698_v42  ;;  %v7475_v41 = vrot.slane %v6786_v59, 7  ;;  %v4634_v44 = vld [vmem:[#allocation2 + $0x248] sm:$0xff] }
 0x5dd   : > { %v6797_v49 = vmul.f32 %v3539_v39, %v2822_v34  ;;  %v2529_v0 = vadd.f32 %v2447_v7, %v6792_v28  ;;  %2216 = vrot.lane.b32.xlu1 %v6576_v37, %s4704_s12  ;;  %v7713_v53 = vld [vmem:[#allocation30_spill] sm:$0xff]  ;;  %v4635_v39 = vld [vmem:[#allocation2 + $0x170] sm:$0xff]  ;;  %v3042_v48 = vrot.slane %v7717_v21, 1 }
 0x5de   : > { %2708 = vrot.lane.b32.xlu0 %v6533_v15, %s4704_s12  ;;  %v3201_v8 = vrot.slane %v3120_v22, 7  ;;  %v6806_v45 = vadd.f32 %v4634_v44, %v2259_v54  ;;  %v3540_v57 = vrot.slane %v7713_v53, 7  ;;  %v7715_v15 = vrot.slane %v6103_v43, 1 }
 0x5df   : > { %v3700_v31 = vrot.slane %v6797_v49, 1  ;;  %v2564_v12 = vadd.f32 %v2529_v0, %v7714_v38  ;;  %v2667_v50 = vpop.permute.xlu1 %2666  ;;  %v7716_v54 = vrot.slane %v6535_v58, 7  ;;  %v2790_v0 = vld [vmem:[#allocation2 + $0x228] sm:$0xff]  ;;  %v7719_v38 = vld [vmem:[#allocation31_spill] sm:$0xff] }
 0x5e0   : > { %v3137_v26 = vmul.f32 %v7715_v15, %v2580_v18  ;;  %v2757_v34 = vadd.f32 %v4635_v39, %v2667_v50  ;;  %v2175_v22 = vpop.permute.xlu0 %2174  ;;  %v6821_v44 = vsel %vm3171_vm7, %v3199_v47, %v3201_v8  ;;  %v7718_v18 = vld [vmem:[#allocation20_spill] sm:$0xff]  ;;  %v3542_v47 = vrot.slane %v7719_v38, 7  ;;  %v2783_v15 = vld [vmem:[#allocation2 + $0x110] sm:$0xff]  ;;  %v4641_v38 = vld [vmem:[#allocation2 + $0x1e8] sm:$0xff] }
 0x5e1   : > { %v3224_v7 = vsel %vm3171_vm7, %v7475_v41, %v7716_v54  ;;  %v6824_v49 = vmul.f32 %v3041_v55, %v2564_v12  ;;  %v2260_v43 = vadd.f32 %v6666_v35, %v2175_v22  ;;  %v6831_v58 = vsel %vm3008_vm0, %v3698_v42, %v3700_v31  ;;  %v6840_v54 = vld [vmem:[#allocation2 + $0x2a8] sm:$0xff]  ;;  %v4636_v42 = vld [vmem:[#allocation2 + $0x270] sm:$0xff] }
 0x5e2   : > { %3287 = vrot.lane.b32.xlu1 %v3224_v7, %s4704_s12  ;;  %3249 = vrot.lane.b32.xlu0 %v6540_v1, %s4704_s12  ;;  %v3525_v53 = vrot.slane %v7718_v18, 7  ;;  %v2749_v50 = vadd.f32 %v6599_v6, %v2581_v46  ;;  %v2823_v55 = vadd.f32 %v2790_v0, %v2757_v34  ;;  %v7720_v12 = vrot.slane %v7707_v9, 7  ;;  %v2782_v34 = vld [vmem:[#allocation2 + $0xe8] sm:$0xfe]  ;;  %v4637_v9 = vld [vmem:[#allocation2 + $0x198] sm:$0xff] }
 0x5e3   : > { %v2816_v39 = vadd.f32 %v2783_v15, %v2750_v33  ;;  %v3203_v22 = vrot.slane %v6824_v49, 7  ;;  %v2449_v1 = vpop.permute.xlu1 %2448  ;;  %v6842_v7 = vadd.f32 %v4636_v42, %v2260_v43  ;;  %v3235_v21 = vrot.slane %v3137_v26, 7 }
 0x5e4   : > { %v3541_v35 = vsel %vm3171_vm7, %v7720_v12, %v3540_v57  ;;  %v2530_v41 = vadd.f32 %v2449_v1, %v6840_v54  ;;  %v2669_v6 = vpop.permute.xlu0 %2668  ;;  %v3043_v46 = vsel %vm3008_vm0, %v3040_v25, %v3042_v48  ;;  %v7721_v26 = vrot.slane %v7687_v11, 7  ;;  %v2791_v12 = vld [vmem:[#allocation2 + $0x250] sm:$0xff] }
 0x5e5   : > { %v3629_v18 = vmul.f32 %v3541_v35, %v2823_v55  ;;  %v2758_v0 = vadd.f32 %v4637_v9, %v2669_v6  ;;  %v6851_v33 = vsel %vm3171_vm7, %v3201_v8, %v3203_v22  ;;  %v2815_v43 = vadd.f32 %v2782_v34, %v2749_v50  ;;  %v7722_v55 = vld [vmem:[#allocation62_spill] sm:$0xff]  ;;  %v7723_v35 = vld [vmem:[#allocation13_spill] sm:$0xff]  ;;  %v6864_v9 = vld [vmem:[#allocation2 + $0x2d0] sm:$0xff] }
 0x5e6   : > { %3251 = vrot.lane.b32.xlu1 %v6633_v5, %s4704_s12  ;;  %3289 = vrot.lane.b32.xlu0 %v6568_v56, %s4704_s12  ;;  %v3527_v49 = vsel %vm3171_vm7, %v3525_v53, %v7721_v26  ;;  %v2565_v25 = vadd.f32 %v2530_v41, %v7722_v55  ;;  %v3044_v1 = vrot.slane %v7723_v35, 1  ;;  %v3543_v5 = vsel %vm3171_vm7, %v3540_v57, %v3542_v47 }
 0x5e7   : > { %v3702_v15 = vrot.slane %v3629_v18, 1  ;;  %v6861_v42 = vmul.f32 %v3527_v49, %v2816_v39  ;;  %v2824_v56 = vadd.f32 %v2791_v12, %v2758_v0  ;;  %v2177_v8 = vpop.permute.xlu1 %2176  ;;  %v7724_v18 = vrot.slane %v6586_v36, 7  ;;  %v7725_v49 = vld [vmem:[#allocation32_spill] sm:$0xff] }
 0x5e8   : > { %v3122_v6 = vmul.f32 %v3043_v46, %v2565_v25  ;;  %v2261_v11 = vadd.f32 %v2177_v8, %v6685_v3  ;;  %v2451_v50 = vpop.permute.xlu0 %2450  ;;  %v3621_v39 = vmul.f32 %v3525_v53, %v2815_v43  ;;  %v4638_v46 = vld [vmem:[#allocation2 + $0x298] sm:$0xff]  ;;  %v3544_v36 = vrot.slane %v7725_v49, 7  ;;  %v7728_v49 = vld [vmem:[#allocation33_spill] sm:$0xff] }
 0x5e9   : > { %v3236_v41 = vsel %vm3171_vm7, %v7724_v18, %v3235_v21  ;;  %v6870_v34 = vsel %vm3008_vm0, %v3700_v31, %v3702_v15  ;;  %v3630_v26 = vmul.f32 %v3543_v5, %v2824_v56  ;;  %v2531_v57 = vadd.f32 %v2451_v50, %v6864_v9  ;;  %v7726_v21 = vld [vmem:[#allocation63_spill] sm:$0xff]  ;;  %v4639_v5 = vld [vmem:[#allocation2 + $0x1c0] sm:$0xff]  ;;  %v2792_v43 = vld [vmem:[#allocation2 + $0x278] sm:$0xff] }
 0x5ea   : > { %3299 = vrot.lane.b32.xlu1 %v3236_v41, %s4704_s12  ;;  %2712 = vrot.lane.b32.xlu0 %v6576_v37, %s4704_s12  ;;  %v3205_v3 = vrot.slane %v3122_v6, 7  ;;  %v6876_v0 = vadd.f32 %v4638_v46, %v2261_v11  ;;  %v3045_v12 = vsel %vm3008_vm0, %v3042_v48, %v3044_v1  ;;  %v3688_v35 = vrot.slane %v6861_v42, 1  ;;  %v7727_v18 = vld [vmem:[#allocation14_spill] sm:$0xff]  ;;  %v4640_v46 = vld [vmem:[#allocation2 + $0x2c0] sm:$0xff] }
 0x5eb   : > { %v3704_v55 = vrot.slane %v3630_v26, 1  ;;  %v2566_v25 = vadd.f32 %v2531_v57, %v7726_v21  ;;  %v2671_v31 = vpop.permute.xlu1 %2670  ;;  %v3687_v11 = vrot.slane %v3621_v39, 1  ;;  %v3046_v41 = vrot.slane %v7727_v18, 1  ;;  %v6897_v57 = vld [vmem:[#allocation2 + $0x2f8] sm:$0xff] }
 0x5ec   : > { %v2759_v56 = vadd.f32 %v4639_v5, %v2671_v31  ;;  %v2179_v8 = vpop.permute.xlu0 %2178  ;;  %v6883_v37 = vsel %vm3171_vm7, %v3203_v22, %v3205_v3  ;;  %v3545_v22 = vsel %vm3171_vm7, %v3542_v47, %v3544_v36  ;;  %v7729_v5 = vld [vmem:[#allocation66_spill] sm:$0xff] }
 0x5ed   : > { %v3123_v53 = vmul.f32 %v3045_v12, %v2566_v25  ;;  %v2262_v6 = vadd.f32 %v2179_v8, %v6713_v19  ;;  %v6891_v48 = vsel %vm3008_vm0, %v3702_v15, %v3704_v55  ;;  %v3689_v25 = vsel %vm3008_vm0, %v3687_v11, %v3688_v35  ;;  %v2793_v8 = vld [vmem:[#allocation2 + $0x2a0] sm:$0xff] }
 0x5ee   : > { %2710 = vrot.lane.b32.xlu1 %v6561_v17, %s4704_s12  ;;  %3253 = vrot.lane.b32.xlu0 %v6654_v20, %s4704_s12  ;;  %v2825_v50 = vadd.f32 %v2792_v43, %v2759_v56  ;;  %v3546_v20 = vrot.slane %v7728_v49, 7  ;;  %v7730_v43 = vld [vmem:[#allocation15_spill] sm:$0xff] }
 0x5ef   : > { %v3207_v26 = vrot.slane %v3123_v53, 7  ;;  %v2453_v19 = vpop.permute.xlu1 %2452  ;;  %v6899_v17 = vadd.f32 %v4640_v46, %v2262_v6  ;;  %v3047_v53 = vsel %vm3008_vm0, %v3044_v1, %v3046_v41  ;;  %v3048_v6 = vrot.slane %v7730_v43, 1  ;;  %v2794_v43 = vld [vmem:[#allocation2 + $0x2c8] sm:$0xff] }
 0x5f0   : > { %v3631_v21 = vmul.f32 %v3545_v22, %v2825_v50  ;;  %v2532_v15 = vadd.f32 %v2453_v19, %v6897_v57  ;;  %v2673_v39 = vpop.permute.xlu0 %2672  ;;  %v3547_v18 = vsel %vm3171_vm7, %v3544_v36, %v3546_v20  ;;  %v6917_v19 = vld [vmem:[#allocation2 + $0x320] sm:$0xff]  ;;  %v4642_v36 = vld [vmem:[#allocation2 + $0x2e8] sm:$0xff] }
 0x5f1   : > { %v2760_v31 = vadd.f32 %v4641_v38, %v2673_v39  ;;  %v6910_v47 = vsel %vm3171_vm7, %v3205_v3, %v3207_v26  ;;  %v6930_v38 = vld [vmem:[#allocation2 + $0x3d8] sm:$0xff] }
 0x5f2   : > { %3291 = vrot.lane.b32.xlu1 %v6579_v52, %s4704_s12  ;;  %3752 = vrot.lane.b32.xlu0 %v3689_v25, %s4704_s12  ;;  %v3706_v12 = vrot.slane %v3631_v21, 1  ;;  %v2567_v56 = vadd.f32 %v2532_v15, %v7729_v5  ;;  %v3049_v5 = vsel %vm3008_vm0, %v3046_v41, %v3048_v6 }
 0x5f3   : > { %v2826_v50 = vadd.f32 %v2793_v8, %v2760_v31  ;;  %v2181_v11 = vpop.permute.xlu1 %2180 }
 0x5f4   : > { %v3124_v22 = vmul.f32 %v3047_v53, %v2567_v56  ;;  %v2263_v52 = vadd.f32 %v2181_v11, %v6731_v4  ;;  %v2455_v46 = vpop.permute.xlu0 %2454  ;;  %v6920_v3 = vsel %vm3008_vm0, %v3704_v55, %v3706_v12  ;;  %v7731_v4 = vld [vmem:[#allocation34_spill] sm:$0xff]  ;;  %v4644_v56 = vld [vmem:[#allocation2 + $0x210] sm:$0xff] }
 0x5f5   : > { %v3632_v49 = vmul.f32 %v3547_v18, %v2826_v50  ;;  %v2533_v21 = vadd.f32 %v2455_v46, %v6917_v19  ;;  %v3548_v39 = vrot.slane %v7731_v4, 7  ;;  %v7732_v18 = vld [vmem:[#allocation16_spill] sm:$0xff]  ;;  %v6947_v46 = vld [vmem:[#allocation2 + $0x348] sm:$0xff] }
 0x5f6   : > { %3255 = vrot.lane.b32.xlu1 %v6674_v30, %s4704_s12  ;;  %3293 = vrot.lane.b32.xlu0 %v6608_v32, %s4704_s12  ;;  %v3209_v1 = vrot.slane %v3124_v22, 7  ;;  %v6927_v15 = vadd.f32 %v4642_v36, %v2263_v52  ;;  %v3050_v22 = vrot.slane %v7732_v18, 1  ;;  %v7733_v36 = vld [vmem:[#allocation35_spill] sm:$0xff] }
 0x5f7   : > { %v3708_v25 = vrot.slane %v3632_v49, 1  ;;  %v2568_v55 = vadd.f32 %v6930_v38, %v2533_v21  ;;  %v2675_v31 = vpop.permute.xlu1 %2674  ;;  %v3549_v52 = vsel %vm3171_vm7, %v3546_v20, %v3548_v39  ;;  %v4645_v21 = vld [vmem:[#allocation2 + $0x310] sm:$0xff]  ;;  %v4646_v20 = vld [vmem:[#allocation2 + $0x238] sm:$0xff] }
 0x5f8   : > { %v2761_v8 = vadd.f32 %v4644_v56, %v2675_v31  ;;  %v2183_v30 = vpop.permute.xlu0 %2182  ;;  %v6935_v53 = vsel %vm3171_vm7, %v3207_v26, %v3209_v1  ;;  %v3051_v42 = vsel %vm3008_vm0, %v3048_v6, %v3050_v22 }
 0x5f9   : > { %v3125_v32 = vmul.f32 %v3049_v5, %v2568_v55  ;;  %v2264_v50 = vadd.f32 %v2183_v30, %v6764_v16  ;;  %v6943_v11 = vsel %vm3008_vm0, %v3706_v12, %v3708_v25  ;;  %v7734_v12 = vrot.slane %v6681_v63, 1  ;;  %v6964_v30 = vld [vmem:[#allocation2 + $0x400] sm:$0xff]  ;;  %v2795_v63 = vld [vmem:[#allocation2 + $0x2f0] sm:$0xff] }
 0x5fa   : > { %3295 = vrot.lane.b32.xlu1 %v6615_v23, %s4704_s12  ;;  %3297 = vrot.lane.b32.xlu0 %v6620_v40, %s4704_s12  ;;  %v2827_v41 = vadd.f32 %v2794_v43, %v2761_v8  ;;  %v3550_v23 = vrot.slane %v7733_v36, 7  ;;  %v7735_v43 = vld [vmem:[#allocation17_spill] sm:$0xff] }
 0x5fb   : > { %v3211_v26 = vrot.slane %v3125_v32, 7  ;;  %v2457_v49 = vpop.permute.xlu1 %2456  ;;  %v6949_v16 = vadd.f32 %v4645_v21, %v2264_v50  ;;  %v3691_v31 = vsel %vm3008_vm0, %v3688_v35, %v7734_v12  ;;  %v3052_v35 = vrot.slane %v7735_v43, 1  ;;  %v2796_v43 = vld [vmem:[#allocation2 + $0x318] sm:$0xff] }
 0x5fc   : > { %v3633_v4 = vmul.f32 %v3549_v52, %v2827_v41  ;;  %v2534_v40 = vadd.f32 %v2457_v49, %v6947_v46  ;;  %v2677_v55 = vpop.permute.xlu0 %2676  ;;  %v3551_v18 = vsel %vm3171_vm7, %v3548_v39, %v3550_v23  ;;  %v6971_v49 = vld [vmem:[#allocation2 + $0x370] sm:$0xff]  ;;  %v4648_v39 = vld [vmem:[#allocation2 + $0x338] sm:$0xff] }
 0x5fd   : > { %v2762_v5 = vadd.f32 %v4646_v20, %v2677_v55  ;;  %v6962_v56 = vsel %vm3171_vm7, %v3209_v1, %v3211_v26 }
 0x5fe   : > { %3754 = vrot.lane.b32.xlu1 %v3691_v31, %s4704_s12  ;;  %3257 = vrot.lane.b32.xlu0 %v6700_v2, %s4704_s12  ;;  %v3710_v8 = vrot.slane %v3633_v4, 1  ;;  %v2569_v32 = vadd.f32 %v6964_v30, %v2534_v40  ;;  %v6984_v31 = vld [vmem:[#allocation2 + $0x428] sm:$0xff] }
 0x5ff   : > { %v2828_v50 = vadd.f32 %v2795_v63, %v2762_v5  ;;  %v2185_v41 = vpop.permute.xlu1 %2184  ;;  %v3053_v5 = vsel %vm3008_vm0, %v3050_v22, %v3052_v35 }
 0x600   : > { %v3126_v52 = vmul.f32 %v3051_v42, %v2569_v32  ;;  %v2265_v2 = vadd.f32 %v2185_v41, %v6792_v28  ;;  %v2459_v1 = vpop.permute.xlu0 %2458  ;;  %v6974_v21 = vsel %vm3008_vm0, %v3708_v25, %v3710_v8  ;;  %v7736_v28 = vld [vmem:[#allocation36_spill] sm:$0xff]  ;;  %v4650_v32 = vld [vmem:[#allocation2 + $0x260] sm:$0xff] }
 0x601   : > { %v3634_v36 = vmul.f32 %v3551_v18, %v2828_v50  ;;  %v2535_v4 = vadd.f32 %v2459_v1, %v6971_v49  ;;  %v3552_v55 = vrot.slane %v7736_v28, 7  ;;  %v7737_v18 = vld [vmem:[#allocation18_spill] sm:$0xff]  ;;  %v7001_v1 = vld [vmem:[#allocation2 + $0x398] sm:$0xff] }
 0x602   : > { %3259 = vrot.lane.b32.xlu1 %v6725_v51, %s4704_s12  ;;  %3756 = vrot.lane.b32.xlu0 %v6709_v24, %s4704_s12  ;;  %v3213_v6 = vrot.slane %v3126_v52, 7  ;;  %v6981_v40 = vadd.f32 %v4648_v39, %v2265_v2  ;;  %v3054_v52 = vrot.slane %v7737_v18, 1  ;;  %v7738_v39 = vld [vmem:[#allocation37_spill] sm:$0xff] }
 0x603   : > { %v3712_v12 = vrot.slane %v3634_v36, 1  ;;  %v2570_v25 = vadd.f32 %v6984_v31, %v2535_v4  ;;  %v2679_v20 = vpop.permute.xlu1 %2678  ;;  %v3553_v2 = vsel %vm3171_vm7, %v3550_v23, %v3552_v55  ;;  %v4651_v4 = vld [vmem:[#allocation2 + $0x360] sm:$0xff] }
 0x604   : > { %v2763_v63 = vadd.f32 %v4650_v32, %v2679_v20  ;;  %v2187_v51 = vpop.permute.xlu0 %2186  ;;  %v6989_v42 = vsel %vm3171_vm7, %v3211_v26, %v3213_v6  ;;  %v7014_v32 = vld [vmem:[#allocation2 + $0x450] sm:$0xff] }
 0x605   : > { %v3127_v24 = vmul.f32 %v3053_v5, %v2570_v25  ;;  %v2266_v50 = vadd.f32 %v2187_v51, %v6840_v54  ;;  %v6997_v41 = vsel %vm3008_vm0, %v3710_v8, %v3712_v12  ;;  %v4652_v8 = vld [vmem:[#allocation2 + $0x288] sm:$0xff]  ;;  %v2797_v51 = vld [vmem:[#allocation2 + $0x340] sm:$0xff] }
 0x606   : > { %3758 = vrot.lane.b32.xlu1 %v6734_v10, %s4704_s12  ;;  %3261 = vrot.lane.b32.xlu0 %v6748_v14, %s4704_s12  ;;  %v2829_v22 = vadd.f32 %v2796_v43, %v2763_v63  ;;  %v3554_v10 = vrot.slane %v7738_v39, 7 }
 0x607   : > { %v3215_v26 = vrot.slane %v3127_v24, 7  ;;  %v2461_v36 = vpop.permute.xlu1 %2460  ;;  %v7003_v54 = vadd.f32 %v4651_v4, %v2266_v50  ;;  %v3055_v24 = vsel %vm3008_vm0, %v3052_v35, %v3054_v52 }
 0x608   : > { %v3635_v28 = vmul.f32 %v3553_v2, %v2829_v22  ;;  %v2536_v14 = vadd.f32 %v2461_v36, %v7001_v1  ;;  %v2681_v25 = vpop.permute.xlu0 %2680  ;;  %v3555_v22 = vsel %vm3171_vm7, %v3552_v55, %v3554_v10  ;;  %v7020_v2 = vld [vmem:[#allocation2 + $0x3c0] sm:$0xff]  ;;  %v4654_v55 = vld [vmem:[#allocation2 + $0x388] sm:$0xff] }
 0x609   : > { %v2764_v20 = vadd.f32 %v4652_v8, %v2681_v25  ;;  %v7012_v23 = vsel %vm3171_vm7, %v3213_v6, %v3215_v26  ;;  %v7033_v25 = vld [vmem:[#allocation2 + $0x478] sm:$0xff] }
 0x60a   : > { %3263 = vrot.lane.b32.xlu1 %v6781_v60, %s4704_s12  ;;  %3760 = vrot.lane.b32.xlu0 %v6758_v29, %s4704_s12  ;;  %v3714_v5 = vrot.slane %v3635_v28, 1  ;;  %v2571_v63 = vadd.f32 %v7014_v32, %v2536_v14 }
 0x60b   : > { %v2830_v43 = vadd.f32 %v2797_v51, %v2764_v20  ;;  %v2189_v50 = vpop.permute.xlu1 %2188  ;;  %v7740_v20 = vrot.slane %v7705_v27, 1 }
 0x60c   : > { %v3128_v18 = vmul.f32 %v3055_v24, %v2571_v63  ;;  %v2267_v60 = vadd.f32 %v2189_v50, %v6864_v9  ;;  %v2463_v29 = vpop.permute.xlu0 %2462  ;;  %v7023_v6 = vsel %vm3008_vm0, %v3712_v12, %v3714_v5  ;;  %v7739_v9 = vld [vmem:[#allocation38_spill] sm:$0xff] }
 0x60d   : > { %v3636_v36 = vmul.f32 %v3555_v22, %v2830_v43  ;;  %v2537_v4 = vadd.f32 %v2463_v29, %v7020_v2  ;;  %v3556_v28 = vrot.slane %v7739_v9, 7  ;;  %v3057_v63 = vsel %vm3008_vm0, %v3054_v52, %v7740_v20  ;;  %v2798_v50 = vld [vmem:[#allocation2 + $0x368] sm:$0xff]  ;;  %v4657_v29 = vld [vmem:[#allocation2 + $0x3b0] sm:$0xff] }
 0x60e   : > { %3762 = vrot.lane.b32.xlu1 %v6795_v13, %s4704_s12  ;;  %3265 = vrot.lane.b32.xlu0 %v6821_v44, %s4704_s12  ;;  %v3217_v35 = vrot.slane %v3128_v18, 7  ;;  %v7030_v39 = vadd.f32 %v4654_v55, %v2267_v60  ;;  %v4656_v13 = vld [vmem:[#allocation2 + $0x2b0] sm:$0xff] }
 0x60f   : > { %v3716_v14 = vrot.slane %v3636_v36, 1  ;;  %v2572_v12 = vadd.f32 %v7033_v25, %v2537_v4  ;;  %v2683_v8 = vpop.permute.xlu1 %2682  ;;  %v3557_v18 = vsel %vm3171_vm7, %v3554_v10, %v3556_v28  ;;  %v7741_v4 = vld [vmem:[#allocation39_spill] sm:$0xff] }
 0x610   : > { %v2765_v51 = vadd.f32 %v4656_v13, %v2683_v8  ;;  %v2191_v24 = vpop.permute.xlu0 %2190  ;;  %v7040_v44 = vsel %vm3171_vm7, %v3215_v26, %v3217_v35  ;;  %v2799_v8 = vld [vmem:[#allocation2 + $0x390] sm:$0xff] }
 0x611   : > { %v7042_v43 = vmul.f32 %v3057_v63, %v2572_v12  ;;  %v2268_v22 = vadd.f32 %v2191_v24, %v6897_v57  ;;  %v7050_v27 = vsel %vm3008_vm0, %v3714_v5, %v3716_v14  ;;  %v3558_v57 = vrot.slane %v7741_v4, 7  ;;  %v4658_v12 = vld [vmem:[#allocation2 + $0x2d8] sm:$0xff] }
 0x612   : > { %3267 = vrot.lane.b32.xlu1 %v6851_v33, %s4704_s12  ;;  %3764 = vrot.lane.b32.xlu0 %v6831_v58, %s4704_s12  ;;  %v2831_v52 = vadd.f32 %v2798_v50, %v2765_v51 }
 0x613   : > { %v3219_v26 = vrot.slane %v7042_v43, 7  ;;  %v2193_v60 = vpop.permute.xlu1 %2192  ;;  %v7054_v36 = vadd.f32 %v4657_v29, %v2268_v22  ;;  %v3559_v24 = vsel %vm3171_vm7, %v3556_v28, %v3558_v57  ;;  %v7750_v43 = vld [vmem:[#allocation52_spill] sm:$0xff] }
 0x614   : > { %v3637_v55 = vmul.f32 %v3557_v18, %v2831_v52  ;;  %v2269_v33 = vadd.f32 %v2193_v60, %v6917_v19  ;;  %v2685_v9 = vpop.permute.xlu0 %2684  ;;  %v7742_v19 = vld [vmem:[#allocation41_spill] sm:$0xff] }
 0x615   : > { %v2766_v58 = vadd.f32 %v4658_v12, %v2685_v9  ;;  %v7065_v10 = vsel %vm3171_vm7, %v3217_v35, %v3219_v26  ;;  %v3560_v63 = vrot.slane %v7742_v19, 7  ;;  %v2800_v35 = vld [vmem:[#allocation2 + $0x3b8] sm:$0xff]  ;;  %v4660_v12 = vld [vmem:[#allocation2 + $0x328] sm:$0xff] }
 0x616   : > { %3766 = vrot.lane.b32.xlu1 %v6870_v34, %s4704_s12  ;;  %3269 = vrot.lane.b32.xlu0 %v6883_v37, %s4704_s12  ;;  %v3718_v5 = vrot.slane %v3637_v55, 1  ;;  %v7068_v20 = vadd.f32 %v6930_v38, %v2269_v33  ;;  %v4659_v34 = vld [vmem:[#allocation2 + $0x300] sm:$0xff] }
 0x617   : > { %v2832_v13 = vadd.f32 %v2799_v8, %v2766_v58  ;;  %v2687_v51 = vpop.permute.xlu1 %2686  ;;  %v3561_v60 = vsel %vm3171_vm7, %v3558_v57, %v3560_v63  ;;  %v7744_v8 = vld [vmem:[#allocation44_spill] sm:$0xff] }
 0x618   : > { %v2767_v50 = vadd.f32 %v4659_v34, %v2687_v51  ;;  %v2195_v22 = vpop.permute.xlu0 %2194  ;;  %v7073_v37 = vsel %vm3008_vm0, %v3716_v14, %v3718_v5  ;;  %v7743_v14 = vld [vmem:[#allocation42_spill] sm:$0xff]  ;;  %v3564_v19 = vrot.slane %v7744_v8, 7 }
 0x619   : > { %v3638_v52 = vmul.f32 %v3559_v24, %v2832_v13  ;;  %v2270_v18 = vadd.f32 %v2195_v22, %v6947_v46  ;;  %v3562_v55 = vrot.slane %v7743_v14, 7  ;;  %v4661_v24 = vld [vmem:[#allocation2 + $0x350] sm:$0xff]  ;;  %v4662_v14 = vld [vmem:[#allocation2 + $0x378] sm:$0xff] }
 0x61a   : > { %3271 = vrot.lane.b32.xlu1 %v6910_v47, %s4704_s12  ;;  %3768 = vrot.lane.b32.xlu0 %v6891_v48, %s4704_s12  ;;  %v2833_v38 = vadd.f32 %v2800_v35, %v2767_v50 }
 0x61b   : > { %v3720_v28 = vrot.slane %v3638_v52, 1  ;;  %v2197_v29 = vpop.permute.xlu1 %2196  ;;  %v7082_v4 = vadd.f32 %v6964_v30, %v2270_v18  ;;  %v2801_v30 = vld [vmem:[#allocation2 + $0x3e0] sm:$0xff]  ;;  %v3563_v51 = vsel %vm3171_vm7, %v3560_v63, %v3562_v55  ;;  %v3565_v52 = vsel %vm3171_vm7, %v3562_v55, %v3564_v19 }
 0x61c   : > { %v3639_v33 = vmul.f32 %v3561_v60, %v2833_v38  ;;  %v2271_v9 = vadd.f32 %v2197_v29, %v6971_v49  ;;  %v2689_v46 = vpop.permute.xlu0 %2688  ;;  %v7745_v38 = vld [vmem:[#allocation46_spill] sm:$0xff] }
 0x61d   : > { %v2768_v58 = vadd.f32 %v4660_v12, %v2689_v46  ;;  %v7091_v48 = vsel %vm3008_vm0, %v3718_v5, %v3720_v28  ;;  %v2802_v5 = vld [vmem:[#allocation2 + $0x408] sm:$0xff]  ;;  %v3566_v60 = vrot.slane %v7745_v38, 7 }
 0x61e   : > { %3770 = vrot.lane.b32.xlu1 %v6920_v3, %s4704_s12  ;;  %3273 = vrot.lane.b32.xlu0 %v6935_v53, %s4704_s12  ;;  %v3722_v47 = vrot.slane %v3639_v33, 1  ;;  %v7094_v57 = vadd.f32 %v6984_v31, %v2271_v9  ;;  %v7746_v9 = vld [vmem:[#allocation47_spill] sm:$0xff]  ;;  %v4667_v38 = vld [vmem:[#allocation2 + $0x3c8] sm:$0xff] }
 0x61f   : > { %v2834_v49 = vadd.f32 %v2801_v30, %v2768_v58  ;;  %v2691_v13 = vpop.permute.xlu1 %2690  ;;  %v3568_v46 = vrot.slane %v7746_v9, 7  ;;  %v3567_v58 = vsel %vm3171_vm7, %v3564_v19, %v3566_v60  ;;  %v4663_v30 = vld [vmem:[#allocation2 + $0x3a0] sm:$0xff] }
 0x620   : > { %v2769_v34 = vadd.f32 %v4661_v24, %v2691_v13  ;;  %v2199_v3 = vpop.permute.xlu0 %2198  ;;  %v7099_v50 = vsel %vm3008_vm0, %v3720_v28, %v3722_v47  ;;  %v4664_v13 = vld [vmem:[#allocation2 + $0x3e8] sm:$0xff] }
 0x621   : > { %v3640_v53 = vmul.f32 %v3563_v51, %v2834_v49  ;;  %v2272_v22 = vadd.f32 %v2199_v3, %v7001_v1  ;;  %v3569_v24 = vsel %vm3171_vm7, %v3566_v60, %v3568_v46  ;;  %v4665_v3 = vld [vmem:[#allocation2 + $0x4a0] sm:$0xff] }
 0x622   : > { %3275 = vrot.lane.b32.xlu1 %v6962_v56, %s4704_s12  ;;  %3772 = vrot.lane.b32.xlu0 %v6943_v11, %s4704_s12  ;;  %v2835_v31 = vadd.f32 %v2802_v5, %v2769_v34  ;;  %v7747_v5 = vld [vmem:[#allocation49_spill] sm:$0xff] }
 0x623   : > { %v3724_v63 = vrot.slane %v3640_v53, 1  ;;  %v2201_v35 = vpop.permute.xlu1 %2200  ;;  %v7108_v18 = vadd.f32 %v7014_v32, %v2272_v22  ;;  %v2803_v32 = vld [vmem:[#allocation2 + $0x430] sm:$0xff]  ;;  %v3570_v22 = vrot.slane %v7747_v5, 7  ;;  %v2805_v60 = vld [vmem:[#allocation2 + $0x480] sm:$0xff] }
 0x624   : > { %v3641_v28 = vmul.f32 %v3565_v52, %v2835_v31  ;;  %v2273_v29 = vadd.f32 %v2201_v35, %v7020_v2  ;;  %v2693_v1 = vpop.permute.xlu0 %2692  ;;  %v4666_v52 = vld [vmem:[#allocation2 + $0x410] sm:$0xff] }
 0x625   : > { %v2770_v33 = vadd.f32 %v4662_v14, %v2693_v1  ;;  %v7117_v11 = vsel %vm3008_vm0, %v3722_v47, %v3724_v63  ;;  %v2804_v47 = vld [vmem:[#allocation2 + $0x458] sm:$0xff] }
 0x626   : > { %3774 = vrot.lane.b32.xlu1 %v6974_v21, %s4704_s12  ;;  %3277 = vrot.lane.b32.xlu0 %v6989_v42, %s4704_s12  ;;  %v3726_v56 = vrot.slane %v3641_v28, 1  ;;  %v7120_v55 = vadd.f32 %v7033_v25, %v2273_v29  ;;  %v4668_v29 = vld [vmem:[#allocation2 + $0x4c8] sm:$0xff] }
 0x627   : > { %v2836_v2 = vadd.f32 %v2803_v32, %v2770_v33  ;;  %v2695_v12 = vpop.permute.xlu1 %2694  ;;  %v3571_v32 = vsel %vm3171_vm7, %v3568_v46, %v3570_v22  ;;  %v7749_v46 = vrot.slane %v6786_v59, 7 }
 0x628   : > { %v2771_v8 = vadd.f32 %v4663_v30, %v2695_v12  ;;  %v2203_v21 = vpop.permute.xlu0 %2202  ;;  %v7125_v49 = vsel %vm3008_vm0, %v3724_v63, %v3726_v56  ;;  %v4669_v30 = vld [vmem:[#allocation2 + $0x3f0] sm:$0xff] }
 0x629   : > { %v3642_v42 = vmul.f32 %v3567_v58, %v2836_v2  ;;  %v2274_v51 = vadd.f32 %v4664_v13, %v2203_v21  ;;  %v4670_v13 = vld [vmem:[#allocation2 + $0x438] sm:$0xff] }
 0x62a   : > { %3279 = vrot.lane.b32.xlu1 %v7012_v23, %s4704_s12  ;;  %3776 = vrot.lane.b32.xlu0 %v6997_v41, %s4704_s12  ;;  %v2837_v25 = vadd.f32 %v2804_v47, %v2771_v8  ;;  %v2806_v47 = vld [vmem:[#allocation2 + $0x4a8] sm:$0xff] }
 0x62b   : > { %v3728_v19 = vrot.slane %v3642_v42, 1  ;;  %v2205_v34 = vpop.permute.xlu1 %2204  ;;  %v7132_v53 = vadd.f32 %v4665_v3, %v2274_v51  ;;  %v3222_v42 = vsel %vm3171_vm7, %v3219_v26, %v7749_v46  ;;  %v4672_v3 = vld [vmem:[#allocation2 + $0x460] sm:$0xff] }
 0x62c   : > { %v3643_v31 = vmul.f32 %v3569_v24, %v2837_v25  ;;  %v2275_v63 = vadd.f32 %v4666_v52, %v2205_v34  ;;  %v2697_v35 = vpop.permute.xlu0 %2696  ;;  %v3574_v34 = vrot.slane %v7750_v43, 7  ;;  %v4673_v52 = vld [vmem:[#allocation2 + $0x418] sm:$0xff] }
 0x62d   : > { %v2772_v28 = vadd.f32 %v4667_v38, %v2697_v35  ;;  %v3729_v41 = vsel %vm3008_vm0, %v3726_v56, %v3728_v19  ;;  %v4674_v35 = vld [vmem:[#allocation2 + $0x518] sm:$0xff] }
 0x62e   : > { %3778 = vrot.lane.b32.xlu1 %v7023_v6, %s4704_s12  ;;  %3281 = vrot.lane.b32.xlu0 %v7040_v44, %s4704_s12  ;;  %v3730_v23 = vrot.slane %v3643_v31, 1  ;;  %v7140_v1 = vadd.f32 %v4668_v29, %v2275_v63  ;;  %v7748_v44 = vld [vmem:[#allocation51_spill] sm:$0xff] }
 0x62f   : > { %v2838_v14 = vadd.f32 %v2805_v60, %v2772_v28  ;;  %v7142_v33 = vpop.permute.xlu1 %3239  ;;  %v3572_v56 = vrot.slane %v7748_v44, 7 }
 0x630   : > { %v7145_v9 = vpop.permute.xlu0 %3237  ;;  %v3731_v2 = vsel %vm3008_vm0, %v3728_v19, %v3730_v23  ;;  %v4671_v19 = vld [vmem:[#allocation2 + $0x4f0] sm:$0xff] }
 0x631   : > { %v3644_v6 = vmul.f32 %v3571_v32, %v2838_v14  ;;  %v3573_v25 = vsel %vm3171_vm7, %v3570_v22, %v3572_v56  ;;  %v2807_v22 = vld [vmem:[#allocation2 + $0x4d0] sm:$0xff]  ;;  %v3575_v60 = vsel %vm3171_vm7, %v3572_v56, %v3574_v34  ;;  %v4676_v56 = vld [vmem:[#allocation2 + $0x488] sm:$0xff] }
 0x632   : > { %3283 = vrot.lane.b32.xlu1 %v7065_v10, %s4704_s12  ;;  %3780 = vrot.lane.b32.xlu0 %v7050_v27, %s4704_s12 }
 0x633   : > { %v3732_v12 = vrot.slane %v3644_v6, 1  ;;  %v2699_v58 = vpop.permute.xlu1 %2698 }
 0x634   : > { %v2773_v8 = vadd.f32 %v4669_v30, %v2699_v58  ;;  %v2207_v21 = vpop.permute.xlu0 %2206  ;;  %v4675_v58 = vld [vmem:[#allocation2 + $0x440] sm:$0xff] }
 0x635   : > { %v2276_v51 = vadd.f32 %v4670_v13, %v2207_v21  ;;  %v3733_v27 = vsel %vm3008_vm0, %v3730_v23, %v3732_v12  ;;  %v2808_v21 = vld [vmem:[#allocation2 + $0x4f8] sm:$0xff] }
 0x636   : > { %3782 = vrot.lane.b32.xlu1 %v7073_v37, %s4704_s12  ;;  %3285 = vrot.lane.b32.xlu0 %v3222_v42, %s4704_s12  ;;  %v2839_v10 = vadd.f32 %v2806_v47, %v2773_v8  ;;  %v4677_v47 = vld [vmem:[#allocation2 + $0x540] sm:$0xff] }
 0x637   : > { %v2209_v24 = vpop.permute.xlu1 %2208  ;;  %v7163_v59 = vadd.f32 %v4671_v19, %v2276_v51  ;;  %v7752_v51 = vld [vmem:[#allocation56_spill] sm:$0xff] }
 0x638   : > { %v3645_v26 = vmul.f32 %v3573_v25, %v2839_v10  ;;  %v2277_v5 = vadd.f32 %v4672_v3, %v2209_v24  ;;  %v2701_v31 = vpop.permute.xlu0 %2700  ;;  %v3578_v10 = vrot.slane %v7752_v51, 7  ;;  %v4678_v24 = vld [vmem:[#allocation2 + $0x4b0] sm:$0xff] }
 0x639   : > { %v2774_v63 = vadd.f32 %v4673_v52, %v2701_v31 }
 0x63a   : > { %3786 = vrot.lane.b32.xlu1 %v7099_v50, %s4704_s12  ;;  %3784 = vrot.lane.b32.xlu0 %v7091_v48, %s4704_s12  ;;  %v3734_v37 = vrot.slane %v3645_v26, 1  ;;  %v7170_v38 = vadd.f32 %v4674_v35, %v2277_v5  ;;  %v7751_v48 = vld [vmem:[#allocation55_spill] sm:$0xff]  ;;  %v4679_v26 = vld [vmem:[#allocation2 + $0x468] sm:$0xff] }
 0x63b   : > { %v2840_v28 = vadd.f32 %v2807_v22, %v2774_v63  ;;  %v7172_v23 = vpop.permute.xlu1 %3243  ;;  %v3576_v50 = vrot.slane %v7751_v48, 7  ;;  %v4680_v5 = vld [vmem:[#allocation2 + $0x568] sm:$0xff] }
 0x63c   : > { %v7175_v29 = vpop.permute.xlu0 %3241  ;;  %v3735_v14 = vsel %vm3008_vm0, %v3732_v12, %v3734_v37 }
 0x63d   : > { %v3646_v32 = vmul.f32 %v3575_v60, %v2840_v28  ;;  %v3577_v42 = vsel %vm3171_vm7, %v3574_v34, %v3576_v50  ;;  %v3579_v63 = vsel %vm3171_vm7, %v3576_v50, %v3578_v10 }
 0x63e   : > { %3790 = vrot.lane.b32.xlu1 %v7125_v49, %s4704_s12  ;;  %3788 = vrot.lane.b32.xlu0 %v7117_v11, %s4704_s12 }
 0x63f   : > { %v3736_v6 = vrot.slane %v3646_v32, 1  ;;  %v2703_v44 = vpop.permute.xlu1 %2702  ;;  %v4681_v32 = vld [vmem:[#allocation2 + $0x490] sm:$0xff] }
 0x640   : > { %v2775_v30 = vadd.f32 %v4675_v58, %v2703_v44  ;;  %v2211_v8 = vpop.permute.xlu0 %2210  ;;  %v2810_v58 = vld [vmem:[#allocation2 + $0x548] sm:$0xff] }
 0x641   : > { %v2278_v46 = vadd.f32 %v4676_v56, %v2211_v8  ;;  %v3737_v12 = vsel %vm3008_vm0, %v3734_v37, %v3736_v6 }
 0x642   : > { %3794 = vrot.lane.b32.xlu1 %v3731_v2, %s4704_s12  ;;  %3792 = vrot.lane.b32.xlu0 %v3729_v41, %s4704_s12  ;;  %v2841_v49 = vadd.f32 %v2808_v21, %v2775_v30  ;;  %v2809_v2 = vld [vmem:[#allocation2 + $0x520] sm:$0xff]  ;;  %v4682_v30 = vld [vmem:[#allocation2 + $0x4d8] sm:$0xff] }
 0x643   : > { %v2213_v11 = vpop.permute.xlu1 %2212  ;;  %v7187_v13 = vadd.f32 %v4677_v47, %v2278_v46  ;;  %v7754_v46 = vld [vmem:[#allocation60_spill] sm:$0xff] }
 0x644   : > { %v3647_v25 = vmul.f32 %v3577_v42, %v2841_v49  ;;  %v2279_v19 = vadd.f32 %v4678_v24, %v2213_v11  ;;  %v2705_v43 = vpop.permute.xlu0 %2704  ;;  %v4683_v11 = vld [vmem:[#allocation2 + $0x4b8] sm:$0xff] }
 0x645   : > { %v2776_v3 = vadd.f32 %v4679_v26, %v2705_v43 }
 0x646   : > { %3798 = vrot.lane.b32.xlu1 %v3735_v14, %s4704_s12  ;;  %3796 = vrot.lane.b32.xlu0 %v3733_v27, %s4704_s12  ;;  %v3738_v41 = vrot.slane %v3647_v25, 1  ;;  %v7192_v34 = vadd.f32 %v4680_v5, %v2279_v19  ;;  %v7753_v27 = vld [vmem:[#allocation58_spill] sm:$0xff]  ;;  %v2811_v25 = vld [vmem:[#allocation2 + $0x570] sm:$0xff] }
 0x647   : > { %v2842_v31 = vadd.f32 %v2809_v2, %v2776_v3  ;;  %v7194_v52 = vpop.permute.xlu1 %3247  ;;  %v3580_v28 = vrot.slane %v7753_v27, 7 }
 0x648   : > { %v7197_v37 = vpop.permute.xlu0 %3245  ;;  %v3739_v22 = vsel %vm3008_vm0, %v3736_v6, %v3738_v41 }
 0x649   : > { %v3648_v35 = vmul.f32 %v3579_v63, %v2842_v31  ;;  %v3581_v6 = vsel %vm3171_vm7, %v3578_v10, %v3580_v28 }
 0x64a   : > { %3802 = vrot.lane.b32.xlu1 %v3739_v22, %s4704_s12  ;;  %3800 = vrot.lane.b32.xlu0 %v3737_v12, %s4704_s12  ;;  %v3582_v12 = vrot.slane %v7754_v46, 7 }
 0x64b   : > { %v3740_v60 = vrot.slane %v3648_v35, 1  ;;  %v2707_v14 = vpop.permute.xlu1 %2706 }
 0x64c   : > { %v2777_v48 = vadd.f32 %v4681_v32, %v2707_v14  ;;  %v2215_v44 = vpop.permute.xlu0 %2214  ;;  %v3583_v43 = vsel %vm3171_vm7, %v3580_v28, %v3582_v12 }
 0x64d   : > { %v7203_v8 = vadd.f32 %v4682_v30, %v2215_v44  ;;  %v3741_v50 = vsel %vm3008_vm0, %v3738_v41, %v3740_v60  ;;  %v2121_v41 = vld [vmem:[#allocation2 + $0x500] sm:$0xff] }
 0x64e   : > { %v2843_v21 = vadd.f32 %v2810_v58, %v2777_v48  ;;  %3804 = vrot.lane.b32.xlu0 %v3741_v50, %s4704_s12  ;;  %v2813_v48 = vld [vmem:[#allocation2 + $0x5c0] sm:$0xff]  ;;  %v7755_v58 = vld [vmem:[#allocation64_spill] sm:$0xff] }
 0x64f   : > { %v2217_v56 = vpop.permute.xlu1 %2216  ;;  %v3586_v30 = vrot.slane %v7755_v58, 7  ;;  %v7756_v50 = vld [vmem:[#allocation61_spill] sm:$0xff] }
 0x650   : > { %v3649_v49 = vmul.f32 %v3581_v6, %v2843_v21  ;;  %v2709_v42 = vpop.permute.xlu0 %2708  ;;  %v2281_v5 = vadd.f32 %v2217_v56, %v2121_v41  ;;  %v3584_v21 = vrot.slane %v7756_v50, 7  ;;  %v4685_v6 = vld [vmem:[#allocation2 + $0x508] sm:$0xff]  ;;  %v7757_v50 = vld [vmem:[#allocation67_spill] sm:$0xff] }
 0x651   : > { %v2778_v47 = vadd.f32 %v4683_v11, %v2709_v42  ;;  %v2814_v11 = vld [vmem:[#allocation2 + $0x5e8] sm:$0x1] }
 0x652   : > { %v3742_v51 = vrot.slane %v3649_v49, 1  ;;  %v2812_v49 = vld [vmem:[#allocation2 + $0x598] sm:$0xff] }
 0x653   : > { %v2844_v24 = vadd.f32 %v2811_v25, %v2778_v47  ;;  %v4686_v47 = vld [vmem:[#allocation2 + $0x4e0] sm:$0xff] }
 0x654   : > { %v3288_v19 = vpop.permute.xlu1 %3287  ;;  %v7213_v3 = vpop.permute.xlu0 %3249  ;;  %v3743_v10 = vsel %vm3008_vm0, %v3740_v60, %v3742_v51  ;;  %v2583_v60 = vld [vmem:[#allocation2 + $0x530] sm:$0x1] }
 0x655   : > { %v7211_v26 = vadd.f32 %v3288_v19, %v7140_v1  ;;  %v3650_v2 = vmul.f32 %v3583_v43, %v2844_v24  ;;  %3806 = vrot.lane.b32.xlu1 %v3743_v10, %s4704_s12  ;;  %v4684_v1 = vld [vmem:[#allocation2 + $0x8] sm:$0xff]  ;;  %v3587_v24 = vsel %vm3171_vm7, %v3584_v21, %v3586_v30 }
 0x656   : > { %v2345_v28 = vadd.f32 %v4684_v1, %v2281_v5  ;;  %v2250_v41 = vadd.f32 %v4684_v1, %v6543_v62 }
 0x657   : > { %v3744_v31 = vrot.slane %v3650_v2, 1  ;;  %v3585_v2 = vsel %vm3171_vm7, %v3582_v12, %v3584_v21 }
 0x658   : > { %v7217_v63 = vpop.permute.xlu1 %3251  ;;  %v3290_v22 = vpop.permute.xlu0 %3289 }
 0x659   : > { %v7220_v35 = vadd.f32 %v3290_v22, %v7163_v59  ;;  %v3745_v27 = vsel %vm3008_vm0, %v3742_v51, %v3744_v31  ;;  %v4690_v59 = vadd.high.f32.bf16 %v2583_v60, %v5989_v61 }
 0x65a   : > { %3808 = vrot.lane.b32.xlu0 %v3745_v27, %s4704_s12 }
 0x65b   : > { %v2847_v10 = vadd.f32 %v4690_v59, %v2814_v11 }
 0x65c   : > { %v3300_v14 = vpop.permute.xlu1 %3299  ;;  %v2713_v44 = vpop.permute.xlu0 %2712 }
 0x65d   : > { %v7224_v32 = vadd.f32 %v3300_v14, %v2345_v28  ;;  %v2780_v56 = vadd.f32 %v4685_v6, %v2713_v44  ;;  %v3653_v60 = vmul.f32 %v3586_v30, %v2847_v10  ;;  %v2251_v6 = vadd.f32 %v4684_v1, %v7757_v50  ;;  %v7761_v50 = vld [vmem:[#allocation4_spill] sm:$0xff] }
 0x65f   : > { %v2846_v46 = vadd.f32 %v2813_v48, %v2780_v56  ;;  %v4687_v48 = vld [vmem:[#allocation2 + $0xe0] sm:$0xff]  ;;  %v3750_v30 = vrot.slane %v3653_v60, 1 }
 0x660   : > { %v2711_v42 = vpop.permute.xlu1 %2710  ;;  %v7229_v25 = vpop.permute.xlu0 %3253  ;;  %v2314_v44 = vadd.f32 %v4687_v48, %v2250_v41 }
 0x661   : > { %v2779_v51 = vadd.f32 %v4686_v47, %v2711_v42  ;;  %v3652_v19 = vmul.f32 %v3587_v24, %v2846_v46  ;;  %v4688_v42 = vld [vmem:[#allocation2 + $0x108] sm:$0xff]  ;;  %v7758_v24 = vld [vmem:[#allocation65_spill] sm:$0xff] }
 0x662   : > { %v3333_v21 = vadd.f32 %v7145_v9, %v2314_v44  ;;  %v2315_v11 = vadd.f32 %v4688_v42, %v2251_v6  ;;  %v7763_v42 = vld [vmem:[#allocation43_spill] sm:$0xff] }
 0x663   : > { %v2845_v43 = vadd.f32 %v2812_v49, %v2779_v51  ;;  %v3748_v28 = vrot.slane %v3652_v19, 1  ;;  %v2344_v49 = vadd.f32 %v4684_v1, %v7203_v8 }
 0x664   : > { %v3292_v5 = vpop.permute.xlu1 %3291  ;;  %v3753_v27 = vpop.permute.xlu0 %3752 }
 0x665   : > { %v3651_v22 = vmul.f32 %v3585_v2, %v2845_v43  ;;  %v7235_v61 = vadd.f32 %v3292_v5, %v7170_v38  ;;  %v3848_v59 = vadd.f32 %v3753_v27, %v3333_v21  ;;  %v3751_v9 = vsel %vm3008_vm0, %v3748_v28, %v3750_v30  ;;  %v7760_v27 = vld [vmem:[#allocation40_spill] sm:$0xff] }
 0x667   : > { %v3746_v14 = vrot.slane %v3651_v22, 1  ;;  %v3889_v19 = vadd.f32 %v7758_v24, %v3848_v59 }
 0x668   : > { %v7237_v58 = vpop.permute.xlu1 %3255  ;;  %v3294_v56 = vpop.permute.xlu0 %3293 }
 0x669   : > { %v3747_v62 = vsel %vm3008_vm0, %v3744_v31, %v3746_v14  ;;  %v3749_v12 = vsel %vm3008_vm0, %v3746_v14, %v3748_v28  ;;  %v7244_v38 = vadd.f32 %v3294_v56, %v7187_v13  ;;  %v3334_v13 = vadd.f32 %v7142_v33, %v2315_v11  ;;  %vm7766_vm0 = vmmov %vm7634_vm1 }
 0x66a   : > { %3810 = vrot.lane.b32.xlu1 %v3747_v62, %s4704_s12  ;;  %3812 = vrot.lane.b32.xlu0 %v3749_v12, %s4704_s12  ;;  %v3336_v33 = vadd.f32 %v7172_v23, %v7760_v27  ;;  %v7762_v12 = vld [vmem:[#allocation23_spill] sm:$0xff]  ;;  %vm7767_vm7 = vmmov %vm7766_vm0 }
 0x66b   : > { %v3338_v23 = vadd.f32 %v7194_v52, %v7762_v12  ;;  %vm7768_vm3 = vmmov %vm7766_vm0 }
 0x66c   : > { %v3296_v46 = vpop.permute.xlu1 %3295  ;;  %v3298_v47 = vpop.permute.xlu0 %3297  ;;  %vm7769_vm4 = vmmov %vm7766_vm0 }
 0x66d   : > { %v7250_v31 = vadd.f32 %v3296_v46, %v7192_v34  ;;  %v7253_v51 = vadd.f32 %v3298_v47, %v2344_v49  ;;  %v7759_v34 = vld [vmem:[#allocation68_spill] sm:$0xff]  ;;  %vm7770_vm8 = vmmov %vm7766_vm0 }
 0x66e   : > { %3814 = vrot.lane.b32.xlu1 %v3751_v9, %s4704_s12  ;;  %v3335_v1 = vadd.f32 %v7175_v29, %v7759_v34  ;;  %v3337_v29 = vadd.f32 %v7197_v37, %v7761_v50  ;;  %v3339_v37 = vadd.f32 %v7213_v3, %v7763_v42  ;;  %vm7771_vm14 = vmmov %vm7766_vm0 }
 0x66f   : > { %vm7772_vm15 = vmmov %vm7766_vm0 }
 0x670   : > { %v3755_v43 = vpop.permute.xlu1 %3754  ;;  %v3258_v41 = vpop.permute.xlu0 %3257  ;;  %vm7773_vm9 = vmmov %vm7766_vm0 }
 0x671   : > { %v3849_v10 = vadd.f32 %v3755_v43, %v3334_v13  ;;  %v7764_v13 = vld [vmem:[#allocation3_spill] sm:$0xff]  ;;  %v3343_v50 = vadd.f32 %v3258_v41, %v6842_v7  ;;  %vm7774_vm12 = vmmov %vm7766_vm0 }
 0x672   : > { %3953 = vrot.lane.b32.xlu1 %v3889_v19, %s4704_s12  ;;  %v3340_v52 = vadd.f32 %v7217_v63, %v7764_v13  ;;  %v3342_v63 = vadd.f32 %v7237_v58, %v6806_v45  ;;  %vm7775_vm5 = vmmov %vm7766_vm0 }
 0x673   : > { %v3890_v8 = vadd.f32 %v7758_v24, %v3849_v10  ;;  %vm7776_vm6 = vmmov %vm7766_vm0 }
 0x674   : > { %v3260_v2 = vpop.permute.xlu1 %3259  ;;  %v3757_v5 = vpop.permute.xlu0 %3756  ;;  %vm7777_vm10 = vmmov %vm7766_vm0 }
 0x675   : > { %3955 = vrot.lane.b32.xlu0 %v3890_v8, %s4704_s12  ;;  %v3850_v22 = vadd.f32 %v3757_v5, %v3335_v1  ;;  %v7765_v1 = vld [vmem:[#allocation5_spill] sm:$0xff]  ;;  %vm7778_vm13 = vmmov %vm7766_vm0 }
 0x676   : > { %v3341_v3 = vadd.f32 %v7229_v25, %v7765_v1  ;;  %vm7779_vm2 = vmmov %vm7766_vm0 }
 0x677   : > { %v3891_v28 = vadd.f32 %v7758_v24, %v3850_v22  ;;  %vm7780_vm1 = vmmov %vm7766_vm0 }
 0x678   : > { %v3759_v14 = vpop.permute.xlu1 %3758  ;;  %v3262_v48 = vpop.permute.xlu0 %3261  ;;  %vm7781_vm11 = vmmov %vm7766_vm0 }
 0x679   : > { %v3851_v60 = vadd.f32 %v3759_v14, %v3336_v33  ;;  %3957 = vrot.lane.b32.xlu1 %v3891_v28, %s4704_s12 }
 0x67b   : > { %v3892_v44 = vadd.f32 %v7758_v24, %v3851_v60 }
 0x67c   : > { %v3264_v6 = vpop.permute.xlu1 %3263  ;;  %v3761_v56 = vpop.permute.xlu0 %3760 }
 0x67d   : > { %3959 = vrot.lane.b32.xlu0 %v3892_v44, %s4704_s12  ;;  %v3852_v62 = vadd.f32 %v3761_v56, %v3337_v29 }
 0x67f   : > { %v3893_v21 = vadd.f32 %v7758_v24, %v3852_v62  ;;  %v3344_v62 = vadd.f32 %v3260_v2, %v6876_v0 }
 0x680   : > { %v3763_v30 = vpop.permute.xlu1 %3762  ;;  %v3266_v46 = vpop.permute.xlu0 %3265 }
 0x681   : > { %v3853_v59 = vadd.f32 %v3763_v30, %v3338_v23  ;;  %3961 = vrot.lane.b32.xlu1 %v3893_v21, %s4704_s12  ;;  %v3345_v30 = vadd.f32 %v3262_v48, %v6899_v17 }
 0x683   : > { %v3894_v49 = vadd.f32 %v7758_v24, %v3853_v59 }
 0x684   : > { %v3268_v11 = vpop.permute.xlu1 %3267  ;;  %v3765_v47 = vpop.permute.xlu0 %3764 }
 0x685   : > { %3963 = vrot.lane.b32.xlu0 %v3894_v49, %s4704_s12  ;;  %v3854_v9 = vadd.f32 %v3765_v47, %v3339_v37  ;;  %v3346_v49 = vadd.f32 %v3264_v6, %v6927_v15 }
 0x687   : > { %v3895_v19 = vadd.f32 %v7758_v24, %v3854_v9  ;;  %v3347_v9 = vadd.f32 %v3266_v46, %v6949_v16 }
 0x688   : > { %v3767_v43 = vpop.permute.xlu1 %3766  ;;  %v3270_v8 = vpop.permute.xlu0 %3269 }
 0x689   : > { %v3855_v10 = vadd.f32 %v3767_v43, %v3340_v52  ;;  %3965 = vrot.lane.b32.xlu1 %v3895_v19, %s4704_s12  ;;  %v3348_v52 = vadd.f32 %v3268_v11, %v6981_v40  ;;  %v3349_v16 = vadd.f32 %v3270_v8, %v7003_v54 }
 0x68b   : > { %v3896_v34 = vadd.f32 %v7758_v24, %v3855_v10 }
 0x68c   : > { %v3272_v5 = vpop.permute.xlu1 %3271  ;;  %v3769_v22 = vpop.permute.xlu0 %3768 }
 0x68d   : > { %3967 = vrot.lane.b32.xlu0 %v3896_v34, %s4704_s12  ;;  %v3856_v27 = vadd.f32 %v3769_v22, %v3341_v3  ;;  %v3350_v10 = vadd.f32 %v3272_v5, %v7030_v39 }
 0x68f   : > { %v3897_v33 = vadd.f32 %v7758_v24, %v3856_v27 }
 0x690   : > { %v3771_v28 = vpop.permute.xlu1 %3770  ;;  %v3274_v60 = vpop.permute.xlu0 %3273 }
 0x691   : > { %v3857_v14 = vadd.f32 %v3771_v28, %v3342_v63  ;;  %3969 = vrot.lane.b32.xlu1 %v3897_v33, %s4704_s12  ;;  %v3351_v27 = vadd.f32 %v3274_v60, %v7054_v36 }
 0x693   : > { %v3898_v44 = vadd.f32 %v7758_v24, %v3857_v14 }
 0x694   : > { %v3276_v25 = vpop.permute.xlu1 %3275  ;;  %v3773_v29 = vpop.permute.xlu0 %3772 }
 0x695   : > { %3971 = vrot.lane.b32.xlu0 %v3898_v44, %s4704_s12  ;;  %v3858_v56 = vadd.f32 %v3773_v29, %v3343_v50  ;;  %v3352_v40 = vadd.f32 %v3276_v25, %v7068_v20 }
 0x697   : > { %v3899_v45 = vadd.f32 %v7758_v24, %v3858_v56 }
 0x698   : > { %v3775_v58 = vpop.permute.xlu1 %3774  ;;  %v3278_v23 = vpop.permute.xlu0 %3277 }
 0x699   : > { %v3859_v12 = vadd.f32 %v3775_v58, %v3344_v62  ;;  %3973 = vrot.lane.b32.xlu1 %v3899_v45, %s4704_s12  ;;  %v3353_v20 = vadd.f32 %v3278_v23, %v7082_v4 }
 0x69b   : > { %v3900_v21 = vadd.f32 %v7758_v24, %v3859_v12 }
 0x69c   : > { %v3280_v59 = vpop.permute.xlu1 %3279  ;;  %v3777_v7 = vpop.permute.xlu0 %3776 }
 0x69d   : > { %3975 = vrot.lane.b32.xlu0 %v3900_v21, %s4704_s12  ;;  %v3860_v41 = vadd.f32 %v3777_v7, %v3345_v30  ;;  %v3354_v8 = vadd.f32 %v3280_v59, %v7094_v57 }
 0x69f   : > { %v3901_v0 = vadd.f32 %v7758_v24, %v3860_v41 }
 0x6a0   : > { %v3779_v2 = vpop.permute.xlu1 %3778  ;;  %v3282_v37 = vpop.permute.xlu0 %3281 }
 0x6a1   : > { %v3861_v42 = vadd.f32 %v3779_v2, %v3346_v49  ;;  %3977 = vrot.lane.b32.xlu1 %v3901_v0, %s4704_s12  ;;  %v3355_v57 = vadd.f32 %v3282_v37, %v7108_v18 }
 0x6a3   : > { %v3902_v47 = vadd.f32 %v7758_v24, %v3861_v42 }
 0x6a4   : > { %v3284_v13 = vpop.permute.xlu1 %3283  ;;  %v3781_v17 = vpop.permute.xlu0 %3780 }
 0x6a5   : > { %3979 = vrot.lane.b32.xlu0 %v3902_v47, %s4704_s12  ;;  %v3862_v48 = vadd.f32 %v3781_v17, %v3347_v9  ;;  %v3356_v25 = vadd.f32 %v3284_v13, %v7120_v55 }
 0x6a7   : > { %v3903_v15 = vadd.f32 %v7758_v24, %v3862_v48 }
 0x6a8   : > { %v3783_v6 = vpop.permute.xlu1 %3782  ;;  %v3286_v43 = vpop.permute.xlu0 %3285 }
 0x6a9   : > { %v3863_v19 = vadd.f32 %v3783_v6, %v3348_v52  ;;  %3981 = vrot.lane.b32.xlu1 %v3903_v15, %s4704_s12  ;;  %v3357_v23 = vadd.f32 %v3286_v43, %v7132_v53 }
 0x6ab   : > { %v3904_v34 = vadd.f32 %v7758_v24, %v3863_v19 }
 0x6ac   : > { %v3787_v46 = vpop.permute.xlu1 %3786  ;;  %v3785_v3 = vpop.permute.xlu0 %3784 }
 0x6ad   : > { %v3865_v1 = vadd.f32 %v3787_v46, %v3350_v10  ;;  %3983 = vrot.lane.b32.xlu0 %v3904_v34, %s4704_s12  ;;  %v3864_v22 = vadd.f32 %v3785_v3, %v3349_v16 }
 0x6af   : > { %v3906_v11 = vadd.f32 %v7758_v24, %v3865_v1  ;;  %v3905_v63 = vadd.f32 %v7758_v24, %v3864_v22 }
 0x6b0   : > { %v3791_v33 = vpop.permute.xlu1 %3790  ;;  %v3789_v5 = vpop.permute.xlu0 %3788 }
 0x6b1   : > { %v3867_v39 = vadd.f32 %v3791_v33, %v3352_v40  ;;  %3987 = vrot.lane.b32.xlu0 %v3906_v11, %s4704_s12  ;;  %v3866_v54 = vadd.f32 %v3789_v5, %v3351_v27  ;;  %3985 = vrot.lane.b32.xlu1 %v3905_v63, %s4704_s12 }
 0x6b3   : > { %v3908_v28 = vadd.f32 %v7758_v24, %v3867_v39  ;;  %v3907_v14 = vadd.f32 %v7758_v24, %v3866_v54 }
 0x6b4   : > { %v3795_v44 = vpop.permute.xlu1 %3794  ;;  %v3793_v60 = vpop.permute.xlu0 %3792 }
 0x6b5   : > { %v3869_v36 = vadd.f32 %v3795_v44, %v3354_v8  ;;  %3991 = vrot.lane.b32.xlu0 %v3908_v28, %s4704_s12  ;;  %v3868_v50 = vadd.f32 %v3793_v60, %v3353_v20  ;;  %3989 = vrot.lane.b32.xlu1 %v3907_v14, %s4704_s12 }
 0x6b7   : > { %v3910_v29 = vadd.f32 %v7758_v24, %v3869_v36  ;;  %v3909_v56 = vadd.f32 %v7758_v24, %v3868_v50 }
 0x6b8   : > { %v3799_v62 = vpop.permute.xlu1 %3798  ;;  %v3797_v45 = vpop.permute.xlu0 %3796 }
 0x6b9   : > { %v3871_v4 = vadd.f32 %v3799_v62, %v3356_v25  ;;  %3995 = vrot.lane.b32.xlu0 %v3910_v29, %s4704_s12  ;;  %v3870_v58 = vadd.f32 %v3797_v45, %v3355_v57  ;;  %3993 = vrot.lane.b32.xlu1 %v3909_v56, %s4704_s12 }
 0x6bb   : > { %v3912_v12 = vadd.f32 %v7758_v24, %v3871_v4  ;;  %v3911_v55 = vadd.f32 %v7758_v24, %v3870_v58 }
 0x6bc   : > { %v3803_v21 = vpop.permute.xlu1 %3802  ;;  %v3801_v18 = vpop.permute.xlu0 %3800 }
 0x6bd   : > { %v3873_v30 = vadd.f32 %v3803_v21, %v7211_v26  ;;  %3999 = vrot.lane.b32.xlu0 %v3912_v12, %s4704_s12  ;;  %v3872_v59 = vadd.f32 %v3801_v18, %v3357_v23  ;;  %3997 = vrot.lane.b32.xlu1 %v3911_v55, %s4704_s12 }
 0x6bf   : > { %v3914_v7 = vadd.f32 %v7758_v24, %v3873_v30  ;;  %v3913_v41 = vadd.f32 %v7758_v24, %v3872_v59 }
 0x6c0   : > { %v3805_v49 = vpop.permute.xlu0 %3804 }
 0x6c1   : > { %4003 = vrot.lane.b32.xlu0 %v3914_v7, %s4704_s12  ;;  %v3874_v53 = vadd.f32 %v3805_v49, %v7220_v35  ;;  %4001 = vrot.lane.b32.xlu1 %v3913_v41, %s4704_s12 }
 0x6c3   : > { %v3915_v0 = vadd.f32 %v7758_v24, %v3874_v53 }
 0x6c5   : > { %4005 = vrot.lane.b32.xlu1 %v3915_v0, %s4704_s12 }
 0x6c7   : > { %v3807_v26 = vpop.permute.xlu1 %3806 }
 0x6c8   : > { %v3875_v2 = vadd.f32 %v3807_v26, %v7235_v61 }
 0x6ca   : > { %v3916_v42 = vadd.f32 %v7758_v24, %v3875_v2 }
 0x6cc   : > { %4007 = vrot.lane.b32.xlu0 %v3916_v42, %s4704_s12  ;;  %v3809_v37 = vpop.permute.xlu0 %3808 }
 0x6cd   : > { %v3876_v47 = vadd.f32 %v3809_v37, %v7244_v38 }
 0x6cf   : > { %v3917_v9 = vadd.f32 %v7758_v24, %v3876_v47 }
 0x6d1   : > { %4009 = vrot.lane.b32.xlu1 %v3917_v9, %s4704_s12 }
 0x6dc   : > { %v3811_v35 = vpop.permute.xlu1 %3810  ;;  %v3813_v13 = vpop.permute.xlu0 %3812 }
 0x6dd   : > { %v3877_v17 = vadd.f32 %v3811_v35, %v7250_v31  ;;  %v3878_v48 = vadd.f32 %v3813_v13, %v7253_v51 }
 0x6df   : > { %v3918_v61 = vadd.f32 %v7758_v24, %v3877_v17  ;;  %v3919_v52 = vadd.f32 %v7758_v24, %v3878_v48 }
 0x6e0   : > { %v3815_v15 = vpop.permute.xlu1 %3814 }
 0x6e1   : > { %v3879_v6 = vadd.f32 %v3815_v15, %v7224_v32  ;;  %4011 = vrot.lane.b32.xlu0 %v3918_v61, %s4704_s12  ;;  %4013 = vrot.lane.b32.xlu1 %v3919_v52, %s4704_s12 }
 0x6e3   : > { %v3920_v38 = vadd.f32 %v7758_v24, %v3879_v6 }
 0x6e4   : > { %v3954_v32 = vpop.permute.xlu1 %3953 }
 0x6e5   : > { %4049 = vst.msk [vmem:[%s7362_s14] sm:$0xff] %vm7766_vm0, %v3954_v32  ;;  %4015 = vrot.lane.b32.xlu0 %v3920_v38, %s4704_s12 }
 0x6e7   : > { %v3956_v31 = vpop.permute.xlu0 %3955 }
 0x6e8   : > { %4050 = vst.msk [vmem:[%s7362_s14 + $0x8] sm:$0xff] %vm7767_vm7, %v3956_v31  ;;  %vm7782_vm7 = vmmov %vm7766_vm0 }
 0x6eb   : > { %v3958_v51 = vpop.permute.xlu1 %3957 }
 0x6ec   : > { %4051 = vst.msk [vmem:[%s7362_s14 + $0x10] sm:$0xff] %vm7768_vm3, %v3958_v51  ;;  %vm7783_vm3 = vmmov %vm7766_vm0 }
 0x6ef   : > { %v3960_v19 = vpop.permute.xlu0 %3959 }
 0x6f0   : > { %4052 = vst.msk [vmem:[%s7362_s14 + $0x18] sm:$0xff] %vm7769_vm4, %v3960_v19  ;;  %vm7784_vm4 = vmmov %vm7766_vm0 }
 0x6f3   : > { %v3962_v24 = vpop.permute.xlu1 %3961 }
 0x6f4   : > { %4053 = vst.msk [vmem:[%s7362_s14 + $0x20] sm:$0xff] %vm7770_vm8, %v3962_v24  ;;  %vm7785_vm8 = vmmov %vm7766_vm0 }
 0x6f7   : > { %v3964_v43 = vpop.permute.xlu0 %3963 }
 0x6f8   : > { %4054 = vst.msk [vmem:[%s7362_s14 + $0x28] sm:$0xff] %vm7771_vm14, %v3964_v43  ;;  %vm7786_vm14 = vmmov %vm7766_vm0 }
 0x6fb   : > { %v3966_v10 = vpop.permute.xlu1 %3965 }
 0x6fc   : > { %4055 = vst.msk [vmem:[%s7362_s14 + $0x30] sm:$0xff] %vm7772_vm15, %v3966_v10  ;;  %vm7787_vm15 = vmmov %vm7766_vm0 }
 0x6ff   : > { %v3968_v34 = vpop.permute.xlu0 %3967 }
 0x700   : > { %4056 = vst.msk [vmem:[%s7362_s14 + $0x38] sm:$0xff] %vm7773_vm9, %v3968_v34  ;;  %vm7788_vm9 = vmmov %vm7766_vm0 }
 0x703   : > { %v3970_v16 = vpop.permute.xlu1 %3969 }
 0x704   : > { %4057 = vst.msk [vmem:[%s7362_s14 + $0x40] sm:$0xff] %vm7774_vm12, %v3970_v16  ;;  %vm7789_vm12 = vmmov %vm7766_vm0 }
 0x707   : > { %v3972_v46 = vpop.permute.xlu0 %3971 }
 0x708   : > { %4058 = vst.msk [vmem:[%s7362_s14 + $0x48] sm:$0xff] %vm7775_vm5, %v3972_v46  ;;  %vm7790_vm5 = vmmov %vm7766_vm0 }
 0x70b   : > { %v3974_v1 = vpop.permute.xlu1 %3973 }
 0x70c   : > { %4059 = vst.msk [vmem:[%s7362_s14 + $0x50] sm:$0xff] %vm7776_vm6, %v3974_v1  ;;  %vm7791_vm6 = vmmov %vm7766_vm0 }
 0x70f   : > { %v3976_v3 = vpop.permute.xlu0 %3975 }
 0x710   : > { %4060 = vst.msk [vmem:[%s7362_s14 + $0x58] sm:$0xff] %vm7777_vm10, %v3976_v3  ;;  %vm7792_vm10 = vmmov %vm7766_vm0 }
 0x713   : > { %v3978_v22 = vpop.permute.xlu1 %3977 }
 0x714   : > { %4061 = vst.msk [vmem:[%s7362_s14 + $0x60] sm:$0xff] %vm7778_vm13, %v3978_v22  ;;  %vm7793_vm13 = vmmov %vm7766_vm0 }
 0x717   : > { %v3980_v40 = vpop.permute.xlu0 %3979 }
 0x718   : > { %4062 = vst.msk [vmem:[%s7362_s14 + $0x68] sm:$0xff] %vm7779_vm2, %v3980_v40  ;;  %vm7794_vm2 = vmmov %vm7766_vm0 }
 0x71b   : > { %v3982_v11 = vpop.permute.xlu1 %3981 }
 0x71c   : > { %4063 = vst.msk [vmem:[%s7362_s14 + $0x70] sm:$0xff] %vm7780_vm1, %v3982_v11  ;;  %vm7795_vm1 = vmmov %vm7766_vm0 }
 0x71f   : > { %v3984_v27 = vpop.permute.xlu0 %3983 }
 0x720   : > { %4064 = vst.msk [vmem:[%s7362_s14 + $0x78] sm:$0xff] %vm7781_vm11, %v3984_v27  ;;  %vm7796_vm11 = vmmov %vm7766_vm0 }
 0x723   : > { %v3988_v63 = vpop.permute.xlu0 %3987  ;;  %v3986_v33 = vpop.permute.xlu1 %3985 }
 0x724   : > { %4066 = vst.msk [vmem:[%s7362_s14 + $0x88] sm:$0xff] %vm7766_vm0, %v3988_v63 }
 0x725   : > { %4065 = vst.msk [vmem:[%s7362_s14 + $0x80] sm:$0xff] %vm7782_vm7, %v3986_v33 }
 0x727   : > { %v3992_v39 = vpop.permute.xlu0 %3991  ;;  %v3990_v5 = vpop.permute.xlu1 %3989 }
 0x728   : > { %4068 = vst.msk [vmem:[%s7362_s14 + $0x98] sm:$0xff] %vm7783_vm3, %v3992_v39 }
 0x729   : > { %4067 = vst.msk [vmem:[%s7362_s14 + $0x90] sm:$0xff] %vm7784_vm4, %v3990_v5 }
 0x72b   : > { %v3996_v54 = vpop.permute.xlu0 %3995  ;;  %v3994_v8 = vpop.permute.xlu1 %3993 }
 0x72c   : > { %4070 = vst.msk [vmem:[%s7362_s14 + $0xa8] sm:$0xff] %vm7785_vm8, %v3996_v54 }
 0x72d   : > { %4069 = vst.msk [vmem:[%s7362_s14 + $0xa0] sm:$0xff] %vm7786_vm14, %v3994_v8 }
 0x72f   : > { %v4000_v28 = vpop.permute.xlu0 %3999  ;;  %v3998_v20 = vpop.permute.xlu1 %3997 }
 0x730   : > { %4072 = vst.msk [vmem:[%s7362_s14 + $0xb8] sm:$0xff] %vm7787_vm15, %v4000_v28 }
 0x731   : > { %4071 = vst.msk [vmem:[%s7362_s14 + $0xb0] sm:$0xff] %vm7788_vm9, %v3998_v20 }
 0x733   : > { %v4004_v14 = vpop.permute.xlu0 %4003  ;;  %v4002_v44 = vpop.permute.xlu1 %4001 }
 0x734   : > { %4074 = vst.msk [vmem:[%s7362_s14 + $0xc8] sm:$0xff] %vm7789_vm12, %v4004_v14 }
 0x735   : > { %4073 = vst.msk [vmem:[%s7362_s14 + $0xc0] sm:$0xff] %vm7790_vm5, %v4002_v44 }
 0x737   : > { %v4006_v36 = vpop.permute.xlu1 %4005 }
 0x738   : > { %4075 = vst.msk [vmem:[%s7362_s14 + $0xd0] sm:$0xff] %vm7791_vm6, %v4006_v36 }
 0x73e   : > { %v4008_v60 = vpop.permute.xlu0 %4007 }
 0x73f   : > { %4076 = vst.msk [vmem:[%s7362_s14 + $0xd8] sm:$0xff] %vm7792_vm10, %v4008_v60 }
 0x743   : > { %v4010_v50 = vpop.permute.xlu1 %4009 }
 0x744   : > { %4077 = vst.msk [vmem:[%s7362_s14 + $0xe0] sm:$0xff] %vm7793_vm13, %v4010_v50 }
 0x753   : > { %v4014_v25 = vpop.permute.xlu1 %4013  ;;  %v4012_v29 = vpop.permute.xlu0 %4011 }
 0x754   : > { %4079 = vst.msk [vmem:[%s7362_s14 + $0xf0] sm:$0xff] %vm7794_vm2, %v4014_v25 }
 0x755   : > { %4078 = vst.msk [vmem:[%s7362_s14 + $0xe8] sm:$0xff] %vm7795_vm1, %v4012_v29 }
 0x757   : > { %v4016_v57 = vpop.permute.xlu0 %4015 }
 0x758   : > { %4080 = vst.msk [vmem:[%s7362_s14 + $0xf8] sm:$0xff] %vm7796_vm11, %v4016_v57 }
 0x759 PF: > { %s17_s24 = sadd.s32 1, %s4697_s24  }
 0x75a   : > { %p14_p4 = scmp.ge.s32.totalorder %s17_s24, 4  }
 0x75c   :  { %16 = sbr.rel (!%p14_p4) target bundleno = 1 (0x1), region = 78 }

</bundles_post_ra>
